<compile_context>
chip_gen: v7x
topology: tpu7x:2x2x1
jax: 0.10.0
libtpu: 0.0.40
codegen_flags: <defaults>
</compile_context>

<pallas_src>
import functools

import jax
import jax.numpy as jnp
from jax.experimental import pallas as pl
from jax.experimental.pallas import tpu as pltpu


_H = _W = 32                      # input spatial size (implied by the 16*5*5 flatten)
_IMG = _H * _W                    # 1024 lanes per image in the dilated raster layout
_K = 5                            # conv kernel size
_KK = _K * _K                     # 25 patch offsets per conv
_CIN_PAD = 8                      # conv input channels (3, 6) padded to 8 sublanes
_PROWS = 16 * ((_KK + 1) // 2)    # 208 patch rows (26 pieces of 8, 16-row aligned)
_LANE_PAD = 3 * 128               # zero lane pad so every shift is a plain slice (max 264)


# ------------------------------- Pallas kernel ------------------------------ #

def _pad_lanes(x, pad):
    return jnp.concatenate([x, jnp.zeros((x.shape[0], pad), x.dtype)], axis=1)


def _conv_relu(act, w_ref, b_ref, offsets, p_ref):
    """Valid 5x5 conv + bias + relu in the dilated raster layout.

    act: (8, L) f32, one image per 1024-lane chunk.
    offsets: 25 static lane offsets, one per (kh, kw) patch position.
    p_ref: (208, L) bf16 VMEM scratch holding the im2col patch matrix.
    Returns (Cout_pad, L) f32; invalid lanes hold garbage and are never read.
    """
    L = act.shape[1]
    ap = _pad_lanes(act, _LANE_PAD)
    zero = jnp.zeros_like(act)
    npiece = len(offsets)
    for j in range((npiece + 1) // 2):            # 13 tile-aligned 16-row stores
        i0, i1 = 2 * j, 2 * j + 1
        top = ap[:, offsets[i0]:offsets[i0] + L]
        bot = ap[:, offsets[i1]:offsets[i1] + L] if i1 < npiece else zero
        p_ref[16 * j:16 * (j + 1), :] = jnp.concatenate(
            [top, bot], axis=0).astype(jnp.bfloat16)
    acc = jnp.dot(w_ref[...], p_ref[...], preferred_element_type=jnp.float32)
    return jnp.maximum(acc + b_ref[...], 0.0)


def _pool(y, shifts):
    """2x2 max-pool as an elementwise max of lane-shifted copies."""
    L = y.shape[1]
    yp = _pad_lanes(y, _LANE_PAD)
    m = y
    for s in shifts:
        m = jnp.maximum(m, yp[:, s:s + L])
    return m


def _cnn_kernel(a_ref, w1_ref, b1_ref, w2_ref, b2_ref, sel_ref,
                fw1_ref, fb1_ref, fw2_ref, fb2_ref, fw3_ref, fb3_ref,
                o_ref, p_ref, *, batch):
    off1 = [_W * kh + kw for kh in range(_K) for kw in range(_K)]          # stride-1 grid
    off2 = [2 * _W * kh + 2 * kw for kh in range(_K) for kw in range(_K)]  # pooled (x2) grid

    # conv1 + relu + 2x2 pool (pool offsets: +1 lane = w+1, +32 lanes = h+1)
    y1 = _conv_relu(a_ref[...], w1_ref, b1_ref, off1, p_ref)      # (8, L) f32
    m1 = _pool(y1, (1, _W, _W + 1))

    # conv2 + relu + 2x2 pool (grid is now 2x dilated -> strides double)
    y2 = _conv_relu(m1, w2_ref, b2_ref, off2, p_ref)              # (16, L) f32
    m2 = _pool(y2, (2, 2 * _W, 2 * _W + 2))

    # Compact the 25 valid (dilated) lanes of each image into its 128-lane chunk with one
    # precomputed 0/1 selection matmul (stays in VMEM; the MXU does the gather).
    u = jnp.dot(m2.astype(jnp.bfloat16), sel_ref[...],
                preferred_element_type=jnp.float32)               # (16, batch*128)

    # Per-image flatten (c, s) -> feature lane c*128 + s via 128-aligned lane concats;
    # fc1 weights were pre-scattered to the same c*128 + s layout.
    rows = []
    for n in range(batch):
        un = u[:, 128 * n:128 * (n + 1)]                          # (16, 128)
        rows.append(jnp.concatenate([un[c:c + 1, :] for c in range(16)], axis=1))
    x = jnp.concatenate(rows, axis=0).astype(jnp.bfloat16)        # (batch, 2048)

    h = jnp.dot(x, fw1_ref[...], preferred_element_type=jnp.float32) + fb1_ref[...]
    h = jnp.maximum(h, 0.0)
    h = jnp.dot(h.astype(jnp.bfloat16), fw2_ref[...],
                preferred_element_type=jnp.float32) + fb2_ref[...]
    h = jnp.maximum(h, 0.0)
    h = jnp.dot(h.astype(jnp.bfloat16), fw3_ref[...],
                preferred_element_type=jnp.float32) + fb3_ref[...]
    o_ref[...] = h


# ------------------------------ Pallas wrapper ------------------------------ #

def cnn_forward(prep, x):
    n, c, h, w = x.shape
    assert (c, h, w) == (3, _H, _W), "LeNet/CIFAR layout (3, 32, 32) expected"
    lanes = n * _IMG
    a = jnp.transpose(x, (1, 0, 2, 3)).reshape(c, lanes)                 # channel-major
    a = jnp.pad(a, ((0, _CIN_PAD - c), (0, 0))).astype(jnp.float32)      # (8, N*1024)

    vmem = pl.BlockSpec(memory_space=pltpu.MemorySpace.VMEM)
    out = pl.pallas_call(
        functools.partial(_cnn_kernel, batch=n),
        out_shape=jax.ShapeDtypeStruct((n, 128), jnp.float32),
        in_specs=[vmem] * 12,
        out_specs=vmem,
        scratch_shapes=[pltpu.VMEM((_PROWS, lanes), jnp.bfloat16)],
        compiler_params=pltpu.CompilerParams(
            internal_scratch_in_bytes=6 * 1024 * 1024),
    )(a, prep["w1m"], prep["b1"], prep["w2m"], prep["b2"], prep["sel"],
      prep["w1p"], prep["b1p"], prep["w2p"], prep["b2p"], prep["w3p"], prep["b3p"])
    return out[:, :10]


# ------------------------------- Param prep --------------------------------- #

def prepare_params(params, batch):
    """One-time prep: conv weights in patch-row order, fc weights pre-scattered, plus the
    0/1 lane-compaction matrix. Matmul operands bf16, biases f32."""

    def conv_mat(w, cout_pad):
        cout, cin, kh, kw = w.shape
        wm = jnp.transpose(w, (0, 2, 3, 1))                               # (co, kh, kw, ci)
        wm = jnp.pad(wm, ((0, cout_pad - cout), (0, 0), (0, 0), (0, _CIN_PAD - cin)))
        wm = wm.reshape(cout_pad, kh * kw * _CIN_PAD)                     # col = (kh*5+kw)*8+ci
        wm = jnp.pad(wm, ((0, 0), (0, _PROWS - wm.shape[1])))
        return wm.astype(jnp.bfloat16)

    def conv_bias(b, cout_pad):
        return jnp.pad(b, (0, cout_pad - b.shape[0])).reshape(cout_pad, 1).astype(jnp.float32)

    # Selection matrix: dilated lane n*1024 + 128*h3 + 4*w3  ->  compact lane n*128 + 5*h3 + w3
    src, dst = [], []
    for n in range(batch):
        for h3 in range(5):
            for w3 in range(5):
                src.append(n * _IMG + 4 * _W * h3 + 4 * w3)
                dst.append(n * 128 + 5 * h3 + w3)
    sel = jnp.zeros((batch * _IMG, batch * 128), jnp.float32)
    sel = sel.at[jnp.array(src), jnp.array(dst)].set(1.0).astype(jnp.bfloat16)

    def fc1_mat(w):                           # torch fc1 weight (120, 400), in = c*25 + s
        wt = w.T.reshape(16, 25, 120)
        wt = jnp.pad(wt, ((0, 0), (0, 128 - 25), (0, 128 - 120)))        # (16, 128, 128)
        return wt.reshape(16 * 128, 128).astype(jnp.bfloat16)            # row = c*128 + s

    def fc_mat(w, rp, cp):
        wt = w.T
        return jnp.pad(wt, ((0, rp - wt.shape[0]), (0, cp - wt.shape[1]))).astype(jnp.bfloat16)

    def fc_bias(b, npad):
        return jnp.pad(b, (0, npad - b.shape[0])).reshape(1, npad).astype(jnp.float32)

    return {
        "w1m": conv_mat(params["conv1_w"], 8),
        "b1": conv_bias(params["conv1_b"], 8),
        "w2m": conv_mat(params["conv2_w"], 16),
        "b2": conv_bias(params["conv2_b"], 16),
        "sel": sel,
        "w1p": fc1_mat(params["fc1_w"]),
        "b1p": fc_bias(params["fc1_b"], 128),
        "w2p": fc_mat(params["fc2_w"], 128, 128),
        "b2p": fc_bias(params["fc2_b"], 128),
        "w3p": fc_mat(params["fc3_w"], 128, 128),
        "b3p": fc_bias(params["fc3_b"], 128),
    }


# ------------------------------ Reference model ------------------------------ #

def reference_forward(params, x):
    """Pure-JAX f32 reference for a numerical sanity check."""
    def conv(x, w, b):
        y = jax.lax.conv_general_dilated(
            x, w, (1, 1), "VALID", dimension_numbers=("NCHW", "OIHW", "NCHW"))
        return jax.nn.relu(y + b[None, :, None, None])

    def pool(x):
        n, c, h, w = x.shape
        return x.reshape(n, c, h // 2, 2, w // 2, 2).max(axis=(3, 5))

    x = pool(conv(x, params["conv1_w"], params["conv1_b"]))
    x = pool(conv(x, params["conv2_w"], params["conv2_b"]))
    x = x.reshape(x.shape[0], -1)
    x = jax.nn.relu(x @ params["fc1_w"].T + params["fc1_b"])
    x = jax.nn.relu(x @ params["fc2_w"].T + params["fc2_b"])
    return x @ params["fc3_w"].T + params["fc3_b"]


def init_params(key):
    """Deterministic, PyTorch-shaped parameters (uniform(-1/sqrt(fan_in), +))."""
    def u(k, shape, fan_in):
        bound = 1.0 / jnp.sqrt(fan_in)
        return jax.random.uniform(k, shape, jnp.float32, -bound, bound)

    ks = jax.random.split(key, 10)
    return {
        "conv1_w": u(ks[0], (6, 3, 5, 5), 3 * 5 * 5),
        "conv1_b": u(ks[1], (6,), 3 * 5 * 5),
        "conv2_w": u(ks[2], (16, 6, 5, 5), 6 * 5 * 5),
        "conv2_b": u(ks[3], (16,), 6 * 5 * 5),
        "fc1_w": u(ks[4], (120, 400), 400),
        "fc1_b": u(ks[5], (120,), 400),
        "fc2_w": u(ks[6], (84, 120), 120),
        "fc2_b": u(ks[7], (84,), 120),
        "fc3_w": u(ks[8], (10, 84), 84),
        "fc3_b": u(ks[9], (10,), 84),
    }


if __name__ == "__main__":
    key = jax.random.PRNGKey(0)
    k_param, k_x = jax.random.split(key)
    params = init_params(k_param)
    x = jax.random.normal(k_x, (2, 3, 32, 32), jnp.float32)

    prep = prepare_params(params, batch=x.shape[0])   # one-time weight prep (not hot path)
    fwd = jax.jit(cnn_forward)
    out = jax.block_until_ready(fwd(prep, x))
    assert out.shape == (2, 10) and out.dtype == jnp.float32

    ref = jax.block_until_ready(jax.jit(reference_forward)(params, x))
    assert jnp.allclose(out, ref, rtol=5e-2, atol=5e-2), (out, ref)

    print("KERNEL_OK")
</pallas_src>

<mosaic_0001>
module attributes {stable_mosaic.version = 11 : i64} {
  func.func @_cnn_kernel(%arg0: memref<8x2048xf32, #tpu.memory_space<vmem>>, %arg1: memref<8x208xbf16, #tpu.memory_space<vmem>>, %arg2: memref<8x1xf32, #tpu.memory_space<vmem>>, %arg3: memref<16x208xbf16, #tpu.memory_space<vmem>>, %arg4: memref<16x1xf32, #tpu.memory_space<vmem>>, %arg5: memref<2048x256xbf16, #tpu.memory_space<vmem>>, %arg6: memref<2048x128xbf16, #tpu.memory_space<vmem>>, %arg7: memref<1x128xf32, #tpu.memory_space<vmem>>, %arg8: memref<128x128xbf16, #tpu.memory_space<vmem>>, %arg9: memref<1x128xf32, #tpu.memory_space<vmem>>, %arg10: memref<128x128xbf16, #tpu.memory_space<vmem>>, %arg11: memref<1x128xf32, #tpu.memory_space<vmem>>, %arg12: memref<2x128xf32, #tpu.memory_space<vmem>>, %arg13: memref<208x2048xbf16, #tpu.memory_space<vmem>>) attributes {dimension_semantics = [], scalar_prefetch = 0 : i64, scratch_operands = 1 : i64, tpu.core_type = #tpu.core_type<tc>} {
    %c0 = arith.constant 0 : index
    %c0_0 = arith.constant 0 : index
    %0 = vector.load %arg0[%c0, %c0_0] : memref<8x2048xf32, #tpu.memory_space<vmem>>, vector<8x2048xf32>
    %cst = arith.constant 0.000000e+00 : f32
    %1 = vector.broadcast %cst : f32 to vector<8x384xf32>
    %2 = tpu.concatenate %0, %1 in 1 : vector<8x2048xf32>, vector<8x384xf32> -> vector<8x2432xf32>
    %cst_1 = arith.constant 0.000000e+00 : f32
    %3 = vector.broadcast %cst_1 : f32 to vector<8x2048xf32>
    %4 = vector.extract_strided_slice %2 {offsets = [0, 0], sizes = [8, 2048], strides = [1, 1]} : vector<8x2432xf32> to vector<8x2048xf32>
    %5 = vector.extract_strided_slice %2 {offsets = [0, 1], sizes = [8, 2048], strides = [1, 1]} : vector<8x2432xf32> to vector<8x2048xf32>
    %6 = tpu.concatenate %4, %5 in 0 : vector<8x2048xf32>, vector<8x2048xf32> -> vector<16x2048xf32>
    %7 = arith.truncf %6 : vector<16x2048xf32> to vector<16x2048xbf16>
    %c0_2 = arith.constant 0 : index
    %c0_3 = arith.constant 0 : index
    %8 = vector.load %arg13[%c0_2, %c0_3] : memref<208x2048xbf16, #tpu.memory_space<vmem>>, vector<16x2048xbf16>
    tpu.vector_store %arg13[%c0_2, %c0_3], %7 {strides = array<i32>} : memref<208x2048xbf16, #tpu.memory_space<vmem>>, vector<16x2048xbf16>,
    %9 = vector.extract_strided_slice %2 {offsets = [0, 2], sizes = [8, 2048], strides = [1, 1]} : vector<8x2432xf32> to vector<8x2048xf32>
    %10 = vector.extract_strided_slice %2 {offsets = [0, 3], sizes = [8, 2048], strides = [1, 1]} : vector<8x2432xf32> to vector<8x2048xf32>
    %11 = tpu.concatenate %9, %10 in 0 : vector<8x2048xf32>, vector<8x2048xf32> -> vector<16x2048xf32>
    %12 = arith.truncf %11 : vector<16x2048xf32> to vector<16x2048xbf16>
    %c16 = arith.constant 16 : index
    %c0_4 = arith.constant 0 : index
    %13 = vector.load %arg13[%c16, %c0_4] : memref<208x2048xbf16, #tpu.memory_space<vmem>>, vector<16x2048xbf16>
    tpu.vector_store %arg13[%c16, %c0_4], %12 {strides = array<i32>} : memref<208x2048xbf16, #tpu.memory_space<vmem>>, vector<16x2048xbf16>,
    %14 = vector.extract_strided_slice %2 {offsets = [0, 4], sizes = [8, 2048], strides = [1, 1]} : vector<8x2432xf32> to vector<8x2048xf32>
    %15 = vector.extract_strided_slice %2 {offsets = [0, 32], sizes = [8, 2048], strides = [1, 1]} : vector<8x2432xf32> to vector<8x2048xf32>
    %16 = tpu.concatenate %14, %15 in 0 : vector<8x2048xf32>, vector<8x2048xf32> -> vector<16x2048xf32>
    %17 = arith.truncf %16 : vector<16x2048xf32> to vector<16x2048xbf16>
    %c32 = arith.constant 32 : index
    %c0_5 = arith.constant 0 : index
    %18 = vector.load %arg13[%c32, %c0_5] : memref<208x2048xbf16, #tpu.memory_space<vmem>>, vector<16x2048xbf16>
    tpu.vector_store %arg13[%c32, %c0_5], %17 {strides = array<i32>} : memref<208x2048xbf16, #tpu.memory_space<vmem>>, vector<16x2048xbf16>,
    %19 = vector.extract_strided_slice %2 {offsets = [0, 33], sizes = [8, 2048], strides = [1, 1]} : vector<8x2432xf32> to vector<8x2048xf32>
    %20 = vector.extract_strided_slice %2 {offsets = [0, 34], sizes = [8, 2048], strides = [1, 1]} : vector<8x2432xf32> to vector<8x2048xf32>
    %21 = tpu.concatenate %19, %20 in 0 : vector<8x2048xf32>, vector<8x2048xf32> -> vector<16x2048xf32>
    %22 = arith.truncf %21 : vector<16x2048xf32> to vector<16x2048xbf16>
    %c48 = arith.constant 48 : index
    %c0_6 = arith.constant 0 : index
    %23 = vector.load %arg13[%c48, %c0_6] : memref<208x2048xbf16, #tpu.memory_space<vmem>>, vector<16x2048xbf16>
    tpu.vector_store %arg13[%c48, %c0_6], %22 {strides = array<i32>} : memref<208x2048xbf16, #tpu.memory_space<vmem>>, vector<16x2048xbf16>,
    %24 = vector.extract_strided_slice %2 {offsets = [0, 35], sizes = [8, 2048], strides = [1, 1]} : vector<8x2432xf32> to vector<8x2048xf32>
    %25 = vector.extract_strided_slice %2 {offsets = [0, 36], sizes = [8, 2048], strides = [1, 1]} : vector<8x2432xf32> to vector<8x2048xf32>
    %26 = tpu.concatenate %24, %25 in 0 : vector<8x2048xf32>, vector<8x2048xf32> -> vector<16x2048xf32>
    %27 = arith.truncf %26 : vector<16x2048xf32> to vector<16x2048xbf16>
    %c64 = arith.constant 64 : index
    %c0_7 = arith.constant 0 : index
    %28 = vector.load %arg13[%c64, %c0_7] : memref<208x2048xbf16, #tpu.memory_space<vmem>>, vector<16x2048xbf16>
    tpu.vector_store %arg13[%c64, %c0_7], %27 {strides = array<i32>} : memref<208x2048xbf16, #tpu.memory_space<vmem>>, vector<16x2048xbf16>,
    %29 = vector.extract_strided_slice %2 {offsets = [0, 64], sizes = [8, 2048], strides = [1, 1]} : vector<8x2432xf32> to vector<8x2048xf32>
    %30 = vector.extract_strided_slice %2 {offsets = [0, 65], sizes = [8, 2048], strides = [1, 1]} : vector<8x2432xf32> to vector<8x2048xf32>
    %31 = tpu.concatenate %29, %30 in 0 : vector<8x2048xf32>, vector<8x2048xf32> -> vector<16x2048xf32>
    %32 = arith.truncf %31 : vector<16x2048xf32> to vector<16x2048xbf16>
    %c80 = arith.constant 80 : index
    %c0_8 = arith.constant 0 : index
    %33 = vector.load %arg13[%c80, %c0_8] : memref<208x2048xbf16, #tpu.memory_space<vmem>>, vector<16x2048xbf16>
    tpu.vector_store %arg13[%c80, %c0_8], %32 {strides = array<i32>} : memref<208x2048xbf16, #tpu.memory_space<vmem>>, vector<16x2048xbf16>,
    %34 = vector.extract_strided_slice %2 {offsets = [0, 66], sizes = [8, 2048], strides = [1, 1]} : vector<8x2432xf32> to vector<8x2048xf32>
    %35 = vector.extract_strided_slice %2 {offsets = [0, 67], sizes = [8, 2048], strides = [1, 1]} : vector<8x2432xf32> to vector<8x2048xf32>
    %36 = tpu.concatenate %34, %35 in 0 : vector<8x2048xf32>, vector<8x2048xf32> -> vector<16x2048xf32>
    %37 = arith.truncf %36 : vector<16x2048xf32> to vector<16x2048xbf16>
    %c96 = arith.constant 96 : index
    %c0_9 = arith.constant 0 : index
    %38 = vector.load %arg13[%c96, %c0_9] : memref<208x2048xbf16, #tpu.memory_space<vmem>>, vector<16x2048xbf16>
    tpu.vector_store %arg13[%c96, %c0_9], %37 {strides = array<i32>} : memref<208x2048xbf16, #tpu.memory_space<vmem>>, vector<16x2048xbf16>,
    %39 = vector.extract_strided_slice %2 {offsets = [0, 68], sizes = [8, 2048], strides = [1, 1]} : vector<8x2432xf32> to vector<8x2048xf32>
    %40 = vector.extract_strided_slice %2 {offsets = [0, 96], sizes = [8, 2048], strides = [1, 1]} : vector<8x2432xf32> to vector<8x2048xf32>
    %41 = tpu.concatenate %39, %40 in 0 : vector<8x2048xf32>, vector<8x2048xf32> -> vector<16x2048xf32>
    %42 = arith.truncf %41 : vector<16x2048xf32> to vector<16x2048xbf16>
    %c112 = arith.constant 112 : index
    %c0_10 = arith.constant 0 : index
    %43 = vector.load %arg13[%c112, %c0_10] : memref<208x2048xbf16, #tpu.memory_space<vmem>>, vector<16x2048xbf16>
    tpu.vector_store %arg13[%c112, %c0_10], %42 {strides = array<i32>} : memref<208x2048xbf16, #tpu.memory_space<vmem>>, vector<16x2048xbf16>,
    %44 = vector.extract_strided_slice %2 {offsets = [0, 97], sizes = [8, 2048], strides = [1, 1]} : vector<8x2432xf32> to vector<8x2048xf32>
    %45 = vector.extract_strided_slice %2 {offsets = [0, 98], sizes = [8, 2048], strides = [1, 1]} : vector<8x2432xf32> to vector<8x2048xf32>
    %46 = tpu.concatenate %44, %45 in 0 : vector<8x2048xf32>, vector<8x2048xf32> -> vector<16x2048xf32>
    %47 = arith.truncf %46 : vector<16x2048xf32> to vector<16x2048xbf16>
    %c128 = arith.constant 128 : index
    %c0_11 = arith.constant 0 : index
    %48 = vector.load %arg13[%c128, %c0_11] : memref<208x2048xbf16, #tpu.memory_space<vmem>>, vector<16x2048xbf16>
    tpu.vector_store %arg13[%c128, %c0_11], %47 {strides = array<i32>} : memref<208x2048xbf16, #tpu.memory_space<vmem>>, vector<16x2048xbf16>,
    %49 = vector.extract_strided_slice %2 {offsets = [0, 99], sizes = [8, 2048], strides = [1, 1]} : vector<8x2432xf32> to vector<8x2048xf32>
    %50 = vector.extract_strided_slice %2 {offsets = [0, 100], sizes = [8, 2048], strides = [1, 1]} : vector<8x2432xf32> to vector<8x2048xf32>
    %51 = tpu.concatenate %49, %50 in 0 : vector<8x2048xf32>, vector<8x2048xf32> -> vector<16x2048xf32>
    %52 = arith.truncf %51 : vector<16x2048xf32> to vector<16x2048xbf16>
    %c144 = arith.constant 144 : index
    %c0_12 = arith.constant 0 : index
    %53 = vector.load %arg13[%c144, %c0_12] : memref<208x2048xbf16, #tpu.memory_space<vmem>>, vector<16x2048xbf16>
    tpu.vector_store %arg13[%c144, %c0_12], %52 {strides = array<i32>} : memref<208x2048xbf16, #tpu.memory_space<vmem>>, vector<16x2048xbf16>,
    %54 = vector.extract_strided_slice %2 {offsets = [0, 128], sizes = [8, 2048], strides = [1, 1]} : vector<8x2432xf32> to vector<8x2048xf32>
    %55 = vector.extract_strided_slice %2 {offsets = [0, 129], sizes = [8, 2048], strides = [1, 1]} : vector<8x2432xf32> to vector<8x2048xf32>
    %56 = tpu.concatenate %54, %55 in 0 : vector<8x2048xf32>, vector<8x2048xf32> -> vector<16x2048xf32>
    %57 = arith.truncf %56 : vector<16x2048xf32> to vector<16x2048xbf16>
    %c160 = arith.constant 160 : index
    %c0_13 = arith.constant 0 : index
    %58 = vector.load %arg13[%c160, %c0_13] : memref<208x2048xbf16, #tpu.memory_space<vmem>>, vector<16x2048xbf16>
    tpu.vector_store %arg13[%c160, %c0_13], %57 {strides = array<i32>} : memref<208x2048xbf16, #tpu.memory_space<vmem>>, vector<16x2048xbf16>,
    %59 = vector.extract_strided_slice %2 {offsets = [0, 130], sizes = [8, 2048], strides = [1, 1]} : vector<8x2432xf32> to vector<8x2048xf32>
    %60 = vector.extract_strided_slice %2 {offsets = [0, 131], sizes = [8, 2048], strides = [1, 1]} : vector<8x2432xf32> to vector<8x2048xf32>
    %61 = tpu.concatenate %59, %60 in 0 : vector<8x2048xf32>, vector<8x2048xf32> -> vector<16x2048xf32>
    %62 = arith.truncf %61 : vector<16x2048xf32> to vector<16x2048xbf16>
    %c176 = arith.constant 176 : index
    %c0_14 = arith.constant 0 : index
    %63 = vector.load %arg13[%c176, %c0_14] : memref<208x2048xbf16, #tpu.memory_space<vmem>>, vector<16x2048xbf16>
    tpu.vector_store %arg13[%c176, %c0_14], %62 {strides = array<i32>} : memref<208x2048xbf16, #tpu.memory_space<vmem>>, vector<16x2048xbf16>,
    %64 = vector.extract_strided_slice %2 {offsets = [0, 132], sizes = [8, 2048], strides = [1, 1]} : vector<8x2432xf32> to vector<8x2048xf32>
    %65 = tpu.concatenate %64, %3 in 0 : vector<8x2048xf32>, vector<8x2048xf32> -> vector<16x2048xf32>
    %66 = arith.truncf %65 : vector<16x2048xf32> to vector<16x2048xbf16>
    %c192 = arith.constant 192 : index
    %c0_15 = arith.constant 0 : index
    %67 = vector.load %arg13[%c192, %c0_15] : memref<208x2048xbf16, #tpu.memory_space<vmem>>, vector<16x2048xbf16>
    tpu.vector_store %arg13[%c192, %c0_15], %66 {strides = array<i32>} : memref<208x2048xbf16, #tpu.memory_space<vmem>>, vector<16x2048xbf16>,
    %c0_16 = arith.constant 0 : index
    %c0_17 = arith.constant 0 : index
    %68 = vector.load %arg1[%c0_16, %c0_17] : memref<8x208xbf16, #tpu.memory_space<vmem>>, vector<8x208xbf16>
    %c0_18 = arith.constant 0 : index
    %c0_19 = arith.constant 0 : index
    %69 = vector.load %arg13[%c0_18, %c0_19] : memref<208x2048xbf16, #tpu.memory_space<vmem>>, vector<208x2048xbf16>
    %cst_20 = arith.constant dense<0.000000e+00> : vector<8x2048xf32>
    %70 = tpu.matmul %68, %69, %cst_20 {dimension_numbers = #tpu.dot_dimension_numbers<[1], [0], [0], [1], [0, 0, 1, 1], [], []>} : vector<8x208xbf16>, vector<208x2048xbf16>, vector<8x2048xf32> -> vector<8x2048xf32>
    %c0_21 = arith.constant 0 : index
    %c0_22 = arith.constant 0 : index
    %71 = vector.load %arg2[%c0_21, %c0_22] : memref<8x1xf32, #tpu.memory_space<vmem>>, vector<8x1xf32>
    %72 = vector.broadcast %71 : vector<8x1xf32> to vector<8x2048xf32>
    %73 = arith.addf %70, %72 : vector<8x2048xf32>
    %cst_23 = arith.constant 0.000000e+00 : f32
    %74 = vector.broadcast %cst_23 : f32 to vector<8x2048xf32>
    %75 = arith.maximumf %73, %74 : vector<8x2048xf32>
    %cst_24 = arith.constant 0.000000e+00 : f32
    %76 = vector.broadcast %cst_24 : f32 to vector<8x384xf32>
    %77 = tpu.concatenate %75, %76 in 1 : vector<8x2048xf32>, vector<8x384xf32> -> vector<8x2432xf32>
    %78 = vector.extract_strided_slice %77 {offsets = [0, 1], sizes = [8, 2048], strides = [1, 1]} : vector<8x2432xf32> to vector<8x2048xf32>
    %79 = arith.maximumf %75, %78 : vector<8x2048xf32>
    %80 = vector.extract_strided_slice %77 {offsets = [0, 32], sizes = [8, 2048], strides = [1, 1]} : vector<8x2432xf32> to vector<8x2048xf32>
    %81 = arith.maximumf %79, %80 : vector<8x2048xf32>
    %82 = vector.extract_strided_slice %77 {offsets = [0, 33], sizes = [8, 2048], strides = [1, 1]} : vector<8x2432xf32> to vector<8x2048xf32>
    %83 = arith.maximumf %81, %82 : vector<8x2048xf32>
    %cst_25 = arith.constant 0.000000e+00 : f32
    %84 = vector.broadcast %cst_25 : f32 to vector<8x384xf32>
    %85 = tpu.concatenate %83, %84 in 1 : vector<8x2048xf32>, vector<8x384xf32> -> vector<8x2432xf32>
    %cst_26 = arith.constant 0.000000e+00 : f32
    %86 = vector.broadcast %cst_26 : f32 to vector<8x2048xf32>
    %87 = vector.extract_strided_slice %85 {offsets = [0, 0], sizes = [8, 2048], strides = [1, 1]} : vector<8x2432xf32> to vector<8x2048xf32>
    %88 = vector.extract_strided_slice %85 {offsets = [0, 2], sizes = [8, 2048], strides = [1, 1]} : vector<8x2432xf32> to vector<8x2048xf32>
    %89 = tpu.concatenate %87, %88 in 0 : vector<8x2048xf32>, vector<8x2048xf32> -> vector<16x2048xf32>
    %90 = arith.truncf %89 : vector<16x2048xf32> to vector<16x2048xbf16>
    %c0_27 = arith.constant 0 : index
    %c0_28 = arith.constant 0 : index
    %91 = vector.load %arg13[%c0_27, %c0_28] : memref<208x2048xbf16, #tpu.memory_space<vmem>>, vector<16x2048xbf16>
    tpu.vector_store %arg13[%c0_27, %c0_28], %90 {strides = array<i32>} : memref<208x2048xbf16, #tpu.memory_space<vmem>>, vector<16x2048xbf16>,
    %92 = vector.extract_strided_slice %85 {offsets = [0, 4], sizes = [8, 2048], strides = [1, 1]} : vector<8x2432xf32> to vector<8x2048xf32>
    %93 = vector.extract_strided_slice %85 {offsets = [0, 6], sizes = [8, 2048], strides = [1, 1]} : vector<8x2432xf32> to vector<8x2048xf32>
    %94 = tpu.concatenate %92, %93 in 0 : vector<8x2048xf32>, vector<8x2048xf32> -> vector<16x2048xf32>
    %95 = arith.truncf %94 : vector<16x2048xf32> to vector<16x2048xbf16>
    %c16_29 = arith.constant 16 : index
    %c0_30 = arith.constant 0 : index
    %96 = vector.load %arg13[%c16_29, %c0_30] : memref<208x2048xbf16, #tpu.memory_space<vmem>>, vector<16x2048xbf16>
    tpu.vector_store %arg13[%c16_29, %c0_30], %95 {strides = array<i32>} : memref<208x2048xbf16, #tpu.memory_space<vmem>>, vector<16x2048xbf16>,
    %97 = vector.extract_strided_slice %85 {offsets = [0, 8], sizes = [8, 2048], strides = [1, 1]} : vector<8x2432xf32> to vector<8x2048xf32>
    %98 = vector.extract_strided_slice %85 {offsets = [0, 64], sizes = [8, 2048], strides = [1, 1]} : vector<8x2432xf32> to vector<8x2048xf32>
    %99 = tpu.concatenate %97, %98 in 0 : vector<8x2048xf32>, vector<8x2048xf32> -> vector<16x2048xf32>
    %100 = arith.truncf %99 : vector<16x2048xf32> to vector<16x2048xbf16>
    %c32_31 = arith.constant 32 : index
    %c0_32 = arith.constant 0 : index
    %101 = vector.load %arg13[%c32_31, %c0_32] : memref<208x2048xbf16, #tpu.memory_space<vmem>>, vector<16x2048xbf16>
    tpu.vector_store %arg13[%c32_31, %c0_32], %100 {strides = array<i32>} : memref<208x2048xbf16, #tpu.memory_space<vmem>>, vector<16x2048xbf16>,
    %102 = vector.extract_strided_slice %85 {offsets = [0, 66], sizes = [8, 2048], strides = [1, 1]} : vector<8x2432xf32> to vector<8x2048xf32>
    %103 = vector.extract_strided_slice %85 {offsets = [0, 68], sizes = [8, 2048], strides = [1, 1]} : vector<8x2432xf32> to vector<8x2048xf32>
    %104 = tpu.concatenate %102, %103 in 0 : vector<8x2048xf32>, vector<8x2048xf32> -> vector<16x2048xf32>
    %105 = arith.truncf %104 : vector<16x2048xf32> to vector<16x2048xbf16>
    %c48_33 = arith.constant 48 : index
    %c0_34 = arith.constant 0 : index
    %106 = vector.load %arg13[%c48_33, %c0_34] : memref<208x2048xbf16, #tpu.memory_space<vmem>>, vector<16x2048xbf16>
    tpu.vector_store %arg13[%c48_33, %c0_34], %105 {strides = array<i32>} : memref<208x2048xbf16, #tpu.memory_space<vmem>>, vector<16x2048xbf16>,
    %107 = vector.extract_strided_slice %85 {offsets = [0, 70], sizes = [8, 2048], strides = [1, 1]} : vector<8x2432xf32> to vector<8x2048xf32>
    %108 = vector.extract_strided_slice %85 {offsets = [0, 72], sizes = [8, 2048], strides = [1, 1]} : vector<8x2432xf32> to vector<8x2048xf32>
    %109 = tpu.concatenate %107, %108 in 0 : vector<8x2048xf32>, vector<8x2048xf32> -> vector<16x2048xf32>
    %110 = arith.truncf %109 : vector<16x2048xf32> to vector<16x2048xbf16>
    %c64_35 = arith.constant 64 : index
    %c0_36 = arith.constant 0 : index
    %111 = vector.load %arg13[%c64_35, %c0_36] : memref<208x2048xbf16, #tpu.memory_space<vmem>>, vector<16x2048xbf16>
    tpu.vector_store %arg13[%c64_35, %c0_36], %110 {strides = array<i32>} : memref<208x2048xbf16, #tpu.memory_space<vmem>>, vector<16x2048xbf16>,
    %112 = vector.extract_strided_slice %85 {offsets = [0, 128], sizes = [8, 2048], strides = [1, 1]} : vector<8x2432xf32> to vector<8x2048xf32>
    %113 = vector.extract_strided_slice %85 {offsets = [0, 130], sizes = [8, 2048], strides = [1, 1]} : vector<8x2432xf32> to vector<8x2048xf32>
    %114 = tpu.concatenate %112, %113 in 0 : vector<8x2048xf32>, vector<8x2048xf32> -> vector<16x2048xf32>
    %115 = arith.truncf %114 : vector<16x2048xf32> to vector<16x2048xbf16>
    %c80_37 = arith.constant 80 : index
    %c0_38 = arith.constant 0 : index
    %116 = vector.load %arg13[%c80_37, %c0_38] : memref<208x2048xbf16, #tpu.memory_space<vmem>>, vector<16x2048xbf16>
    tpu.vector_store %arg13[%c80_37, %c0_38], %115 {strides = array<i32>} : memref<208x2048xbf16, #tpu.memory_space<vmem>>, vector<16x2048xbf16>,
    %117 = vector.extract_strided_slice %85 {offsets = [0, 132], sizes = [8, 2048], strides = [1, 1]} : vector<8x2432xf32> to vector<8x2048xf32>
    %118 = vector.extract_strided_slice %85 {offsets = [0, 134], sizes = [8, 2048], strides = [1, 1]} : vector<8x2432xf32> to vector<8x2048xf32>
    %119 = tpu.concatenate %117, %118 in 0 : vector<8x2048xf32>, vector<8x2048xf32> -> vector<16x2048xf32>
    %120 = arith.truncf %119 : vector<16x2048xf32> to vector<16x2048xbf16>
    %c96_39 = arith.constant 96 : index
    %c0_40 = arith.constant 0 : index
    %121 = vector.load %arg13[%c96_39, %c0_40] : memref<208x2048xbf16, #tpu.memory_space<vmem>>, vector<16x2048xbf16>
    tpu.vector_store %arg13[%c96_39, %c0_40], %120 {strides = array<i32>} : memref<208x2048xbf16, #tpu.memory_space<vmem>>, vector<16x2048xbf16>,
    %122 = vector.extract_strided_slice %85 {offsets = [0, 136], sizes = [8, 2048], strides = [1, 1]} : vector<8x2432xf32> to vector<8x2048xf32>
    %123 = vector.extract_strided_slice %85 {offsets = [0, 192], sizes = [8, 2048], strides = [1, 1]} : vector<8x2432xf32> to vector<8x2048xf32>
    %124 = tpu.concatenate %122, %123 in 0 : vector<8x2048xf32>, vector<8x2048xf32> -> vector<16x2048xf32>
    %125 = arith.truncf %124 : vector<16x2048xf32> to vector<16x2048xbf16>
    %c112_41 = arith.constant 112 : index
    %c0_42 = arith.constant 0 : index
    %126 = vector.load %arg13[%c112_41, %c0_42] : memref<208x2048xbf16, #tpu.memory_space<vmem>>, vector<16x2048xbf16>
    tpu.vector_store %arg13[%c112_41, %c0_42], %125 {strides = array<i32>} : memref<208x2048xbf16, #tpu.memory_space<vmem>>, vector<16x2048xbf16>,
    %127 = vector.extract_strided_slice %85 {offsets = [0, 194], sizes = [8, 2048], strides = [1, 1]} : vector<8x2432xf32> to vector<8x2048xf32>
    %128 = vector.extract_strided_slice %85 {offsets = [0, 196], sizes = [8, 2048], strides = [1, 1]} : vector<8x2432xf32> to vector<8x2048xf32>
    %129 = tpu.concatenate %127, %128 in 0 : vector<8x2048xf32>, vector<8x2048xf32> -> vector<16x2048xf32>
    %130 = arith.truncf %129 : vector<16x2048xf32> to vector<16x2048xbf16>
    %c128_43 = arith.constant 128 : index
    %c0_44 = arith.constant 0 : index
    %131 = vector.load %arg13[%c128_43, %c0_44] : memref<208x2048xbf16, #tpu.memory_space<vmem>>, vector<16x2048xbf16>
    tpu.vector_store %arg13[%c128_43, %c0_44], %130 {strides = array<i32>} : memref<208x2048xbf16, #tpu.memory_space<vmem>>, vector<16x2048xbf16>,
    %132 = vector.extract_strided_slice %85 {offsets = [0, 198], sizes = [8, 2048], strides = [1, 1]} : vector<8x2432xf32> to vector<8x2048xf32>
    %133 = vector.extract_strided_slice %85 {offsets = [0, 200], sizes = [8, 2048], strides = [1, 1]} : vector<8x2432xf32> to vector<8x2048xf32>
    %134 = tpu.concatenate %132, %133 in 0 : vector<8x2048xf32>, vector<8x2048xf32> -> vector<16x2048xf32>
    %135 = arith.truncf %134 : vector<16x2048xf32> to vector<16x2048xbf16>
    %c144_45 = arith.constant 144 : index
    %c0_46 = arith.constant 0 : index
    %136 = vector.load %arg13[%c144_45, %c0_46] : memref<208x2048xbf16, #tpu.memory_space<vmem>>, vector<16x2048xbf16>
    tpu.vector_store %arg13[%c144_45, %c0_46], %135 {strides = array<i32>} : memref<208x2048xbf16, #tpu.memory_space<vmem>>, vector<16x2048xbf16>,
    %137 = vector.extract_strided_slice %85 {offsets = [0, 256], sizes = [8, 2048], strides = [1, 1]} : vector<8x2432xf32> to vector<8x2048xf32>
    %138 = vector.extract_strided_slice %85 {offsets = [0, 258], sizes = [8, 2048], strides = [1, 1]} : vector<8x2432xf32> to vector<8x2048xf32>
    %139 = tpu.concatenate %137, %138 in 0 : vector<8x2048xf32>, vector<8x2048xf32> -> vector<16x2048xf32>
    %140 = arith.truncf %139 : vector<16x2048xf32> to vector<16x2048xbf16>
    %c160_47 = arith.constant 160 : index
    %c0_48 = arith.constant 0 : index
    %141 = vector.load %arg13[%c160_47, %c0_48] : memref<208x2048xbf16, #tpu.memory_space<vmem>>, vector<16x2048xbf16>
    tpu.vector_store %arg13[%c160_47, %c0_48], %140 {strides = array<i32>} : memref<208x2048xbf16, #tpu.memory_space<vmem>>, vector<16x2048xbf16>,
    %142 = vector.extract_strided_slice %85 {offsets = [0, 260], sizes = [8, 2048], strides = [1, 1]} : vector<8x2432xf32> to vector<8x2048xf32>
    %143 = vector.extract_strided_slice %85 {offsets = [0, 262], sizes = [8, 2048], strides = [1, 1]} : vector<8x2432xf32> to vector<8x2048xf32>
    %144 = tpu.concatenate %142, %143 in 0 : vector<8x2048xf32>, vector<8x2048xf32> -> vector<16x2048xf32>
    %145 = arith.truncf %144 : vector<16x2048xf32> to vector<16x2048xbf16>
    %c176_49 = arith.constant 176 : index
    %c0_50 = arith.constant 0 : index
    %146 = vector.load %arg13[%c176_49, %c0_50] : memref<208x2048xbf16, #tpu.memory_space<vmem>>, vector<16x2048xbf16>
    tpu.vector_store %arg13[%c176_49, %c0_50], %145 {strides = array<i32>} : memref<208x2048xbf16, #tpu.memory_space<vmem>>, vector<16x2048xbf16>,
    %147 = vector.extract_strided_slice %85 {offsets = [0, 264], sizes = [8, 2048], strides = [1, 1]} : vector<8x2432xf32> to vector<8x2048xf32>
    %148 = tpu.concatenate %147, %86 in 0 : vector<8x2048xf32>, vector<8x2048xf32> -> vector<16x2048xf32>
    %149 = arith.truncf %148 : vector<16x2048xf32> to vector<16x2048xbf16>
    %c192_51 = arith.constant 192 : index
    %c0_52 = arith.constant 0 : index
    %150 = vector.load %arg13[%c192_51, %c0_52] : memref<208x2048xbf16, #tpu.memory_space<vmem>>, vector<16x2048xbf16>
    tpu.vector_store %arg13[%c192_51, %c0_52], %149 {strides = array<i32>} : memref<208x2048xbf16, #tpu.memory_space<vmem>>, vector<16x2048xbf16>,
    %c0_53 = arith.constant 0 : index
    %c0_54 = arith.constant 0 : index
    %151 = vector.load %arg3[%c0_53, %c0_54] : memref<16x208xbf16, #tpu.memory_space<vmem>>, vector<16x208xbf16>
    %c0_55 = arith.constant 0 : index
    %c0_56 = arith.constant 0 : index
    %152 = vector.load %arg13[%c0_55, %c0_56] : memref<208x2048xbf16, #tpu.memory_space<vmem>>, vector<208x2048xbf16>
    %cst_57 = arith.constant dense<0.000000e+00> : vector<16x2048xf32>
    %153 = tpu.matmul %151, %152, %cst_57 {dimension_numbers = #tpu.dot_dimension_numbers<[1], [0], [0], [1], [0, 0, 1, 1], [], []>} : vector<16x208xbf16>, vector<208x2048xbf16>, vector<16x2048xf32> -> vector<16x2048xf32>
    %c0_58 = arith.constant 0 : index
    %c0_59 = arith.constant 0 : index
    %154 = vector.load %arg4[%c0_58, %c0_59] : memref<16x1xf32, #tpu.memory_space<vmem>>, vector<16x1xf32>
    %155 = vector.broadcast %154 : vector<16x1xf32> to vector<16x2048xf32>
    %156 = arith.addf %153, %155 : vector<16x2048xf32>
    %cst_60 = arith.constant 0.000000e+00 : f32
    %157 = vector.broadcast %cst_60 : f32 to vector<16x2048xf32>
    %158 = arith.maximumf %156, %157 : vector<16x2048xf32>
    %cst_61 = arith.constant 0.000000e+00 : f32
    %159 = vector.broadcast %cst_61 : f32 to vector<16x384xf32>
    %160 = tpu.concatenate %158, %159 in 1 : vector<16x2048xf32>, vector<16x384xf32> -> vector<16x2432xf32>
    %161 = vector.extract_strided_slice %160 {offsets = [0, 2], sizes = [16, 2048], strides = [1, 1]} : vector<16x2432xf32> to vector<16x2048xf32>
    %162 = arith.maximumf %158, %161 : vector<16x2048xf32>
    %163 = vector.extract_strided_slice %160 {offsets = [0, 64], sizes = [16, 2048], strides = [1, 1]} : vector<16x2432xf32> to vector<16x2048xf32>
    %164 = arith.maximumf %162, %163 : vector<16x2048xf32>
    %165 = vector.extract_strided_slice %160 {offsets = [0, 66], sizes = [16, 2048], strides = [1, 1]} : vector<16x2432xf32> to vector<16x2048xf32>
    %166 = arith.maximumf %164, %165 : vector<16x2048xf32>
    %167 = arith.truncf %166 : vector<16x2048xf32> to vector<16x2048xbf16>
    %c0_62 = arith.constant 0 : index
    %c0_63 = arith.constant 0 : index
    %168 = vector.load %arg5[%c0_62, %c0_63] : memref<2048x256xbf16, #tpu.memory_space<vmem>>, vector<2048x256xbf16>
    %cst_64 = arith.constant dense<0.000000e+00> : vector<16x256xf32>
    %169 = tpu.matmul %167, %168, %cst_64 {dimension_numbers = #tpu.dot_dimension_numbers<[1], [0], [0], [1], [0, 0, 1, 1], [], []>} : vector<16x2048xbf16>, vector<2048x256xbf16>, vector<16x256xf32> -> vector<16x256xf32>
    %170 = vector.extract_strided_slice %169 {offsets = [0, 0], sizes = [16, 128], strides = [1, 1]} : vector<16x256xf32> to vector<16x128xf32>
    %171 = vector.extract_strided_slice %170 {offsets = [0, 0], sizes = [1, 128], strides = [1, 1]} : vector<16x128xf32> to vector<1x128xf32>
    %172 = vector.extract_strided_slice %170 {offsets = [1, 0], sizes = [1, 128], strides = [1, 1]} : vector<16x128xf32> to vector<1x128xf32>
    %173 = vector.extract_strided_slice %170 {offsets = [2, 0], sizes = [1, 128], strides = [1, 1]} : vector<16x128xf32> to vector<1x128xf32>
    %174 = vector.extract_strided_slice %170 {offsets = [3, 0], sizes = [1, 128], strides = [1, 1]} : vector<16x128xf32> to vector<1x128xf32>
    %175 = vector.extract_strided_slice %170 {offsets = [4, 0], sizes = [1, 128], strides = [1, 1]} : vector<16x128xf32> to vector<1x128xf32>
    %176 = vector.extract_strided_slice %170 {offsets = [5, 0], sizes = [1, 128], strides = [1, 1]} : vector<16x128xf32> to vector<1x128xf32>
    %177 = vector.extract_strided_slice %170 {offsets = [6, 0], sizes = [1, 128], strides = [1, 1]} : vector<16x128xf32> to vector<1x128xf32>
    %178 = vector.extract_strided_slice %170 {offsets = [7, 0], sizes = [1, 128], strides = [1, 1]} : vector<16x128xf32> to vector<1x128xf32>
    %179 = vector.extract_strided_slice %170 {offsets = [8, 0], sizes = [1, 128], strides = [1, 1]} : vector<16x128xf32> to vector<1x128xf32>
    %180 = vector.extract_strided_slice %170 {offsets = [9, 0], sizes = [1, 128], strides = [1, 1]} : vector<16x128xf32> to vector<1x128xf32>
    %181 = vector.extract_strided_slice %170 {offsets = [10, 0], sizes = [1, 128], strides = [1, 1]} : vector<16x128xf32> to vector<1x128xf32>
    %182 = vector.extract_strided_slice %170 {offsets = [11, 0], sizes = [1, 128], strides = [1, 1]} : vector<16x128xf32> to vector<1x128xf32>
    %183 = vector.extract_strided_slice %170 {offsets = [12, 0], sizes = [1, 128], strides = [1, 1]} : vector<16x128xf32> to vector<1x128xf32>
    %184 = vector.extract_strided_slice %170 {offsets = [13, 0], sizes = [1, 128], strides = [1, 1]} : vector<16x128xf32> to vector<1x128xf32>
    %185 = vector.extract_strided_slice %170 {offsets = [14, 0], sizes = [1, 128], strides = [1, 1]} : vector<16x128xf32> to vector<1x128xf32>
    %186 = vector.extract_strided_slice %170 {offsets = [15, 0], sizes = [1, 128], strides = [1, 1]} : vector<16x128xf32> to vector<1x128xf32>
    %187 = tpu.concatenate %171, %172, %173, %174, %175, %176, %177, %178, %179, %180, %181, %182, %183, %184, %185, %186 in 1 : vector<1x128xf32>, vector<1x128xf32>, vector<1x128xf32>, vector<1x128xf32>, vector<1x128xf32>, vector<1x128xf32>, vector<1x128xf32>, vector<1x128xf32>, vector<1x128xf32>, vector<1x128xf32>, vector<1x128xf32>, vector<1x128xf32>, vector<1x128xf32>, vector<1x128xf32>, vector<1x128xf32>, vector<1x128xf32> -> vector<1x2048xf32>
    %188 = vector.extract_strided_slice %169 {offsets = [0, 128], sizes = [16, 128], strides = [1, 1]} : vector<16x256xf32> to vector<16x128xf32>
    %189 = vector.extract_strided_slice %188 {offsets = [0, 0], sizes = [1, 128], strides = [1, 1]} : vector<16x128xf32> to vector<1x128xf32>
    %190 = vector.extract_strided_slice %188 {offsets = [1, 0], sizes = [1, 128], strides = [1, 1]} : vector<16x128xf32> to vector<1x128xf32>
    %191 = vector.extract_strided_slice %188 {offsets = [2, 0], sizes = [1, 128], strides = [1, 1]} : vector<16x128xf32> to vector<1x128xf32>
    %192 = vector.extract_strided_slice %188 {offsets = [3, 0], sizes = [1, 128], strides = [1, 1]} : vector<16x128xf32> to vector<1x128xf32>
    %193 = vector.extract_strided_slice %188 {offsets = [4, 0], sizes = [1, 128], strides = [1, 1]} : vector<16x128xf32> to vector<1x128xf32>
    %194 = vector.extract_strided_slice %188 {offsets = [5, 0], sizes = [1, 128], strides = [1, 1]} : vector<16x128xf32> to vector<1x128xf32>
    %195 = vector.extract_strided_slice %188 {offsets = [6, 0], sizes = [1, 128], strides = [1, 1]} : vector<16x128xf32> to vector<1x128xf32>
    %196 = vector.extract_strided_slice %188 {offsets = [7, 0], sizes = [1, 128], strides = [1, 1]} : vector<16x128xf32> to vector<1x128xf32>
    %197 = vector.extract_strided_slice %188 {offsets = [8, 0], sizes = [1, 128], strides = [1, 1]} : vector<16x128xf32> to vector<1x128xf32>
    %198 = vector.extract_strided_slice %188 {offsets = [9, 0], sizes = [1, 128], strides = [1, 1]} : vector<16x128xf32> to vector<1x128xf32>
    %199 = vector.extract_strided_slice %188 {offsets = [10, 0], sizes = [1, 128], strides = [1, 1]} : vector<16x128xf32> to vector<1x128xf32>
    %200 = vector.extract_strided_slice %188 {offsets = [11, 0], sizes = [1, 128], strides = [1, 1]} : vector<16x128xf32> to vector<1x128xf32>
    %201 = vector.extract_strided_slice %188 {offsets = [12, 0], sizes = [1, 128], strides = [1, 1]} : vector<16x128xf32> to vector<1x128xf32>
    %202 = vector.extract_strided_slice %188 {offsets = [13, 0], sizes = [1, 128], strides = [1, 1]} : vector<16x128xf32> to vector<1x128xf32>
    %203 = vector.extract_strided_slice %188 {offsets = [14, 0], sizes = [1, 128], strides = [1, 1]} : vector<16x128xf32> to vector<1x128xf32>
    %204 = vector.extract_strided_slice %188 {offsets = [15, 0], sizes = [1, 128], strides = [1, 1]} : vector<16x128xf32> to vector<1x128xf32>
    %205 = tpu.concatenate %189, %190, %191, %192, %193, %194, %195, %196, %197, %198, %199, %200, %201, %202, %203, %204 in 1 : vector<1x128xf32>, vector<1x128xf32>, vector<1x128xf32>, vector<1x128xf32>, vector<1x128xf32>, vector<1x128xf32>, vector<1x128xf32>, vector<1x128xf32>, vector<1x128xf32>, vector<1x128xf32>, vector<1x128xf32>, vector<1x128xf32>, vector<1x128xf32>, vector<1x128xf32>, vector<1x128xf32>, vector<1x128xf32> -> vector<1x2048xf32>
    %206 = tpu.concatenate %187, %205 in 0 : vector<1x2048xf32>, vector<1x2048xf32> -> vector<2x2048xf32>
    %207 = arith.truncf %206 : vector<2x2048xf32> to vector<2x2048xbf16>
    %c0_65 = arith.constant 0 : index
    %c0_66 = arith.constant 0 : index
    %208 = vector.load %arg6[%c0_65, %c0_66] : memref<2048x128xbf16, #tpu.memory_space<vmem>>, vector<2048x128xbf16>
    %cst_67 = arith.constant dense<0.000000e+00> : vector<2x128xf32>
    %209 = tpu.matmul %207, %208, %cst_67 {dimension_numbers = #tpu.dot_dimension_numbers<[1], [0], [0], [1], [0, 0, 1, 1], [], []>} : vector<2x2048xbf16>, vector<2048x128xbf16>, vector<2x128xf32> -> vector<2x128xf32>
    %c0_68 = arith.constant 0 : index
    %c0_69 = arith.constant 0 : index
    %210 = vector.load %arg7[%c0_68, %c0_69] : memref<1x128xf32, #tpu.memory_space<vmem>>, vector<1x128xf32>
    %211 = vector.broadcast %210 : vector<1x128xf32> to vector<2x128xf32>
    %212 = arith.addf %209, %211 : vector<2x128xf32>
    %cst_70 = arith.constant 0.000000e+00 : f32
    %213 = vector.broadcast %cst_70 : f32 to vector<2x128xf32>
    %214 = arith.maximumf %212, %213 : vector<2x128xf32>
    %215 = arith.truncf %214 : vector<2x128xf32> to vector<2x128xbf16>
    %c0_71 = arith.constant 0 : index
    %c0_72 = arith.constant 0 : index
    %216 = vector.load %arg8[%c0_71, %c0_72] : memref<128x128xbf16, #tpu.memory_space<vmem>>, vector<128x128xbf16>
    %cst_73 = arith.constant dense<0.000000e+00> : vector<2x128xf32>
    %217 = tpu.matmul %215, %216, %cst_73 {dimension_numbers = #tpu.dot_dimension_numbers<[1], [0], [0], [1], [0, 0, 1, 1], [], []>} : vector<2x128xbf16>, vector<128x128xbf16>, vector<2x128xf32> -> vector<2x128xf32>
    %c0_74 = arith.constant 0 : index
    %c0_75 = arith.constant 0 : index
    %218 = vector.load %arg9[%c0_74, %c0_75] : memref<1x128xf32, #tpu.memory_space<vmem>>, vector<1x128xf32>
    %219 = vector.broadcast %218 : vector<1x128xf32> to vector<2x128xf32>
    %220 = arith.addf %217, %219 : vector<2x128xf32>
    %cst_76 = arith.constant 0.000000e+00 : f32
    %221 = vector.broadcast %cst_76 : f32 to vector<2x128xf32>
    %222 = arith.maximumf %220, %221 : vector<2x128xf32>
    %223 = arith.truncf %222 : vector<2x128xf32> to vector<2x128xbf16>
    %c0_77 = arith.constant 0 : index
    %c0_78 = arith.constant 0 : index
    %224 = vector.load %arg10[%c0_77, %c0_78] : memref<128x128xbf16, #tpu.memory_space<vmem>>, vector<128x128xbf16>
    %cst_79 = arith.constant dense<0.000000e+00> : vector<2x128xf32>
    %225 = tpu.matmul %223, %224, %cst_79 {dimension_numbers = #tpu.dot_dimension_numbers<[1], [0], [0], [1], [0, 0, 1, 1], [], []>} : vector<2x128xbf16>, vector<128x128xbf16>, vector<2x128xf32> -> vector<2x128xf32>
    %c0_80 = arith.constant 0 : index
    %c0_81 = arith.constant 0 : index
    %226 = vector.load %arg11[%c0_80, %c0_81] : memref<1x128xf32, #tpu.memory_space<vmem>>, vector<1x128xf32>
    %227 = vector.broadcast %226 : vector<1x128xf32> to vector<2x128xf32>
    %228 = arith.addf %225, %227 : vector<2x128xf32>
    %c0_82 = arith.constant 0 : index
    %c0_83 = arith.constant 0 : index
    %229 = vector.load %arg12[%c0_82, %c0_83] : memref<2x128xf32, #tpu.memory_space<vmem>>, vector<2x128xf32>
    tpu.vector_store %arg12[%c0_82, %c0_83], %228 {strides = array<i32>} : memref<2x128xf32, #tpu.memory_space<vmem>>, vector<2x128xf32>,
    return
  }
}

</mosaic_0001>

<bundles_post_ra>
// kernel: cnn_forward.1
= control target key start
LH: loop header
LB: loop body
LE: loop exit
PB: predicated region body
PF: predicated region fallthrough
CT: control target
= control target key end

     0   :  { %17 = vsyncpa [#allocation4], 0  ;;  %s12573_s0 = inlined_call_operand.vmem [shape: f32[8,2048], index: 0, kind: input, shape index: {}]   ;;  %s12574_s1 = inlined_call_operand.vmem [shape: bf16[8,208], index: 1, kind: input, shape index: {}]   ;;  %s12575_s2 = inlined_call_operand.vmem [shape: f32[8,1], index: 2, kind: input, shape index: {}]   ;;  %s12576_s3 = inlined_call_operand.vmem [shape: bf16[16,208], index: 3, kind: input, shape index: {}]   ;;  %s12577_s4 = inlined_call_operand.vmem [shape: f32[16,1], index: 4, kind: input, shape index: {}]   ;;  %s12578_s5 = inlined_call_operand.hbm [shape: bf16[2048,256], index: 5, kind: input, shape index: {}]   ;;  %s12579_s6 = inlined_call_operand.hbm [shape: bf16[2048,128], index: 6, kind: input, shape index: {}]   ;;  %s12580_s7 = inlined_call_operand.vmem [shape: f32[1,128], index: 7, kind: input, shape index: {}]   ;;  %s12581_s8 = inlined_call_operand.vmem [shape: bf16[128,128], index: 8, kind: input, shape index: {}]   ;;  %s12582_s9 = inlined_call_operand.vmem [shape: f32[1,128], index: 9, kind: input, shape index: {}]   ;;  %s12583_s10 = inlined_call_operand.vmem [shape: bf16[128,128], index: 10, kind: input, shape index: {}]   ;;  %s12584_s11 = inlined_call_operand.vmem [shape: f32[1,128], index: 11, kind: input, shape index: {}]   ;;  %s12585_s12 = inlined_call_operand.hbm [shape: f32[2,128], index: 12, kind: output, shape index: {}]  }
   0x1   :  { %18 = vsyncpa [#allocation7], 0 }
   0x2   :  { %19 = vsyncpa [#allocation5], 0  ;;  %s9295_s21 = smov [#allocation3]   ;;  %s9223_s25 = scalar_lea.hbm %s12578_s5, 32768 }
   0x3   :  { %s35_s22 = sshll.u32 %s9295_s21, 4  ;;  %p9224_p0 = scmp.ne.s32.totalorder %s12578_s5, %s9223_s25  ;;  %s36_s22 = int_to_ptr.vmem [resolvable:$true] %s35_s22 }
   0x4   :  { %p9227_p1 = scmp.lt.u32.totalorder %s9223_s25, %s12578_s5 }
   0x6   :  { %p9229_p2 = pnand %p9227_p1, %p9224_p0 }
   0x8   :  { %9232 = shalt.err (!%p9229_p2)
}
   0x9   :  { %s9233_s30 = scalar_lea.vmem %s36_s22, 32768  ;;  %p9238_p4 = scmp.lt.s32.totalorder %s36_s22, %s36_s22 }
   0xa   :  { %p9234_p3 = scmp.ne.s32.totalorder %s36_s22, %s9233_s30  ;;  %p9239_p5 = scmp.lt.s32.totalorder %s9233_s30, %s9233_s30 }
   0xc   :  { %p9240_p6 = por %p9239_p5, %p9238_p4 }
   0xe   :  { %p9241_p7 = pnand %p9240_p6, %p9234_p3 }
  0x10   :  { %9244 = shalt.err (!%p9241_p7)
}
  0x11   :  { %s9296_s13 = smov 128   ;;  %s9297_s14 = smov 8  }
  0x12   :  { %41 = dma.hbm_to_vmem [thread:$0]  %s12578_s5, 32768, %s36_s22, [#allocation4], %s9296_s13, %s9296_s13, %s9297_s14  }
  0x13   :  { %s9298_s17 = smov [#allocation6]   ;;  %s9245_s21 = scalar_lea.hbm %s12579_s6, 16384 }
  0x14   :  { %s47_s18 = sshll.u32 %s9298_s17, 4  ;;  %p9246_p8 = scmp.ne.s32.totalorder %s12579_s6, %s9245_s21  ;;  %s48_s18 = int_to_ptr.vmem [resolvable:$true] %s47_s18 }
  0x15   :  { %p9249_p9 = scmp.lt.u32.totalorder %s9245_s21, %s12579_s6 }
  0x17   :  { %p9251_p10 = pnand %p9249_p9, %p9246_p8 }
  0x19   :  { %9254 = shalt.err (!%p9251_p10)
}
  0x1a   :  { %s9255_s27 = scalar_lea.vmem %s48_s18, 16384  ;;  %p9260_p12 = scmp.lt.s32.totalorder %s48_s18, %s48_s18 }
  0x1b   :  { %p9256_p11 = scmp.ne.s32.totalorder %s48_s18, %s9255_s27  ;;  %p9261_p13 = scmp.lt.s32.totalorder %s9255_s27, %s9255_s27 }
  0x1d   :  { %p9262_p0 = por %p9261_p13, %p9260_p12 }
  0x1f   :  { %p9263_p1 = pnand %p9262_p0, %p9256_p11 }
  0x21   :  { %9266 = shalt.err (!%p9263_p1)
}
  0x22   :  { %s9299_s5 = smov 64   ;;  %s9300_s22 = smov 4  }
  0x23   :  { %53 = dma.hbm_to_vmem [thread:$0]  %s12579_s6, 16384, %s48_s18, [#allocation7], %s9299_s5, %s9299_s5, %s9300_s22  }
  0x24   :  { %9289 = dma.done.wait [#allocation4], 32768  }
  0x25   :  { %9290 = vsyncadd [#allocation4], 4294934528 }
  0x26   :  { %9291 = dma.done.wait [#allocation7], 16384  }
  0x27   :  { %9292 = vsyncadd [#allocation7], 4294950912  ;;  %v9414_v0 = vld [vmem:[%s12573_s0 + $0x8] sm:$0xff]  ;;  %v9419_v1 = vld [vmem:[%s12573_s0 + $0x10] sm:$0xff]  ;;  %s9301_s19 = smov 100   ;;  %s9302_s20 = smov 127  }
  0x28   :  { %v9424_v2 = vld [vmem:[%s12573_s0] sm:$0xff]  ;;  %v8296_v3 = vpack.i.bf16 %v9419_v1, %v9414_v0  ;;  %v74_v4 = vld [vmem:[%s12573_s0 + $0x18] sm:$0xff]  ;;  %v9442_v7 = vld [vmem:[%s12573_s0 + $0x28] sm:$0xff]  ;;  %v12586_v15 = vmov 0.0   ;;  %s9304_s18 = smov 124   ;;  %vm138_vm0 = vcmask 1039360  }
  0x29   :  { %v8301_v5 = vpack.i.bf16 %v9424_v2, %v74_v4  ;;  %v9437_v6 = vld [vmem:[%s12573_s0 + $0x20] sm:$0xff]  ;;  %v77_v8 = vld [vmem:[%s12573_s0 + $0x30] sm:$0xff]  ;;  %v78_v9 = vld [vmem:[%s12573_s0 + $0x38] sm:$0xff]  ;;  %v1107_v16 = vpack.c.bf16 %v12586_v15, %v74_v4  ;;  %v1106_v19 = vpack.c.bf16 %v12586_v15, %v9419_v1  ;;  %v1105_v21 = vpack.c.bf16 %v12586_v15, %v9414_v0  ;;  %s9305_s21 = smov 126   ;;  %s9306_s23 = smov 95  }
  0x2a   :  { %8297 = vrot.lane.b32.xlu1 %v8296_v3, %s9301_s19  ;;  %8287 = vrot.lane.b32.xlu0 %v8296_v3, %s9302_s20  ;;  %v79_v10 = vld [vmem:[%s12573_s0 + $0x40] sm:$0xff]  ;;  %v80_v11 = vld [vmem:[%s12573_s0 + $0x48] sm:$0xff]  ;;  %v8311_v12 = vpack.i.bf16 %v9442_v7, %v9437_v6  ;;  %v8316_v13 = vpack.i.bf16 %v78_v9, %v77_v8  ;;  %vm339_vm1 = vcmask 818176   ;;  %s9307_s24 = smov 93   ;;  %s9308_s25 = smov 62   ;;  %vm1437_vm2 = vcmask 654336  }
  0x2b   :  { %v8326_v14 = vpack.i.bf16 %v80_v11, %v79_v10  ;;  %v81_v17 = vld [vmem:[%s12573_s0 + $0x50] sm:$0xff]  ;;  %v82_v18 = vld [vmem:[%s12573_s0 + $0x58] sm:$0xff]  ;;  %s9309_s26 = smov 60   ;;  %s9310_s27 = smov 31   ;;  %v9575_v62 = vld [vmem:[%s12573_s0 + $0x20] sm:$0xff]  ;;  %vm256_vm3 = vcmask 1031168  }
  0x2c   :  { %v8336_v20 = vpack.i.bf16 %v82_v18, %v81_v17  ;;  %s9311_s22 = smov 29   ;;  %v9211_v59 = vld [vmem:[%s12573_s0 + $0x18] sm:$0xff]  ;;  %vm441_vm4 = vcmask 1014784   ;;  %vm524_vm5 = vcmask 777216   ;;  %vm607_vm6 = vcmask 760832  }
  0x2d   :  { %vm690_vm7 = vcmask 523264   ;;  %vm773_vm8 = vcmask 506880   ;;  %vm856_vm9 = vcmask 490496   ;;  %vm939_vm10 = vcmask 252928  }
  0x2e   :  { %8302 = vrot.lane.b32.xlu1 %v8301_v5, %s9301_s19  ;;  %8292 = vrot.lane.b32.xlu0 %v8301_v5, %s9302_s20  ;;  %vm1022_vm11 = vcmask 236544   ;;  %vm1915_vm12 = vcmask 785408   ;;  %vm2297_vm13 = vcmask 588800   ;;  %vm2399_vm14 = vcmask 982016  }
  0x2f   :  { %vm2564_vm15 = vcmask 474112  }
  0x32   :  { %8312 = vrot.lane.b32.xlu1 %v8311_v12, %s9301_s19  ;;  %8307 = vrot.lane.b32.xlu0 %v8311_v12, %s9302_s20 }
  0x36   :  { %8317 = vrot.lane.b32.xlu1 %v8316_v13, %s9302_s20  ;;  %8327 = vrot.lane.b32.xlu0 %v8326_v14, %s9302_s20 }
  0x3a   :  { %8322 = vrot.lane.b32.xlu1 %v8316_v13, %s9301_s19  ;;  %1141 = vrot.lane.b32.xlu0 %v1107_v16, %s9304_s18 }
  0x3e   :  { %8332 = vrot.lane.b32.xlu0 %v8326_v14, %s9301_s19  ;;  %1139 = vrot.lane.b32.xlu1 %v1106_v19, %s9304_s18  ;;  %v9214_v14 = vld [vmem:[%s12573_s0 + $0x28] sm:$0xff] }
  0x42   :  { %8337 = vrot.lane.b32.xlu0 %v8336_v20, %s9302_s20  ;;  %1137 = vrot.lane.b32.xlu1 %v1105_v21, %s9304_s18 }
  0x46   :  { %8342 = vrot.lane.b32.xlu1 %v8336_v20, %s9301_s19 }
  0x9c   :  { %v8298_v22 = vpop.permute.xlu1 %8297  ;;  %v8288_v23 = vpop.permute.xlu0 %8287 }
  0x9d   :  { %v8290_v24 = vunpack.i.h.bf16 %v8288_v23  ;;  %v8289_v25 = vunpack.i.l.bf16 %v8288_v23  ;;  %v8300_v30 = vunpack.i.h.bf16 %v8298_v22  ;;  %v8299_v31 = vunpack.i.l.bf16 %v8298_v22 }
  0x9f   :  { %v140_v26 = vsel %vm138_vm0, %v8289_v25, %v8290_v24  ;;  %v341_v43 = vsel %vm339_vm1, %v8299_v31, %v8300_v30 }
  0xa0   :  { %v9484_v27 = vpack.c.bf16 %v140_v26, %v9414_v0  ;;  %v9486_v28 = vpop.permute.xlu1 %8302  ;;  %v8293_v29 = vpop.permute.xlu0 %8292  ;;  %v374_v47 = vpack.c.bf16 %v341_v43, %v9414_v0  ;;  %v9694_v26 = vld [vmem:[%s12573_s0 + $0x68] sm:$0xff]  ;;  %v1109_v43 = vpack.c.bf16 %v12586_v15, %v9214_v14 }
  0xa1   :  { %v8295_v32 = vunpack.i.h.bf16 %v8293_v29  ;;  %v8294_v33 = vunpack.i.l.bf16 %v8293_v29  ;;  %v8304_v34 = vunpack.i.l.bf16 %v9486_v28  ;;  %v8305_v41 = vunpack.i.h.bf16 %v9486_v28 }
  0xa2   :  { %1441 = vmatprep.subr.bf16.mxu1 %v9484_v27  ;;  %224 = vrot.lane.b32.xlu0 %v9484_v27, %s9305_s21 }
  0xa3   :  { %v139_v35 = vsel %vm138_vm0, %v8295_v32, %v8289_v25  ;;  %v141_v36 = vsel %vm138_vm0, %v8290_v24, %v8294_v33  ;;  %v342_v45 = vsel %vm339_vm1, %v8300_v30, %v8304_v34  ;;  %v340_v50 = vsel %vm339_vm1, %v8305_v41, %v8299_v31  ;;  %v9689_v25 = vld [vmem:[%s12573_s0 + $0x60] sm:$0xff] }
  0xa4   :  { %v171_v37 = vpack.c.bf16 %v139_v35, %v9424_v2  ;;  %v9496_v38 = vpack.c.bf16 %v141_v36, %v9419_v1  ;;  %v9498_v39 = vpop.permute.xlu1 %8312  ;;  %v8308_v40 = vpop.permute.xlu0 %8307  ;;  %v375_v49 = vpack.c.bf16 %v342_v45, %v9419_v1  ;;  %v373_v54 = vpack.c.bf16 %v340_v50, %v9424_v2  ;;  %v9586_v1 = vld [vmem:[%s12574_s1] sm:$0xff] }
  0xa5   :  { %v8310_v42 = vunpack.i.h.bf16 %v8308_v40  ;;  %v8309_v44 = vunpack.i.l.bf16 %v8308_v40  ;;  %v8315_v57 = vunpack.i.h.bf16 %v9498_v39  ;;  %v8314_v58 = vunpack.i.l.bf16 %v9498_v39 }
  0xa6   :  { %222 = vrot.lane.b32.xlu0 %v171_v37, %s9305_s21  ;;  %1442 = vmatpush1.bf16.msra.mxu1 %v171_v37  ;;  %v9591_v3 = vcombine.high %v9586_v1, %v9586_v1  ;;  %v8346_v32 = vpack.i.bf16 %v9694_v26, %v9689_v25  ;;  %v1108_v36 = vpack.c.bf16 %v12586_v15, %v9575_v62 }
  0xa7   :  { %226 = vrot.lane.b32.xlu1 %v9496_v38, %s9305_s21  ;;  %v143_v46 = vsel %vm138_vm0, %v8309_v44, %v8310_v42  ;;  %v142_v56 = vsel %vm138_vm0, %v8294_v33, %v8309_v44  ;;  %v344_v61 = vsel %vm339_vm1, %v8314_v58, %v8315_v57  ;;  %v343_v0 = vsel %vm339_vm1, %v8304_v34, %v8314_v58 }
  0xa8   :  { %v9510_v48 = vpop.permute.xlu1 %8317  ;;  %v9517_v52 = vpack.c.bf16 %v143_v46, %v9437_v6  ;;  %v9564_v60 = vpack.c.bf16 %v142_v56, %v9211_v59  ;;  %v377_v63 = vpack.c.bf16 %v344_v61, %v9575_v62  ;;  %v376_v4 = vpack.c.bf16 %v343_v0, %v9211_v59  ;;  %7566 = vmatprep.mubr.msk.bf16.mxu1 %vm1437_vm2, %v9591_v3  ;;  %v9652_v17 = vpop.permute.xlu0 %8327  ;;  %v9746_v56 = vld [vmem:[%s12573_s0 + $0x40] sm:$0xff] }
  0xa9   :  { %v8319_v51 = vunpack.i.l.bf16 %v9510_v48  ;;  %v8320_v2 = vunpack.i.h.bf16 %v9510_v48  ;;  %7568 = vmatprep.mubr.msk.bf16.mxu0 %vm1437_vm2, %v9591_v3  ;;  %v8329_v39 = vunpack.i.l.bf16 %v9652_v17  ;;  %v9215_v48 = vld [vmem:[%s12573_s0 + $0x38] sm:$0xff] }
  0xaa   :  { %409 = vrot.lane.b32.xlu0 %v374_v47, %s9304_s18 }
  0xab   :  { %411 = vrot.lane.b32.xlu1 %v375_v49, %s9304_s18  ;;  %v144_v53 = vsel %vm138_vm0, %v8310_v42, %v8319_v51  ;;  %v145_v5 = vsel %vm138_vm0, %v8319_v51, %v8320_v2  ;;  %v8330_v42 = vunpack.i.h.bf16 %v9652_v17  ;;  %v146_v45 = vsel %vm138_vm0, %v8320_v2, %v8329_v39 }
  0xac   :  { %v9523_v55 = vpack.c.bf16 %v144_v53, %v9442_v7  ;;  %v9602_v6 = vpop.permute.xlu1 %8322  ;;  %v9609_v7 = vld [vmem:[%s12573_s0 + $0x30] sm:$0xff]  ;;  %v9656_v18 = vpop.permute.xlu0 %1141  ;;  %v9741_v53 = vpack.c.bf16 %v146_v45, %v9215_v48 }
  0xad   :  { %v9612_v8 = vpack.c.bf16 %v145_v5, %v9609_v7  ;;  %v8325_v9 = vunpack.i.h.bf16 %v9602_v6  ;;  %v8324_v10 = vunpack.i.l.bf16 %v9602_v6  ;;  %v147_v50 = vsel %vm138_vm0, %v8329_v39, %v8330_v42 }
  0xae   :  { %407 = vrot.lane.b32.xlu0 %v373_v54, %s9304_s18  ;;  %1523 = vmatprep.subr.bf16.mxu0 %v9523_v55 }
  0xaf   :  { %494 = vrot.lane.b32.xlu1 %v9496_v38, %s9306_s23  ;;  %1524 = vmatpush1.bf16.msra.mxu0 %v9517_v52  ;;  %v346_v11 = vsel %vm339_vm1, %v8324_v10, %v8325_v9  ;;  %v345_v12 = vsel %vm339_vm1, %v8315_v57, %v8324_v10  ;;  %v9749_v57 = vpack.c.bf16 %v147_v50, %v9746_v56 }
  0xb0   :  { %v379_v13 = vpack.c.bf16 %v346_v11, %v9609_v7  ;;  %v378_v16 = vpack.c.bf16 %v345_v12, %v9214_v14  ;;  %v9662_v19 = vpop.permute.xlu1 %1139  ;;  %v9668_v20 = vpop.permute.xlu0 %8332  ;;  %v1111_v10 = vpack.c.bf16 %v12586_v15, %v9215_v48 }
  0xb1   :  { %v8334_v46 = vunpack.i.l.bf16 %v9668_v20  ;;  %v8335_v51 = vunpack.i.h.bf16 %v9668_v20 }
  0xb2   :  { %492 = vrot.lane.b32.xlu0 %v9484_v27, %s9306_s23 }
  0xb3   :  { %575 = vrot.lane.b32.xlu1 %v9484_v27, %s9307_s24  ;;  %v347_v61 = vsel %vm339_vm1, %v8325_v9, %v8334_v46  ;;  %v348_v62 = vsel %vm339_vm1, %v8334_v46, %v8335_v51  ;;  %v1110_v9 = vpack.c.bf16 %v12586_v15, %v9609_v7 }
  0xb4   :  { %v9672_v21 = vpop.permute.xlu1 %1137  ;;  %v9676_v22 = vpop.permute.xlu0 %8337  ;;  %v9764_v0 = vpack.c.bf16 %v347_v61, %v9215_v48 }
  0xb5   :  { %v8339_v12 = vunpack.i.l.bf16 %v9676_v22 }
  0xb6   :  { %490 = vrot.lane.b32.xlu0 %v171_v37, %s9306_s23 }
  0xb7   :  { %573 = vrot.lane.b32.xlu1 %v171_v37, %s9307_s24  ;;  %v148_v17 = vsel %vm138_vm0, %v8330_v42, %v8339_v12 }
  0xb8   :  { %v9682_v24 = vpop.permute.xlu1 %8342 }
  0xb9   :  { %v8344_v39 = vunpack.i.l.bf16 %v9682_v24 }
  0xba   :  { %577 = vrot.lane.b32.xlu0 %v9496_v38, %s9307_s24 }
  0xbb   :  { %660 = vrot.lane.b32.xlu1 %v9496_v38, %s9299_s5 }
  0xbe   :  { %658 = vrot.lane.b32.xlu0 %v9484_v27, %s9299_s5 }
  0xbf   :  { %741 = vrot.lane.b32.xlu1 %v9484_v27, %s9308_s25 }
  0xc2   :  { %656 = vrot.lane.b32.xlu0 %v171_v37, %s9299_s5 }
  0xc3   :  { %739 = vrot.lane.b32.xlu1 %v171_v37, %s9308_s25 }
  0xc6   :  { %743 = vrot.lane.b32.xlu0 %v9496_v38, %s9308_s25 }
  0xc7   :  { %826 = vrot.lane.b32.xlu1 %v375_v49, %s9309_s26 }
  0xca   :  { %824 = vrot.lane.b32.xlu0 %v374_v47, %s9309_s26 }
  0xcb   :  { %907 = vrot.lane.b32.xlu1 %v9484_v27, %s9310_s27 }
  0xce   :  { %822 = vrot.lane.b32.xlu0 %v373_v54, %s9309_s26 }
  0xcf   :  { %905 = vrot.lane.b32.xlu1 %v171_v37, %s9310_s27 }
  0xd2   :  { %909 = vrot.lane.b32.xlu0 %v9496_v38, %s9310_s27 }
  0xd3   :  { %992 = vrot.lane.b32.xlu1 %v9496_v38, %s9311_s22 }
  0xd6   :  { %990 = vrot.lane.b32.xlu0 %v9484_v27, %s9311_s22 }
  0xd7   :  { %228 = vrot.lane.b32.xlu1 %v9564_v60, %s9305_s21 }
  0xda   :  { %988 = vrot.lane.b32.xlu0 %v171_v37, %s9311_s22 }
  0xdb   :  { %230 = vrot.lane.b32.xlu1 %v9517_v52, %s9305_s21 }
  0xde   :  { %415 = vrot.lane.b32.xlu0 %v377_v63, %s9304_s18 }
  0xdf   :  { %413 = vrot.lane.b32.xlu1 %v376_v4, %s9304_s18 }
  0xe2   :  { %496 = vrot.lane.b32.xlu0 %v9564_v60, %s9306_s23 }
  0xe3   :  { %498 = vrot.lane.b32.xlu1 %v9517_v52, %s9306_s23 }
  0xe6   :  { %232 = vrot.lane.b32.xlu0 %v9523_v55, %s9305_s21 }
  0xe7   :  { %234 = vrot.lane.b32.xlu1 %v9612_v8, %s9305_s21 }
  0xea   :  { %579 = vrot.lane.b32.xlu0 %v9564_v60, %s9307_s24 }
  0xeb   :  { %581 = vrot.lane.b32.xlu1 %v9517_v52, %s9307_s24 }
  0xee   :  { %417 = vrot.lane.b32.xlu0 %v378_v16, %s9304_s18 }
  0xef   :  { %419 = vrot.lane.b32.xlu1 %v379_v13, %s9304_s18 }
  0xf2   :  { %662 = vrot.lane.b32.xlu0 %v9564_v60, %s9299_s5 }
  0xf3   :  { %664 = vrot.lane.b32.xlu1 %v9517_v52, %s9299_s5 }
  0xf6   :  { %500 = vrot.lane.b32.xlu0 %v9523_v55, %s9306_s23 }
  0xf7   :  { %502 = vrot.lane.b32.xlu1 %v9612_v8, %s9306_s23 }
  0xfa   :  { %745 = vrot.lane.b32.xlu0 %v9564_v60, %s9308_s25 }
  0xfb   :  { %747 = vrot.lane.b32.xlu1 %v9517_v52, %s9308_s25 }
  0xfe   :  { %583 = vrot.lane.b32.xlu0 %v9523_v55, %s9307_s24 }
  0xff   :  { %585 = vrot.lane.b32.xlu1 %v9612_v8, %s9307_s24 }
 0x102   :  { %828 = vrot.lane.b32.xlu0 %v376_v4, %s9309_s26  ;;  %v9769_v4 = vpack.c.bf16 %v348_v62, %v9746_v56 }
 0x103   :  { %830 = vrot.lane.b32.xlu1 %v377_v63, %s9309_s26 }
 0x106   :  { %666 = vrot.lane.b32.xlu0 %v9523_v55, %s9299_s5 }
 0x107   :  { %668 = vrot.lane.b32.xlu1 %v9612_v8, %s9299_s5 }
 0x10a   :  { %911 = vrot.lane.b32.xlu0 %v9564_v60, %s9310_s27 }
 0x10b   :  { %913 = vrot.lane.b32.xlu1 %v9517_v52, %s9310_s27 }
 0x10e   :  { %749 = vrot.lane.b32.xlu0 %v9523_v55, %s9308_s25 }
 0x10f   :  { %751 = vrot.lane.b32.xlu1 %v9612_v8, %s9308_s25 }
 0x112   :  { %994 = vrot.lane.b32.xlu0 %v9564_v60, %s9311_s22 }
 0x113   :  { %996 = vrot.lane.b32.xlu1 %v9517_v52, %s9311_s22 }
 0x114   :  { %v225_v23 = vpop.permute.xlu0 %224 }
 0x116   :  { %832 = vrot.lane.b32.xlu0 %v378_v16, %s9309_s26  ;;  %v8340_v16 = vunpack.i.h.bf16 %v9676_v22 }
 0x117   :  { %834 = vrot.lane.b32.xlu1 %v379_v13, %s9309_s26 }
 0x118   :  { %v223_v28 = vpop.permute.xlu0 %222 }
 0x119   :  { %v9696_v29 = vpop.permute.xlu1 %226  ;;  %v257_v30 = vsel %vm256_vm3, %v223_v28, %v225_v23 }
 0x11a   :  { %915 = vrot.lane.b32.xlu0 %v9523_v55, %s9310_s27  ;;  %v9703_v31 = vsel %vm256_vm3, %v225_v23, %v9696_v29 }
 0x11b   :  { %917 = vrot.lane.b32.xlu1 %v9612_v8, %s9310_s27  ;;  %1443 = vmatprep.subr.bf16.mxu1 %v9703_v31 }
 0x11c   :  { %1444 = vmatpush1.bf16.msra.mxu1 %v257_v30  ;;  %v410_v33 = vpop.permute.xlu0 %409  ;;  %v149_v30 = vsel %vm138_vm0, %v8339_v12, %v8340_v16 }
 0x11d   :  { %v9710_v34 = vpop.permute.xlu1 %411 }
 0x11e   :  { %8347 = vrot.lane.b32.xlu0 %v8346_v32, %s9302_s20  ;;  %v443_v35 = vsel %vm441_vm4, %v410_v33, %v9710_v34 }
 0x11f   :  { %998 = vrot.lane.b32.xlu1 %v9523_v55, %s9311_s22  ;;  %1445 = vmatprep.subr.bf16.mxu1 %v443_v35 }
 0x120   :  { %v408_v37 = vpop.permute.xlu0 %407 }
 0x121   :  { %v9720_v40 = vpop.permute.xlu1 %494  ;;  %v442_v41 = vsel %vm441_vm4, %v408_v37, %v410_v33 }
 0x122   :  { %1000 = vrot.lane.b32.xlu0 %v9612_v8, %s9311_s22  ;;  %1446 = vmatpush1.bf16.msra.mxu1 %v442_v41 }
 0x123   :  { %1143 = vrot.lane.b32.xlu1 %v1108_v36, %s9304_s18  ;;  %v9809_v36 = vld [vmem:[%s12573_s0 + $0x50] sm:$0xff] }
 0x124   :  { %v493_v44 = vpop.permute.xlu0 %492  ;;  %v9812_v37 = vpack.c.bf16 %v149_v30, %v9809_v36  ;;  %v1170_v30 = vsel %vm441_vm4, %v9662_v19, %v9656_v18 }
 0x125   :  { %v576_v47 = vpop.permute.xlu1 %575  ;;  %v526_v49 = vsel %vm524_vm5, %v493_v44, %v9720_v40 }
 0x126   :  { %1145 = vrot.lane.b32.xlu0 %v1109_v43, %s9304_s18  ;;  %1447 = vmatprep.subr.bf16.mxu1 %v526_v49  ;;  %v8345_v43 = vunpack.i.h.bf16 %v9682_v24  ;;  %v349_v49 = vsel %vm339_vm1, %v8335_v51, %v8344_v39  ;;  %v1114_v24 = vpack.c.bf16 %v12586_v15, %v9809_v36 }
 0x127   :  { %8352 = vrot.lane.b32.xlu1 %v8346_v32, %s9301_s19  ;;  %v9799_v32 = vld [vmem:[%s12573_s0 + $0x48] sm:$0xff] }
 0x128   :  { %v491_v54 = vpop.permute.xlu0 %490  ;;  %v9802_v33 = vpack.c.bf16 %v148_v17, %v9799_v32  ;;  %v350_v50 = vsel %vm339_vm1, %v8344_v39, %v8345_v43  ;;  %v1169_v39 = vsel %vm441_vm4, %v9672_v21, %v9662_v19 }
 0x129   :  { %v574_v58 = vpop.permute.xlu1 %573  ;;  %v525_v59 = vsel %vm524_vm5, %v491_v54, %v493_v44  ;;  %v9838_v54 = vpack.c.bf16 %v349_v49, %v9799_v32  ;;  %v9841_v20 = vpack.c.bf16 %v350_v50, %v9809_v36 }
 0x12a   :  { %236 = vrot.lane.b32.xlu0 %v9741_v53, %s9305_s21  ;;  %1448 = vmatpush1.bf16.msra.mxu1 %v525_v59  ;;  %v608_v6 = vsel %vm607_vm6, %v574_v58, %v576_v47 }
 0x12b   :  { %238 = vrot.lane.b32.xlu1 %v9749_v57, %s9305_s21 }
 0x12c   :  { %v9762_v63 = vpop.permute.xlu0 %577 }
 0x12d   :  { %v9766_v2 = vpop.permute.xlu1 %660  ;;  %v609_v5 = vsel %vm607_vm6, %v576_v47, %v9762_v63 }
 0x12e   :  { %421 = vrot.lane.b32.xlu0 %v9764_v0, %s9304_s18  ;;  %1449 = vmatprep.subr.bf16.mxu1 %v609_v5 }
 0x12f   :  { %423 = vrot.lane.b32.xlu1 %v9769_v4, %s9304_s18  ;;  %1450 = vmatpush1.bf16.msra.mxu1 %v608_v6 }
 0x130   :  { %v659_v11 = vpop.permute.xlu0 %658 }
 0x131   :  { %v742_v13 = vpop.permute.xlu1 %741  ;;  %v692_v14 = vsel %vm690_vm7, %v659_v11, %v9766_v2 }
 0x132   :  { %1147 = vrot.lane.b32.xlu0 %v1110_v9, %s9304_s18  ;;  %1451 = vmatprep.subr.bf16.mxu1 %v692_v14 }
 0x133   :  { %1149 = vrot.lane.b32.xlu1 %v1111_v10, %s9304_s18 }
 0x134   :  { %v657_v7 = vpop.permute.xlu0 %656 }
 0x135   :  { %v740_v23 = vpop.permute.xlu1 %739  ;;  %v691_v28 = vsel %vm690_vm7, %v657_v7, %v659_v11 }
 0x136   :  { %504 = vrot.lane.b32.xlu0 %v9741_v53, %s9306_s23  ;;  %1452 = vmatpush1.bf16.msra.mxu1 %v691_v28  ;;  %v774_v44 = vsel %vm773_vm8, %v740_v23, %v742_v13 }
 0x137   :  { %506 = vrot.lane.b32.xlu1 %v9749_v57, %s9306_s23 }
 0x138   :  { %v9804_v35 = vpop.permute.xlu0 %743 }
 0x139   :  { %v9815_v41 = vpop.permute.xlu1 %826  ;;  %v775_v42 = vsel %vm773_vm8, %v742_v13, %v9804_v35 }
 0x13a   :  { %240 = vrot.lane.b32.xlu0 %v9802_v33, %s9305_s21  ;;  %1453 = vmatprep.subr.bf16.mxu1 %v775_v42 }
 0x13b   :  { %242 = vrot.lane.b32.xlu1 %v9812_v37, %s9305_s21  ;;  %1454 = vmatpush1.bf16.msra.mxu1 %v774_v44 }
 0x13c   :  { %v825_v45 = vpop.permute.xlu0 %824 }
 0x13d   :  { %v908_v46 = vpop.permute.xlu1 %907  ;;  %v858_v47 = vsel %vm856_vm9, %v825_v45, %v9815_v41 }
 0x13e   :  { %587 = vrot.lane.b32.xlu0 %v9741_v53, %s9307_s24  ;;  %1455 = vmatprep.subr.bf16.mxu1 %v858_v47 }
 0x13f   :  { %589 = vrot.lane.b32.xlu1 %v9749_v57, %s9307_s24 }
 0x140   :  { %v823_v48 = vpop.permute.xlu0 %822 }
 0x141   :  { %v906_v58 = vpop.permute.xlu1 %905  ;;  %v857_v51 = vsel %vm856_vm9, %v823_v48, %v825_v45 }
 0x142   :  { %425 = vrot.lane.b32.xlu0 %v9838_v54, %s9304_s18  ;;  %1456 = vmatpush1.bf16.msra.mxu1 %v857_v51  ;;  %v940_v5 = vsel %vm939_vm10, %v906_v58, %v908_v46 }
 0x143   :  { %427 = vrot.lane.b32.xlu1 %v9841_v20, %s9304_s18 }
 0x144   :  { %v9848_v59 = vpop.permute.xlu0 %909 }
 0x145   :  { %v9850_v61 = vpop.permute.xlu1 %992  ;;  %v941_v62 = vsel %vm939_vm10, %v908_v46, %v9848_v59 }
 0x146   :  { %670 = vrot.lane.b32.xlu0 %v9741_v53, %s9299_s5  ;;  %1457 = vmatprep.subr.bf16.mxu1 %v941_v62 }
 0x147   :  { %672 = vrot.lane.b32.xlu1 %v9749_v57, %s9299_s5  ;;  %1458 = vmatpush1.bf16.msra.mxu1 %v940_v5 }
 0x148   :  { %v991_v6 = vpop.permute.xlu0 %990 }
 0x149   :  { %v229_v9 = vpop.permute.xlu1 %228  ;;  %v1024_v10 = vsel %vm1022_vm11, %v991_v6, %v9850_v61 }
 0x14a   :  { %508 = vrot.lane.b32.xlu0 %v9802_v33, %s9306_s23  ;;  %1459 = vmatprep.subr.bf16.mxu1 %v1024_v10  ;;  %v259_v17 = vsel %vm256_vm3, %v9696_v29, %v229_v9 }
 0x14b   :  { %510 = vrot.lane.b32.xlu1 %v9812_v37, %s9306_s23 }
 0x14c   :  { %v989_v11 = vpop.permute.xlu0 %988 }
 0x14d   :  { %v231_v12 = vpop.permute.xlu1 %230  ;;  %v1023_v13 = vsel %vm1022_vm11, %v989_v11, %v991_v6 }
 0x14e   :  { %753 = vrot.lane.b32.xlu0 %v9741_v53, %s9308_s25  ;;  %1460 = vmatpush1.bf16.msra.mxu1 %v1023_v13  ;;  %v9914_v21 = vsel %vm256_vm3, %v229_v9, %v231_v12 }
 0x14f   :  { %755 = vrot.lane.b32.xlu1 %v9749_v57, %s9308_s25  ;;  %1461 = vmatprep.subr.bf16.mxu1 %v9496_v38 }
 0x150   :  { %v416_v14 = vpop.permute.xlu0 %415 }
 0x151   :  { %v414_v7 = vpop.permute.xlu1 %413 }
 0x152   :  { %591 = vrot.lane.b32.xlu0 %v9802_v33, %s9307_s24  ;;  %1462 = vmatpush1.bf16.msra.mxu1 %v9484_v27  ;;  %v445_v47 = vsel %vm441_vm4, %v414_v7, %v416_v14  ;;  %v444_v48 = vsel %vm441_vm4, %v9710_v34, %v414_v7 }
 0x153   :  { %593 = vrot.lane.b32.xlu1 %v9812_v37, %s9307_s24  ;;  %1463 = vmatprep.subr.bf16.mxu1 %v259_v17 }
 0x154   :  { %v497_v23 = vpop.permute.xlu0 %496 }
 0x155   :  { %v499_v28 = vpop.permute.xlu1 %498  ;;  %v527_v5 = vsel %vm524_vm5, %v9720_v40, %v497_v23 }
 0x156   :  { %836 = vrot.lane.b32.xlu0 %v9764_v0, %s9309_s26  ;;  %1464 = vmatpush1.bf16.msra.mxu1 %v9703_v31  ;;  %v9896_v31 = vcombine.low %v9586_v1, %v9586_v1  ;;  %v528_v58 = vsel %vm524_vm5, %v497_v23, %v499_v28 }
 0x157   :  { %838 = vrot.lane.b32.xlu1 %v9769_v4, %s9309_s26  ;;  %1465 = vmatprep.subr.bf16.mxu1 %v1170_v30  ;;  %v9922_v4 = vld [vmem:[%s12573_s0 + $0x70] sm:$0xff] }
 0x158   :  { %v233_v27 = vpop.permute.xlu0 %232 }
 0x159   :  { %v9886_v29 = vpop.permute.xlu1 %234  ;;  %v9892_v42 = vsel %vm256_vm3, %v231_v12, %v233_v27 }
 0x15a   :  { %674 = vrot.lane.b32.xlu0 %v9802_v33, %s9299_s5  ;;  %1466 = vmatpush1.bf16.msra.mxu1 %v1169_v39  ;;  %v9902_v0 = vsel %vm256_vm3, %v233_v27, %v9886_v29  ;;  %v1113_v27 = vpack.c.bf16 %v12586_v15, %v9799_v32 }
 0x15b   :  { %676 = vrot.lane.b32.xlu1 %v9812_v37, %s9299_s5  ;;  %1525 = vmatprep.subr.bf16.mxu0 %v9902_v0 }
 0x15c   :  { %1482 = vmatprep.subr.bf16.mxu1 %v9564_v60  ;;  %1526 = vmatpush1.bf16.msra.mxu0 %v9892_v42  ;;  %v580_v19 = vpop.permute.xlu0 %579 }
 0x15d   :  { %v582_v1 = vpop.permute.xlu1 %581  ;;  %1474 = vmatmul.mubr.bf16.vlgmr.msra.gmra.mrb[0].mxu1 %v9896_v31  ;;  %v610_v40 = vsel %vm607_vm6, %v9762_v63, %v580_v19 }
 0x15e   :  { %919 = vrot.lane.b32.xlu0 %v9741_v53, %s9310_s27  ;;  %1483 = vmatpush1.bf16.msra.mxu1 %v9496_v38  ;;  %v611_v9 = vsel %vm607_vm6, %v580_v19, %v582_v1 }
 0x15f   :  { %921 = vrot.lane.b32.xlu1 %v9749_v57, %s9310_s27  ;;  %1484 = vmatprep.subr.bf16.mxu1 %v9914_v21 }
 0x160   :  { %v418_v44 = vpop.permute.xlu0 %417  ;;  %7567 = vmatprep.mubr.msk.bf16.mxu1 %vm1437_vm2, %v9591_v3 }
 0x161   :  { %v9926_v45 = vpop.permute.xlu1 %419  ;;  %v446_v38 = vsel %vm441_vm4, %v416_v14, %v418_v44 }
 0x162   :  { %132 = vrot.lane.b32.xlu0 %v9922_v4, %s9302_s20  ;;  %1485 = vmatpush1.bf16.msra.mxu1 %v259_v17  ;;  %v447_v46 = vsel %vm441_vm4, %v418_v44, %v9926_v45  ;;  %v1112_v17 = vpack.c.bf16 %v12586_v15, %v9746_v56 }
 0x163   :  { %757 = vrot.lane.b32.xlu1 %v9802_v33, %s9308_s25  ;;  %1527 = vmatprep.subr.bf16.mxu0 %v447_v46 }
 0x164   :  { %1486 = vmatprep.subr.bf16.mxu1 %v445_v47  ;;  %1528 = vmatpush1.bf16.msra.mxu0 %v446_v38  ;;  %v663_v49 = vpop.permute.xlu0 %662 }
 0x165   :  { %v665_v50 = vpop.permute.xlu1 %664  ;;  %v693_v14 = vsel %vm690_vm7, %v9766_v2, %v663_v49 }
 0x166   :  { %759 = vrot.lane.b32.xlu0 %v9812_v37, %s9308_s25  ;;  %1487 = vmatpush1.bf16.msra.mxu1 %v444_v48  ;;  %v694_v12 = vsel %vm690_vm7, %v663_v49, %v665_v50 }
 0x167   :  { %1002 = vrot.lane.b32.xlu1 %v9741_v53, %s9311_s22  ;;  %1488 = vmatprep.subr.bf16.mxu1 %v528_v58 }
 0x168   :  { %v501_v51 = vpop.permute.xlu0 %500 }
 0x169   :  { %v9943_v62 = vpop.permute.xlu1 %502  ;;  %v529_v6 = vsel %vm524_vm5, %v499_v28, %v501_v51 }
 0x16a   :  { %1004 = vrot.lane.b32.xlu0 %v9749_v57, %s9311_s22  ;;  %1489 = vmatpush1.bf16.msra.mxu1 %v527_v5  ;;  %v530_v34 = vsel %vm524_vm5, %v501_v51, %v9943_v62 }
 0x16b   :  { %840 = vrot.lane.b32.xlu1 %v9838_v54, %s9309_s26  ;;  %1529 = vmatprep.subr.bf16.mxu0 %v530_v34 }
 0x16c   :  { %1490 = vmatprep.subr.bf16.mxu1 %v611_v9  ;;  %1530 = vmatpush1.bf16.msra.mxu0 %v529_v6  ;;  %v746_v10 = vpop.permute.xlu0 %745 }
 0x16d   :  { %v748_v11 = vpop.permute.xlu1 %747  ;;  %v776_v28 = vsel %vm773_vm8, %v9804_v35, %v746_v10 }
 0x16e   :  { %842 = vrot.lane.b32.xlu0 %v9841_v20, %s9309_s26  ;;  %1491 = vmatpush1.bf16.msra.mxu1 %v610_v40  ;;  %v777_v20 = vsel %vm773_vm8, %v746_v10, %v748_v11 }
 0x16f   :  { %923 = vrot.lane.b32.xlu1 %v9802_v33, %s9310_s27  ;;  %1492 = vmatprep.subr.bf16.mxu1 %v694_v12 }
 0x170   :  { %v584_v54 = vpop.permute.xlu0 %583 }
 0x171   :  { %v9962_v13 = vpop.permute.xlu1 %585  ;;  %v612_v7 = vsel %vm607_vm6, %v582_v1, %v584_v54 }
 0x172   :  { %925 = vrot.lane.b32.xlu0 %v9812_v37, %s9310_s27  ;;  %1493 = vmatpush1.bf16.msra.mxu1 %v693_v14  ;;  %v613_v63 = vsel %vm607_vm6, %v584_v54, %v9962_v13 }
 0x173   :  { %1006 = vrot.lane.b32.xlu1 %v9802_v33, %s9311_s22  ;;  %1531 = vmatprep.subr.bf16.mxu0 %v613_v63 }
 0x174   :  { %1494 = vmatprep.subr.bf16.mxu1 %v777_v20  ;;  %1532 = vmatpush1.bf16.msra.mxu0 %v612_v7  ;;  %v829_v2 = vpop.permute.xlu0 %828 }
 0x175   :  { %v831_v23 = vpop.permute.xlu1 %830  ;;  %v859_v19 = vsel %vm856_vm9, %v9815_v41, %v829_v2 }
 0x176   :  { %1008 = vrot.lane.b32.xlu0 %v9812_v37, %s9311_s22  ;;  %1495 = vmatpush1.bf16.msra.mxu1 %v776_v28  ;;  %v860_v30 = vsel %vm856_vm9, %v829_v2, %v831_v23  ;;  %v10047_v2 = vld [vmem:[%s12573_s0 + $0x78] sm:$0xff] }
 0x177   :  { %1496 = vmatprep.subr.bf16.mxu1 %v860_v30  ;;  %1151 = vrot.lane.b32.xlu1 %v1112_v17, %s9304_s18 }
 0x178   :  { %v667_v56 = vpop.permute.xlu0 %666 }
 0x179   :  { %v9984_v39 = vpop.permute.xlu1 %668  ;;  %v695_v35 = vsel %vm690_vm7, %v665_v50, %v667_v56 }
 0x17a   :  { %1153 = vrot.lane.b32.xlu0 %v1113_v27, %s9304_s18  ;;  %1497 = vmatpush1.bf16.msra.mxu1 %v859_v19  ;;  %v696_v1 = vsel %vm690_vm7, %v667_v56, %v9984_v39 }
 0x17b   :  { %1533 = vmatprep.subr.bf16.mxu0 %v696_v1 }
 0x17c   :  { %1534 = vmatpush1.bf16.msra.mxu0 %v695_v35  ;;  %v912_v32 = vpop.permute.xlu0 %911 }
 0x17d   :  { %v914_v44 = vpop.permute.xlu1 %913  ;;  %v942_v38 = vsel %vm939_vm10, %v9848_v59, %v912_v32 }
 0x17e   :  { %v943_v46 = vsel %vm939_vm10, %v912_v32, %v914_v44 }
 0x17f   :  { %1498 = vmatprep.subr.bf16.mxu1 %v943_v46 }
 0x180   :  { %1499 = vmatpush1.bf16.msra.mxu1 %v942_v38  ;;  %v750_v41 = vpop.permute.xlu0 %749 }
 0x181   :  { %v9995_v47 = vpop.permute.xlu1 %751  ;;  %v778_v49 = vsel %vm773_vm8, %v748_v11, %v750_v41 }
 0x182   :  { %v779_v50 = vsel %vm773_vm8, %v750_v41, %v9995_v47 }
 0x183   :  { %1535 = vmatprep.subr.bf16.mxu0 %v779_v50 }
 0x184   :  { %1536 = vmatpush1.bf16.msra.mxu0 %v778_v49  ;;  %v995_v48 = vpop.permute.xlu0 %994 }
 0x185   :  { %v997_v58 = vpop.permute.xlu1 %996  ;;  %v1025_v51 = vsel %vm1022_vm11, %v9850_v61, %v995_v48 }
 0x186   :  { %v1026_v59 = vsel %vm1022_vm11, %v995_v48, %v997_v58 }
 0x187   :  { %1500 = vmatprep.subr.bf16.mxu1 %v1026_v59 }
 0x188   :  { %1501 = vmatpush1.bf16.msra.mxu1 %v1025_v51  ;;  %v833_v5 = vpop.permute.xlu0 %832 }
 0x189   :  { %1502 = vmatprep.subr.bf16.mxu1 %v9517_v52  ;;  %v10004_v6 = vpop.permute.xlu1 %834  ;;  %v861_v34 = vsel %vm856_vm9, %v831_v23, %v833_v5 }
 0x18a   :  { %v862_v9 = vsel %vm856_vm9, %v833_v5, %v10004_v6 }
 0x18b   :  { %1537 = vmatprep.subr.bf16.mxu0 %v862_v9 }
 0x18c   :  { %1503 = vmatpush1.bf16.msra.mxu1 %v9564_v60  ;;  %1538 = vmatpush1.bf16.msra.mxu0 %v861_v34  ;;  %v916_v10 = vpop.permute.xlu0 %915 }
 0x18d   :  { %1504 = vmatprep.subr.bf16.mxu1 %v9892_v42  ;;  %v10011_v61 = vpop.permute.xlu1 %917  ;;  %v944_v11 = vsel %vm939_vm10, %v914_v44, %v916_v10 }
 0x18e   :  { %v945_v52 = vsel %vm939_vm10, %v916_v10, %v10011_v61 }
 0x18f   :  { %1539 = vmatprep.subr.bf16.mxu0 %v945_v52 }
 0x190   :  { %1505 = vmatpush1.bf16.msra.mxu1 %v9914_v21  ;;  %1540 = vmatpush1.bf16.msra.mxu0 %v944_v11  ;;  %v10017_v40 = vpop.permute.xlu0 %8347  ;;  %v9219_v21 = vld [vmem:[%s12573_s0 + $0x58] sm:$0xff] }
 0x191   :  { %v8350_v12 = vunpack.i.h.bf16 %v10017_v40  ;;  %v8349_v60 = vunpack.i.l.bf16 %v10017_v40  ;;  %v999_v54 = vpop.permute.xlu1 %998 }
 0x193   :  { %v150_v42 = vsel %vm138_vm0, %v8340_v16, %v8349_v60  ;;  %v151_v14 = vsel %vm138_vm0, %v8349_v60, %v8350_v12  ;;  %v1027_v16 = vsel %vm1022_vm11, %v997_v58, %v999_v54 }
 0x194   :  { %v10030_v7 = vpack.c.bf16 %v150_v42, %v9219_v21  ;;  %v10033_v63 = vpack.c.bf16 %v151_v14, %v9689_v25  ;;  %v10035_v20 = vpop.permute.xlu0 %1000 }
 0x195   :  { %v1144_v17 = vpop.permute.xlu1 %1143  ;;  %v1028_v22 = vsel %vm1022_vm11, %v999_v54, %v10035_v20 }
 0x196   :  { %246 = vrot.lane.b32.xlu0 %v10033_v63, %s9305_s21  ;;  %244 = vrot.lane.b32.xlu1 %v10030_v7, %s9305_s21  ;;  %v1171_v19 = vsel %vm441_vm4, %v9656_v18, %v1144_v17 }
 0x197   :  { %1541 = vmatprep.subr.bf16.mxu0 %v1028_v22 }
 0x198   :  { %1542 = vmatpush1.bf16.msra.mxu0 %v1027_v16  ;;  %v1146_v23 = vpop.permute.xlu0 %1145 }
 0x199   :  { %1543 = vmatprep.subr.bf16.mxu0 %v9612_v8  ;;  %v10050_v28 = vpop.permute.xlu1 %8352  ;;  %v1172_v30 = vsel %vm441_vm4, %v1144_v17, %v1146_v23 }
 0x19a   :  { %v8355_v27 = vunpack.i.h.bf16 %v10050_v28  ;;  %v8354_v56 = vunpack.i.l.bf16 %v10050_v28  ;;  %134 = vrot.lane.b32.xlu1 %v10047_v2, %s9302_s20  ;;  %1506 = vmatprep.subr.bf16.mxu1 %v1172_v30 }
 0x19b   :  { %1507 = vmatpush1.bf16.msra.mxu1 %v1171_v19 }
 0x19c   :  { %v351_v35 = vsel %vm339_vm1, %v8345_v43, %v8354_v56  ;;  %v352_v1 = vsel %vm339_vm1, %v8354_v56, %v8355_v27  ;;  %1544 = vmatpush1.bf16.msra.mxu0 %v9523_v55  ;;  %v237_v32 = vpop.permute.xlu0 %236  ;;  %1564 = vmatprep.subr.bf16.mxu1 %v9741_v53  ;;  %v1115_v55 = vpack.c.bf16 %v12586_v15, %v9219_v21 }
 0x19d   :  { %v239_v44 = vpop.permute.xlu1 %238  ;;  %v263_v38 = vsel %vm256_vm3, %v9886_v29, %v237_v32  ;;  %v10070_v18 = vpack.c.bf16 %v352_v1, %v9689_v25  ;;  %v10072_v46 = vpack.c.bf16 %v351_v35, %v9219_v21 }
 0x19e   :  { %1545 = vmatprep.subr.bf16.mxu0 %v263_v38  ;;  %1515 = vmatmul.mubr.bf16.vlgmr.msra.gmra.mrb[4].mxu1 %v9896_v31  ;;  %v10085_v29 = vsel %vm256_vm3, %v237_v32, %v239_v44 }
 0x19f   :  { %431 = vrot.lane.b32.xlu1 %v10070_v18, %s9304_s18  ;;  %429 = vrot.lane.b32.xlu0 %v10072_v46, %s9304_s18 }
 0x1a0   :  { %1546 = vmatpush1.bf16.msra.mxu0 %v9902_v0  ;;  %1565 = vmatpush1.bf16.msra.mxu1 %v9612_v8  ;;  %v422_v43 = vpop.permute.xlu0 %421  ;;  %v8356_v8 = vpack.i.bf16 %v10047_v2, %v9922_v4 }
 0x1a1   :  { %1566 = vmatprep.subr.bf16.mxu1 %v10085_v29  ;;  %v424_v41 = vpop.permute.xlu1 %423  ;;  %7569 = vmatprep.mubr.msk.bf16.mxu1 %vm1437_vm2, %v9591_v3  ;;  %v448_v58 = vsel %vm441_vm4, %v9926_v45, %v422_v43 }
 0x1a2   :  { %v449_v0 = vsel %vm441_vm4, %v422_v43, %v424_v41 }
 0x1a3   :  { %1157 = vrot.lane.b32.xlu1 %v1115_v55, %s9304_s18  ;;  %1155 = vrot.lane.b32.xlu0 %v1114_v24, %s9304_s18 }
 0x1a4   :  { %1567 = vmatpush1.bf16.msra.mxu1 %v263_v38  ;;  %v1148_v36 = vpop.permute.xlu0 %1147 }
 0x1a5   :  { %1568 = vmatprep.subr.bf16.mxu1 %v449_v0  ;;  %v10095_v49 = vpop.permute.xlu1 %1149  ;;  %v1173_v50 = vsel %vm441_vm4, %v1146_v23, %v1148_v36 }
 0x1a6   :  { %v1174_v48 = vsel %vm441_vm4, %v1148_v36, %v10095_v49 }
 0x1a7   :  { %1547 = vmatprep.subr.bf16.mxu0 %v1174_v48  ;;  %512 = vrot.lane.b32.xlu1 %v10030_v7, %s9306_s23 }
 0x1a8   :  { %8357 = vrot.lane.b32.xlu0 %v8356_v8, %s9301_s19  ;;  %1548 = vmatpush1.bf16.msra.mxu0 %v1173_v50  ;;  %v505_v51 = vpop.permute.xlu0 %504 }
 0x1a9   :  { %1569 = vmatpush1.bf16.msra.mxu1 %v448_v58  ;;  %1605 = vmatprep.subr.bf16.mxu0 %v9802_v33  ;;  %v507_v59 = vpop.permute.xlu1 %506  ;;  %v531_v34 = vsel %vm524_vm5, %v9943_v62, %v505_v51 }
 0x1aa   :  { %v532_v5 = vsel %vm524_vm5, %v505_v51, %v507_v59 }
 0x1ab   :  { %1570 = vmatprep.subr.bf16.mxu1 %v532_v5  ;;  %595 = vrot.lane.b32.xlu1 %v10030_v7, %s9307_s24 }
 0x1ac   :  { %514 = vrot.lane.b32.xlu0 %v10033_v63, %s9306_s23  ;;  %1556 = vmatmul.mubr.bf16.vlgmr.msra.gmra.mrb[0].mxu0 %v9896_v31  ;;  %v241_v45 = vpop.permute.xlu0 %240 }
 0x1ad   :  { %1571 = vmatpush1.bf16.msra.mxu1 %v531_v34  ;;  %1606 = vmatpush1.bf16.msra.mxu0 %v9749_v57  ;;  %v10115_v9 = vpop.permute.xlu1 %242  ;;  %v10122_v62 = vsel %vm256_vm3, %v239_v44, %v241_v45 }
 0x1ae   :  { %v10119_v10 = vsel %vm256_vm3, %v241_v45, %v10115_v9  ;;  %7570 = vmatprep.mubr.msk.bf16.mxu0 %vm1437_vm2, %v9591_v3 }
 0x1af   :  { %1607 = vmatprep.subr.bf16.mxu0 %v10119_v10  ;;  %678 = vrot.lane.b32.xlu1 %v10030_v7, %s9299_s5 }
 0x1b0   :  { %597 = vrot.lane.b32.xlu0 %v10033_v63, %s9307_s24  ;;  %v588_v11 = vpop.permute.xlu0 %587 }
 0x1b1   :  { %1608 = vmatpush1.bf16.msra.mxu0 %v10122_v62  ;;  %v590_v52 = vpop.permute.xlu1 %589  ;;  %v614_v60 = vsel %vm607_vm6, %v9962_v13, %v588_v11 }
 0x1b2   :  { %v615_v54 = vsel %vm607_vm6, %v588_v11, %v590_v52 }
 0x1b3   :  { %1572 = vmatprep.subr.bf16.mxu1 %v615_v54  ;;  %761 = vrot.lane.b32.xlu1 %v10030_v7, %s9308_s25 }
 0x1b4   :  { %680 = vrot.lane.b32.xlu0 %v10033_v63, %s9299_s5  ;;  %1573 = vmatpush1.bf16.msra.mxu1 %v614_v60  ;;  %v426_v42 = vpop.permute.xlu0 %425 }
 0x1b5   :  { %v10139_v14 = vpop.permute.xlu1 %427  ;;  %v450_v21 = vsel %vm441_vm4, %v424_v41, %v426_v42 }
 0x1b6   :  { %v451_v17 = vsel %vm441_vm4, %v426_v42, %v10139_v14 }
 0x1b7   :  { %1609 = vmatprep.subr.bf16.mxu0 %v451_v17  ;;  %844 = vrot.lane.b32.xlu1 %v10072_v46, %s9309_s26 }
 0x1b8   :  { %763 = vrot.lane.b32.xlu0 %v10033_v63, %s9308_s25  ;;  %1610 = vmatpush1.bf16.msra.mxu0 %v450_v21  ;;  %v671_v13 = vpop.permute.xlu0 %670 }
 0x1b9   :  { %v673_v22 = vpop.permute.xlu1 %672  ;;  %v697_v16 = vsel %vm690_vm7, %v9984_v39, %v671_v13 }
 0x1ba   :  { %v698_v23 = vsel %vm690_vm7, %v671_v13, %v673_v22 }
 0x1bb   :  { %1574 = vmatprep.subr.bf16.mxu1 %v698_v23  ;;  %927 = vrot.lane.b32.xlu1 %v10030_v7, %s9310_s27 }
 0x1bc   :  { %846 = vrot.lane.b32.xlu0 %v10070_v18, %s9309_s26  ;;  %1575 = vmatpush1.bf16.msra.mxu1 %v697_v16  ;;  %v509_v30 = vpop.permute.xlu0 %508 }
 0x1bd   :  { %v10155_v56 = vpop.permute.xlu1 %510  ;;  %v533_v19 = vsel %vm524_vm5, %v507_v59, %v509_v30 }
 0x1be   :  { %v534_v35 = vsel %vm524_vm5, %v509_v30, %v10155_v56 }
 0x1bf   :  { %1611 = vmatprep.subr.bf16.mxu0 %v534_v35  ;;  %1010 = vrot.lane.b32.xlu1 %v10030_v7, %s9311_s22 }
 0x1c0   :  { %929 = vrot.lane.b32.xlu0 %v10033_v63, %s9310_s27  ;;  %1612 = vmatpush1.bf16.msra.mxu0 %v533_v19  ;;  %v754_v39 = vpop.permute.xlu0 %753 }
 0x1c1   :  { %v756_v1 = vpop.permute.xlu1 %755  ;;  %v780_v32 = vsel %vm773_vm8, %v9995_v47, %v754_v39  ;;  %v1117_v47 = vpack.c.bf16 %v12586_v15, %v9694_v26 }
 0x1c2   :  { %v781_v44 = vsel %vm773_vm8, %v754_v39, %v756_v1 }
 0x1c3   :  { %1576 = vmatprep.subr.bf16.mxu1 %v781_v44 }
 0x1c4   :  { %1012 = vrot.lane.b32.xlu0 %v10033_v63, %s9311_s22  ;;  %1577 = vmatpush1.bf16.msra.mxu1 %v780_v32  ;;  %v592_v38 = vpop.permute.xlu0 %591 }
 0x1c5   :  { %v10169_v18 = vpop.permute.xlu1 %593  ;;  %v616_v46 = vsel %vm607_vm6, %v590_v52, %v592_v38 }
 0x1c6   :  { %v617_v55 = vsel %vm607_vm6, %v592_v38, %v10169_v18 }
 0x1c7   :  { %1613 = vmatprep.subr.bf16.mxu0 %v617_v55 }
 0x1c8   :  { %1614 = vmatpush1.bf16.msra.mxu0 %v616_v46  ;;  %v837_v24 = vpop.permute.xlu0 %836  ;;  %136 = vrot.lane.b32.xlu0 %v12586_v15, %s9302_s20 }
 0x1c9   :  { %v839_v43 = vpop.permute.xlu1 %838  ;;  %v863_v41 = vsel %vm856_vm9, %v10004_v6, %v837_v24 }
 0x1ca   :  { %v864_v36 = vsel %vm856_vm9, %v837_v24, %v839_v43 }
 0x1cb   :  { %1578 = vmatprep.subr.bf16.mxu1 %v864_v36 }
 0x1cc   :  { %1579 = vmatpush1.bf16.msra.mxu1 %v863_v41  ;;  %v675_v0 = vpop.permute.xlu0 %674  ;;  %1161 = vrot.lane.b32.xlu0 %v1117_v47, %s9304_s18 }
 0x1cd   :  { %v10182_v8 = vpop.permute.xlu1 %676  ;;  %v699_v50 = vsel %vm690_vm7, %v673_v22, %v675_v0 }
 0x1ce   :  { %v700_v48 = vsel %vm690_vm7, %v675_v0, %v10182_v8 }
 0x1cf   :  { %1615 = vmatprep.subr.bf16.mxu0 %v700_v48 }
 0x1d0   :  { %1616 = vmatpush1.bf16.msra.mxu0 %v699_v50  ;;  %v920_v58 = vpop.permute.xlu0 %919 }
 0x1d1   :  { %v922_v51 = vpop.permute.xlu1 %921  ;;  %v946_v6 = vsel %vm939_vm10, %v10011_v61, %v920_v58  ;;  %v1116_v61 = vpack.c.bf16 %v12586_v15, %v9689_v25 }
 0x1d2   :  { %v947_v59 = vsel %vm939_vm10, %v920_v58, %v922_v51 }
 0x1d3   :  { %1580 = vmatprep.subr.bf16.mxu1 %v947_v59 }
 0x1d4   :  { %1581 = vmatpush1.bf16.msra.mxu1 %v946_v6  ;;  %v133_v5 = vpop.permute.xlu0 %132 }
 0x1d5   :  { %v152_v34 = vsel %vm138_vm0, %v8350_v12, %v133_v5  ;;  %v758_v45 = vpop.permute.xlu1 %757 }
 0x1d6   :  { %v10194_v11 = vpack.c.bf16 %v152_v34, %v9694_v26  ;;  %v782_v40 = vsel %vm773_vm8, %v756_v1, %v758_v45 }
 0x1d8   :  { %v10196_v52 = vpop.permute.xlu0 %759  ;;  %248 = vrot.lane.b32.xlu1 %v10194_v11, %s9305_s21 }
 0x1d9   :  { %v1003_v60 = vpop.permute.xlu1 %1002  ;;  %v783_v54 = vsel %vm773_vm8, %v758_v45, %v10196_v52 }
 0x1da   :  { %1617 = vmatprep.subr.bf16.mxu0 %v783_v54  ;;  %v1029_v21 = vsel %vm1022_vm11, %v10035_v20, %v1003_v60 }
 0x1db   :  { %1618 = vmatpush1.bf16.msra.mxu0 %v782_v40 }
 0x1dc   :  { %v1005_v12 = vpop.permute.xlu0 %1004  ;;  %1159 = vrot.lane.b32.xlu1 %v1116_v61, %s9304_s18 }
 0x1dd   :  { %v841_v26 = vpop.permute.xlu1 %840  ;;  %v1030_v42 = vsel %vm1022_vm11, %v1003_v60, %v1005_v12 }
 0x1de   :  { %1582 = vmatprep.subr.bf16.mxu1 %v1030_v42  ;;  %v865_v22 = vsel %vm856_vm9, %v839_v43, %v841_v26 }
 0x1df   :  { %1583 = vmatpush1.bf16.msra.mxu1 %v1029_v21 }
 0x1e0   :  { %v10209_v25 = vpop.permute.xlu0 %842  ;;  %1584 = vmatprep.subr.bf16.mxu1 %v9749_v57 }
 0x1e1   :  { %v924_v17 = vpop.permute.xlu1 %923  ;;  %v866_v13 = vsel %vm856_vm9, %v841_v26, %v10209_v25 }
 0x1e2   :  { %1619 = vmatprep.subr.bf16.mxu0 %v866_v13  ;;  %v948_v57 = vsel %vm939_vm10, %v922_v51, %v924_v17 }
 0x1e3   :  { %1585 = vmatpush1.bf16.msra.mxu1 %v9741_v53  ;;  %1620 = vmatpush1.bf16.msra.mxu0 %v865_v22 }
 0x1e4   :  { %v10216_v16 = vpop.permute.xlu0 %925  ;;  %1586 = vmatprep.subr.bf16.mxu1 %v10122_v62 }
 0x1e5   :  { %v1007_v20 = vpop.permute.xlu1 %1006  ;;  %v949_v23 = vsel %vm939_vm10, %v924_v17, %v10216_v16 }
 0x1e6   :  { %1621 = vmatprep.subr.bf16.mxu0 %v949_v23  ;;  %v1031_v35 = vsel %vm1022_vm11, %v1005_v12, %v1007_v20 }
 0x1e7   :  { %1587 = vmatpush1.bf16.msra.mxu1 %v10085_v29  ;;  %1622 = vmatpush1.bf16.msra.mxu0 %v948_v57 }
 0x1e8   :  { %v10223_v30 = vpop.permute.xlu0 %1008 }
 0x1e9   :  { %v1032_v53 = vsel %vm1022_vm11, %v1007_v20, %v10223_v30  ;;  %v1152_v19 = vpop.permute.xlu1 %1151 }
 0x1ea   :  { %1623 = vmatprep.subr.bf16.mxu0 %v1032_v53  ;;  %v1175_v39 = vsel %vm441_vm4, %v10095_v49, %v1152_v19 }
 0x1eb   :  { %1624 = vmatpush1.bf16.msra.mxu0 %v1031_v35 }
 0x1ec   :  { %v1154_v62 = vpop.permute.xlu0 %1153  ;;  %1625 = vmatprep.subr.bf16.mxu0 %v9812_v37 }
 0x1ed   :  { %v1176_v1 = vsel %vm441_vm4, %v1152_v19, %v1154_v62 }
 0x1ee   :  { %1588 = vmatprep.subr.bf16.mxu1 %v1176_v1 }
 0x1ef   :  { %1589 = vmatpush1.bf16.msra.mxu1 %v1175_v39  ;;  %1626 = vmatpush1.bf16.msra.mxu0 %v9802_v33 }
 0x1f0   :  { %1646 = vmatprep.subr.bf16.mxu1 %v10030_v7 }
 0x1f2   :  { %1597 = vmatmul.mubr.bf16.vlgmr.msra.gmra.mrb[8].mxu1 %v9896_v31 }
 0x1f3   :  { %1647 = vmatpush1.bf16.msra.mxu1 %v9812_v37  ;;  %7571 = vmatprep.mubr.msk.bf16.mxu1 %vm1437_vm2, %v9591_v3 }
 0x208   :  { %v10238_v29 = vpop.permute.xlu0 %246  ;;  %v245_v32 = vpop.permute.xlu1 %244 }
 0x209   :  { %v267_v49 = vsel %vm256_vm3, %v10115_v9, %v245_v32  ;;  %v10244_v44 = vsel %vm256_vm3, %v245_v32, %v10238_v29 }
 0x20a   :  { %1627 = vmatprep.subr.bf16.mxu0 %v267_v49  ;;  %1648 = vmatprep.subr.bf16.mxu1 %v10244_v44 }
 0x20b   :  { %1628 = vmatpush1.bf16.msra.mxu0 %v10119_v10  ;;  %1649 = vmatpush1.bf16.msra.mxu1 %v267_v49 }
 0x20c   :  { %v10248_v33 = vpop.permute.xlu1 %134 }
 0x20d   :  { %v153_v37 = vsel %vm138_vm0, %v133_v5, %v10248_v33  ;;  %v9220_v5 = vld [vmem:[%s12573_s0 + $0x68] sm:$0xff] }
 0x20e   :  { %v10253_v38 = vpack.c.bf16 %v153_v37, %v9922_v4 }
 0x210   :  { %250 = vrot.lane.b32.xlu1 %v10253_v38, %s9305_s21 }
 0x211   :  { %v10257_v9 = vpop.permute.xlu1 %431  ;;  %v430_v46 = vpop.permute.xlu0 %429 }
 0x212   :  { %v453_v55 = vsel %vm441_vm4, %v430_v46, %v10257_v9  ;;  %v452_v10 = vsel %vm441_vm4, %v10139_v14, %v430_v46 }
 0x213   :  { %1650 = vmatprep.subr.bf16.mxu1 %v453_v55 }
 0x214   :  { %1651 = vmatpush1.bf16.msra.mxu1 %v452_v10 }
 0x215   :  { %v10263_v24 = vpop.permute.xlu1 %1157  ;;  %v1156_v47 = vpop.permute.xlu0 %1155 }
 0x216   :  { %v1178_v43 = vsel %vm441_vm4, %v1156_v47, %v10263_v24  ;;  %v1177_v41 = vsel %vm441_vm4, %v1154_v62, %v1156_v47  ;;  %v9312_v62 = vmov 0  }
 0x217   :  { %1629 = vmatprep.subr.bf16.mxu0 %v1178_v43  ;;  %8361 = vset.pattern.permute.xlu1 %v9312_v62 }
 0x218   :  { %1630 = vmatpush1.bf16.msra.mxu0 %v1177_v41  ;;  %8437 = vset.pattern.permute.xlu0 %v9312_v62 }
 0x219   :  { %v513_v36 = vpop.permute.xlu1 %512  ;;  %1687 = vmatprep.subr.bf16.mxu0 %v10194_v11 }
 0x21a   :  { %v10269_v0 = vpop.permute.xlu0 %8357  ;;  %v535_v28 = vsel %vm524_vm5, %v10155_v56, %v513_v36 }
 0x21b   :  { %v8360_v50 = vunpack.i.h.bf16 %v10269_v0  ;;  %v8359_v14 = vunpack.i.l.bf16 %v10269_v0  ;;  %1638 = vmatmul.mubr.bf16.vlgmr.msra.gmra.mrb[4].mxu0 %v9896_v31 }
 0x21c   :  { %1688 = vmatpush1.bf16.msra.mxu0 %v10033_v63  ;;  %7572 = vmatprep.mubr.msk.bf16.mxu0 %vm1437_vm2, %v9591_v3 }
 0x21d   :  { %v353_v48 = vsel %vm339_vm1, %v8355_v27, %v8359_v14  ;;  %v354_v58 = vsel %vm339_vm1, %v8359_v14, %v8360_v50  ;;  %v596_v51 = vpop.permute.xlu1 %595 }
 0x21e   :  { %v10283_v6 = vpop.permute.xlu0 %514  ;;  %v387_v59 = vpack.c.bf16 %v354_v58, %v9922_v4  ;;  %v386_v34 = vpack.c.bf16 %v353_v48, %v9220_v5  ;;  %v618_v54 = vsel %vm607_vm6, %v10169_v18, %v596_v51 }
 0x21f   :  { %v536_v45 = vsel %vm524_vm5, %v513_v36, %v10283_v6 }
 0x220   :  { %1652 = vmatprep.subr.bf16.mxu1 %v536_v45  ;;  %435 = vrot.lane.b32.xlu1 %v387_v59, %s9304_s18 }
 0x221   :  { %433 = vrot.lane.b32.xlu0 %v386_v34, %s9304_s18  ;;  %1653 = vmatpush1.bf16.msra.mxu1 %v535_v28  ;;  %v679_v27 = vpop.permute.xlu1 %678 }
 0x222   :  { %v10295_v61 = vpop.permute.xlu0 %597  ;;  %v701_v26 = vsel %vm690_vm7, %v10182_v8, %v679_v27 }
 0x223   :  { %v619_v60 = vsel %vm607_vm6, %v596_v51, %v10295_v61 }
 0x224   :  { %1654 = vmatprep.subr.bf16.mxu1 %v619_v60  ;;  %516 = vrot.lane.b32.xlu1 %v10194_v11, %s9306_s23 }
 0x225   :  { %337 = vrot.lane.b32.xlu0 %v12586_v15, %s9301_s19  ;;  %1655 = vmatpush1.bf16.msra.mxu1 %v618_v54  ;;  %v762_v56 = vpop.permute.xlu1 %761 }
 0x226   :  { %v10305_v40 = vpop.permute.xlu0 %680  ;;  %v784_v17 = vsel %vm773_vm8, %v10196_v52, %v762_v56 }
 0x227   :  { %v702_v12 = vsel %vm690_vm7, %v679_v27, %v10305_v40 }
 0x228   :  { %1656 = vmatprep.subr.bf16.mxu1 %v702_v12  ;;  %599 = vrot.lane.b32.xlu1 %v10194_v11, %s9307_s24 }
 0x229   :  { %518 = vrot.lane.b32.xlu0 %v10253_v38, %s9306_s23  ;;  %1657 = vmatpush1.bf16.msra.mxu1 %v701_v26  ;;  %v845_v18 = vpop.permute.xlu1 %844 }
 0x22a   :  { %v10315_v42 = vpop.permute.xlu0 %763  ;;  %v867_v20 = vsel %vm856_vm9, %v10209_v25, %v845_v18 }
 0x22b   :  { %v785_v21 = vsel %vm773_vm8, %v762_v56, %v10315_v42 }
 0x22c   :  { %1658 = vmatprep.subr.bf16.mxu1 %v785_v21  ;;  %682 = vrot.lane.b32.xlu1 %v10194_v11, %s9299_s5 }
 0x22d   :  { %601 = vrot.lane.b32.xlu0 %v10253_v38, %s9307_s24  ;;  %1659 = vmatpush1.bf16.msra.mxu1 %v784_v17  ;;  %v928_v13 = vpop.permute.xlu1 %927 }
 0x22e   :  { %v10325_v8 = vpop.permute.xlu0 %846  ;;  %v950_v57 = vsel %vm939_vm10, %v10216_v16, %v928_v13 }
 0x22f   :  { %v868_v22 = vsel %vm856_vm9, %v845_v18, %v10325_v8 }
 0x230   :  { %1660 = vmatprep.subr.bf16.mxu1 %v868_v22  ;;  %765 = vrot.lane.b32.xlu1 %v10194_v11, %s9308_s25 }
 0x231   :  { %684 = vrot.lane.b32.xlu0 %v10253_v38, %s9299_s5  ;;  %1661 = vmatpush1.bf16.msra.mxu1 %v867_v20  ;;  %v1011_v53 = vpop.permute.xlu1 %1010 }
 0x232   :  { %v10335_v52 = vpop.permute.xlu0 %929  ;;  %v1033_v35 = vsel %vm1022_vm11, %v10223_v30, %v1011_v53  ;;  %v1118_v30 = vpack.c.bf16 %v12586_v15, %v9922_v4 }
 0x233   :  { %v951_v23 = vsel %vm939_vm10, %v928_v13, %v10335_v52 }
 0x234   :  { %1662 = vmatprep.subr.bf16.mxu1 %v951_v23  ;;  %848 = vrot.lane.b32.xlu1 %v386_v34, %s9309_s26 }
 0x235   :  { %767 = vrot.lane.b32.xlu0 %v10253_v38, %s9308_s25  ;;  %1663 = vmatpush1.bf16.msra.mxu1 %v950_v57 }
 0x236   :  { %v10344_v25 = vpop.permute.xlu0 %1012 }
 0x237   :  { %v1034_v19 = vsel %vm1022_vm11, %v1011_v53, %v10344_v25 }
 0x238   :  { %1664 = vmatprep.subr.bf16.mxu1 %v1034_v19  ;;  %931 = vrot.lane.b32.xlu1 %v10194_v11, %s9310_s27 }
 0x239   :  { %850 = vrot.lane.b32.xlu0 %v387_v59, %s9309_s26  ;;  %1665 = vmatpush1.bf16.msra.mxu1 %v1033_v35 }
 0x23a   :  { %1666 = vmatprep.subr.bf16.mxu1 %v10033_v63  ;;  %v10354_v16 = vpop.permute.xlu0 %136  ;;  %v1119_v63 = vpack.c.bf16 %v12586_v15, %v10047_v2 }
 0x23b   :  { %v154_v39 = vsel %vm138_vm0, %v10248_v33, %v10354_v16  ;;  %v10378_v32 = vpack.c.bf16 %v10354_v16, %v12586_v15 }
 0x23c   :  { %v10360_v1 = vpack.c.bf16 %v154_v39, %v10047_v2  ;;  %1014 = vrot.lane.b32.xlu1 %v10194_v11, %s9311_s22 }
 0x23d   :  { %933 = vrot.lane.b32.xlu0 %v10253_v38, %s9310_s27  ;;  %1667 = vmatpush1.bf16.msra.mxu1 %v10030_v7  ;;  %v10381_v7 = vpop.f32.mrb[0].mxu1 }
 0x23e   :  { %v10383_v49 = vpop.f32.mrb[1].mxu1  ;;  %v10389_v55 = vpop.permute.xlu0 %1161 }
 0x23f   :  { %v1479_v33 = vpop.f32.mrb[2].mxu1 }
 0x240   :  { %252 = vrot.lane.b32.xlu1 %v10360_v1, %s9305_s21  ;;  %v1480_v37 = vpop.f32.mrb[3].mxu1 }
 0x241   :  { %1016 = vrot.lane.b32.xlu0 %v10253_v38, %s9311_s22 }
 0x244   :  { %1165 = vrot.lane.b32.xlu1 %v1119_v63, %s9304_s18 }
 0x245   :  { %1163 = vrot.lane.b32.xlu0 %v1118_v30, %s9304_s18 }
 0x249   :  { %254 = vrot.lane.b32.xlu0 %v10378_v32, %s9305_s21 }
 0x24a   :  { %v249_v46 = vpop.permute.xlu1 %248 }
 0x24b   :  { %v269_v4 = vsel %vm256_vm3, %v10238_v29, %v249_v46 }
 0x24c   :  { %1668 = vmatprep.subr.bf16.mxu1 %v269_v4 }
 0x24d   :  { %1669 = vmatpush1.bf16.msra.mxu1 %v10244_v44 }
 0x24e   :  { %v1160_v10 = vpop.permute.xlu1 %1159 }
 0x24f   :  { %v1180_v47 = vsel %vm441_vm4, %v1160_v10, %v10389_v55  ;;  %v1179_v43 = vsel %vm441_vm4, %v10263_v24, %v1160_v10 }
 0x250   :  { %1670 = vmatprep.subr.bf16.mxu1 %v1180_v47 }
 0x251   :  { %1671 = vmatpush1.bf16.msra.mxu1 %v1179_v43 }
 0x252   :  { %1728 = vmatprep.subr.bf16.mxu1 %v10360_v1 }
 0x254   :  { %1679 = vmatmul.mubr.bf16.vlgmr.msra.gmra.mrb[12].mxu1 %v9896_v31 }
 0x255   :  { %1729 = vmatpush1.bf16.msra.mxu1 %v10253_v38  ;;  %7573 = vmatprep.mubr.msk.bf16.mxu1 %vm1437_vm2, %v9591_v3 }
 0x271   :  { %v10473_v20 = vpop.f32.mrb[4].mxu1 }
 0x272   :  { %v10477_v57 = vpop.f32.mrb[5].mxu1 }
 0x27f   :  { %v10487_v62 = vpop.f32.mrb[0].mxu0 }
 0x280   :  { %v10491_v63 = vpop.f32.mrb[1].mxu0 }
 0x281   :  { %v1561_v30 = vpop.f32.mrb[2].mxu0 }
 0x282   :  { %v10401_v29 = vpop.permute.xlu1 %250  ;;  %v1562_v37 = vpop.f32.mrb[3].mxu0 }
 0x283   :  { %v10405_v44 = vsel %vm256_vm3, %v249_v46, %v10401_v29  ;;  %v1425_v46 = vld [vmem:[%s12575_s2] sm:$0xff]  ;;  %s9314_s2 = smov 96  }
 0x284   :  { %1689 = vmatprep.subr.bf16.mxu0 %v10405_v44 }
 0x285   :  { %1690 = vmatpush1.bf16.msra.mxu0 %v269_v4 }
 0x292   :  { %v10408_v24 = vpop.permute.xlu1 %435 }
 0x293   :  { %v434_v41 = vpop.permute.xlu0 %433 }
 0x294   :  { %v455_v36 = vsel %vm441_vm4, %v434_v41, %v10408_v24  ;;  %v454_v14 = vsel %vm441_vm4, %v10257_v9, %v434_v41 }
 0x295   :  { %1691 = vmatprep.subr.bf16.mxu0 %v455_v36 }
 0x296   :  { %1692 = vmatpush1.bf16.msra.mxu0 %v454_v14  ;;  %v517_v3 = vpop.permute.xlu1 %516 }
 0x297   :  { %v338_v48 = vpop.permute.xlu0 %337  ;;  %v537_v0 = vsel %vm524_vm5, %v10283_v6, %v517_v3 }
 0x298   :  { %v355_v58 = vsel %vm339_vm1, %v8360_v50, %v338_v48  ;;  %v389_v51 = vpack.c.bf16 %v338_v48, %v12586_v15  ;;  %vm9318_vm1 = vmmov 0  }
 0x299   :  { %v388_v59 = vpack.c.bf16 %v355_v58, %v10047_v2 }
 0x29a   :  { %439 = vrot.lane.b32.xlu0 %v389_v51, %s9304_s18  ;;  %v600_v5 = vpop.permute.xlu1 %599 }
 0x29b   :  { %437 = vrot.lane.b32.xlu1 %v388_v59, %s9304_s18  ;;  %v10421_v34 = vpop.permute.xlu0 %518  ;;  %v620_v28 = vsel %vm607_vm6, %v10295_v61, %v600_v5 }
 0x29c   :  { %v538_v9 = vsel %vm524_vm5, %v517_v3, %v10421_v34 }
 0x29d   :  { %1693 = vmatprep.subr.bf16.mxu0 %v538_v9 }
 0x29e   :  { %522 = vrot.lane.b32.xlu0 %v10378_v32, %s9306_s23  ;;  %1694 = vmatpush1.bf16.msra.mxu0 %v537_v0  ;;  %v683_v50 = vpop.permute.xlu1 %682 }
 0x29f   :  { %520 = vrot.lane.b32.xlu1 %v10360_v1, %s9306_s23  ;;  %v10431_v2 = vpop.permute.xlu0 %601  ;;  %v703_v54 = vsel %vm690_vm7, %v10305_v40, %v683_v50 }
 0x2a0   :  { %v621_v45 = vsel %vm607_vm6, %v600_v5, %v10431_v2 }
 0x2a1   :  { %1695 = vmatprep.subr.bf16.mxu0 %v621_v45 }
 0x2a2   :  { %605 = vrot.lane.b32.xlu0 %v10378_v32, %s9307_s24  ;;  %1696 = vmatpush1.bf16.msra.mxu0 %v620_v28  ;;  %v766_v6 = vpop.permute.xlu1 %765 }
 0x2a3   :  { %603 = vrot.lane.b32.xlu1 %v10360_v1, %s9307_s24  ;;  %v10441_v27 = vpop.permute.xlu0 %684  ;;  %v786_v26 = vsel %vm773_vm8, %v10315_v42, %v766_v6  ;;  %s9315_s24 = smov 72  }
 0x2a4   :  { %v704_v60 = vsel %vm690_vm7, %v683_v50, %v10441_v27 }
 0x2a5   :  { %1697 = vmatprep.subr.bf16.mxu0 %v704_v60 }
 0x2a6   :  { %688 = vrot.lane.b32.xlu0 %v10378_v32, %s9299_s5  ;;  %1698 = vmatpush1.bf16.msra.mxu0 %v703_v54  ;;  %v849_v61 = vpop.permute.xlu1 %848 }
 0x2a7   :  { %686 = vrot.lane.b32.xlu1 %v10360_v1, %s9299_s5  ;;  %v10451_v56 = vpop.permute.xlu0 %767  ;;  %v869_v17 = vsel %vm856_vm9, %v10325_v8, %v849_v61  ;;  %v1520_v8 = vpop.f32.mrb[6].mxu1 }
 0x2a8   :  { %v787_v12 = vsel %vm773_vm8, %v766_v6, %v10451_v56  ;;  %v1521_v19 = vpop.f32.mrb[7].mxu1 }
 0x2a9   :  { %1699 = vmatprep.subr.bf16.mxu0 %v787_v12 }
 0x2aa   :  { %771 = vrot.lane.b32.xlu0 %v10378_v32, %s9308_s25  ;;  %1700 = vmatpush1.bf16.msra.mxu0 %v786_v26  ;;  %v932_v40 = vpop.permute.xlu1 %931 }
 0x2ab   :  { %769 = vrot.lane.b32.xlu1 %v10360_v1, %s9308_s25  ;;  %v10461_v18 = vpop.permute.xlu0 %850  ;;  %v952_v23 = vsel %vm939_vm10, %v10335_v52, %v932_v40 }
 0x2ac   :  { %v870_v21 = vsel %vm856_vm9, %v849_v61, %v10461_v18 }
 0x2ad   :  { %1701 = vmatprep.subr.bf16.mxu0 %v870_v21 }
 0x2ae   :  { %854 = vrot.lane.b32.xlu0 %v389_v51, %s9309_s26  ;;  %1702 = vmatpush1.bf16.msra.mxu0 %v869_v17  ;;  %v1015_v42 = vpop.permute.xlu1 %1014 }
 0x2af   :  { %852 = vrot.lane.b32.xlu1 %v388_v59, %s9309_s26  ;;  %v10469_v13 = vpop.permute.xlu0 %933  ;;  %v1035_v52 = vsel %vm1022_vm11, %v10344_v25, %v1015_v42  ;;  %v9313_v25 = vmov 0.0|0.0   ;;  %s9316_s26 = smov 120  }
 0x2b0   :  { %v953_v22 = vsel %vm939_vm10, %v932_v40, %v10469_v13 }
 0x2b1   :  { %1703 = vmatprep.subr.bf16.mxu0 %v953_v22 }
 0x2b2   :  { %937 = vrot.lane.b32.xlu0 %v10378_v32, %s9310_s27  ;;  %1704 = vmatpush1.bf16.msra.mxu0 %v952_v23  ;;  %v253_v39 = vpop.permute.xlu1 %252 }
 0x2b3   :  { %935 = vrot.lane.b32.xlu1 %v10360_v1, %s9310_s27  ;;  %v10483_v53 = vpop.permute.xlu0 %1016  ;;  %v271_v10 = vsel %vm256_vm3, %v10401_v29, %v253_v39  ;;  %s9317_s27 = smov 58  }
 0x2b4   :  { %v1036_v35 = vsel %vm1022_vm11, %v1015_v42, %v10483_v53 }
 0x2b5   :  { %1705 = vmatprep.subr.bf16.mxu0 %v1036_v35 }
 0x2b6   :  { %1020 = vrot.lane.b32.xlu0 %v10378_v32, %s9311_s22  ;;  %1706 = vmatpush1.bf16.msra.mxu0 %v1035_v52  ;;  %v10501_v4 = vpop.permute.xlu1 %1165 }
 0x2b7   :  { %1018 = vrot.lane.b32.xlu1 %v10360_v1, %s9311_s22  ;;  %1707 = vmatprep.subr.bf16.mxu0 %v10253_v38  ;;  %v1164_v33 = vpop.permute.xlu0 %1163 }
 0x2b8   :  { %v1182_v43 = vsel %vm441_vm4, %v1164_v33, %v10501_v4 }
 0x2ba   :  { %1167 = vrot.lane.b32.xlu0 %v9313_v25, %s9304_s18  ;;  %1708 = vmatpush1.bf16.msra.mxu0 %v10194_v11  ;;  %v1181_v11 = vsel %vm441_vm4, %v10389_v55, %v1164_v33 }
 0x2bb   :  { %1428 = vperm.xlu1 %8361, %v1425_v46   ;;  %1709 = vmatprep.subr.bf16.mxu0 %v271_v10  ;;  %v10508_v38 = vpop.permute.xlu0 %254 }
 0x2bc   :  { %v10512_v47 = vsel %vm256_vm3, %v253_v39, %v10508_v38 }
 0x2bd   :  { %1730 = vmatprep.subr.bf16.mxu1 %v10512_v47 }
 0x2be   :  { %1710 = vmatpush1.bf16.msra.mxu0 %v10405_v44  ;;  %1731 = vmatpush1.bf16.msra.mxu1 %v271_v10 }
 0x2bf   :  { %1711 = vmatprep.subr.bf16.mxu0 %v1182_v43 }
 0x2c2   :  { %1712 = vmatpush1.bf16.msra.mxu0 %v1181_v11 }
 0x2c5   :  { %1720 = vmatmul.mubr.bf16.vlgmr.msra.gmra.mrb[8].mxu0 %v9896_v31  ;;  %v10521_v29 = vpop.f32.mrb[8].mxu1 }
 0x2c6   :  { %v10523_v41 = vpop.f32.mrb[9].mxu1 }
 0x2c7   :  { %v1602_v36 = vpop.f32.mrb[10].mxu1 }
 0x2c8   :  { %v1603_v14 = vpop.f32.mrb[11].mxu1 }
 0x2ee   :  { %v10525_v3 = vpop.f32.mrb[4].mxu0 }
 0x2ef   :  { %v10527_v48 = vpop.f32.mrb[5].mxu0 }
 0x2f0   :  { %v1643_v58 = vpop.f32.mrb[6].mxu0 }
 0x2f1   :  { %v1644_v44 = vpop.f32.mrb[7].mxu0 }
 0x30c   :  { %v440_v51 = vpop.permute.xlu0 %439 }
 0x30d   :  { %v438_v59 = vpop.permute.xlu1 %437 }
 0x30e   :  { %v457_v5 = vsel %vm441_vm4, %v438_v59, %v440_v51  ;;  %v456_v55 = vsel %vm441_vm4, %v10408_v24, %v438_v59 }
 0x30f   :  { %1732 = vmatprep.subr.bf16.mxu1 %v457_v5 }
 0x310   :  { %1733 = vmatpush1.bf16.msra.mxu1 %v456_v55  ;;  %v523_v9 = vpop.permute.xlu0 %522 }
 0x311   :  { %v521_v0 = vpop.permute.xlu1 %520 }
 0x312   :  { %v540_v50 = vsel %vm524_vm5, %v521_v0, %v523_v9  ;;  %v539_v45 = vsel %vm524_vm5, %v10421_v34, %v521_v0 }
 0x313   :  { %1734 = vmatprep.subr.bf16.mxu1 %v540_v50 }
 0x314   :  { %1735 = vmatpush1.bf16.msra.mxu1 %v539_v45  ;;  %v606_v28 = vpop.permute.xlu0 %605 }
 0x315   :  { %v604_v6 = vpop.permute.xlu1 %603 }
 0x316   :  { %v623_v60 = vsel %vm607_vm6, %v604_v6, %v606_v28  ;;  %v622_v54 = vsel %vm607_vm6, %v10431_v2, %v604_v6 }
 0x317   :  { %1736 = vmatprep.subr.bf16.mxu1 %v623_v60 }
 0x318   :  { %1737 = vmatpush1.bf16.msra.mxu1 %v622_v54  ;;  %v689_v24 = vpop.permute.xlu0 %688 }
 0x319   :  { %v687_v61 = vpop.permute.xlu1 %686 }
 0x31a   :  { %v706_v12 = vsel %vm690_vm7, %v687_v61, %v689_v24  ;;  %v705_v26 = vsel %vm690_vm7, %v10441_v27, %v687_v61 }
 0x31b   :  { %1738 = vmatprep.subr.bf16.mxu1 %v706_v12 }
 0x31c   :  { %1739 = vmatpush1.bf16.msra.mxu1 %v705_v26  ;;  %v772_v34 = vpop.permute.xlu0 %771 }
 0x31d   :  { %v770_v40 = vpop.permute.xlu1 %769 }
 0x31e   :  { %v789_v21 = vsel %vm773_vm8, %v770_v40, %v772_v34  ;;  %v788_v17 = vsel %vm773_vm8, %v10451_v56, %v770_v40 }
 0x31f   :  { %1740 = vmatprep.subr.bf16.mxu1 %v789_v21 }
 0x320   :  { %1741 = vmatpush1.bf16.msra.mxu1 %v788_v17  ;;  %v855_v2 = vpop.permute.xlu0 %854 }
 0x321   :  { %v853_v42 = vpop.permute.xlu1 %852 }
 0x322   :  { %v872_v22 = vsel %vm856_vm9, %v853_v42, %v855_v2  ;;  %v871_v23 = vsel %vm856_vm9, %v10461_v18, %v853_v42 }
 0x323   :  { %1742 = vmatprep.subr.bf16.mxu1 %v872_v22 }
 0x324   :  { %1743 = vmatpush1.bf16.msra.mxu1 %v871_v23  ;;  %v938_v27 = vpop.permute.xlu0 %937 }
 0x325   :  { %v936_v8 = vpop.permute.xlu1 %935 }
 0x326   :  { %v955_v19 = vsel %vm939_vm10, %v936_v8, %v938_v27  ;;  %v954_v35 = vsel %vm939_vm10, %v10469_v13, %v936_v8 }
 0x327   :  { %1744 = vmatprep.subr.bf16.mxu1 %v955_v19  ;;  %v10550_v56 = vpop.f32.mrb[12].mxu1 }
 0x328   :  { %1745 = vmatpush1.bf16.msra.mxu1 %v954_v35  ;;  %v1021_v39 = vpop.permute.xlu0 %1020  ;;  %v10552_v52 = vpop.f32.mrb[13].mxu1 }
 0x329   :  { %v1019_v30 = vpop.permute.xlu1 %1018  ;;  %v1684_v33 = vpop.f32.mrb[14].mxu1 }
 0x32a   :  { %v1038_v18 = vsel %vm1022_vm11, %v1019_v30, %v1021_v39  ;;  %v1037_v37 = vsel %vm1022_vm11, %v10483_v53, %v1019_v30  ;;  %v1685_v46 = vpop.f32.mrb[15].mxu1 }
 0x32b   :  { %1746 = vmatprep.subr.bf16.mxu1 %v1038_v18 }
 0x32c   :  { %1747 = vmatpush1.bf16.msra.mxu1 %v1037_v37  ;;  %v1168_v13 = vpop.permute.xlu0 %1167 }
 0x32d   :  { %1748 = vmatprep.subr.bf16.mxu1 %v10378_v32  ;;  %v1183_v10 = vsel %vm441_vm4, %v10501_v4, %v1168_v13 }
 0x330   :  { %1749 = vmatpush1.bf16.msra.mxu1 %v10360_v1 }
 0x331   :  { %1750 = vmatprep.subr.bf16.mxu1 %v10508_v38 }
 0x334   :  { %1751 = vmatpush1.bf16.msra.mxu1 %v10512_v47 }
 0x335   :  { %1752 = vmatprep.subr.bf16.mxu1 %v1168_v13 }
 0x338   :  { %1753 = vmatpush1.bf16.msra.mxu1 %v1183_v10 }
 0x33a   :  { %v10563_v43 = vpop.permute.xlu1 %1428 }
 0x33b   :  { %1761 = vmatmul.mubr.bf16.vlgmr.msra.gmra.mrb[16].mxu1 %v9896_v31  ;;  %v1476_v53 = vadd.f32 %v10381_v7, %v10563_v43  ;;  %v1478_v1 = vadd.f32 %v10383_v49, %v10563_v43  ;;  %v10572_v32 = vadd.f32 %v10473_v20, %v10563_v43  ;;  %v10576_v38 = vadd.f32 %v10477_v57, %v10563_v43 }
 0x33c   :  { %v10583_v31 = vadd.f32 %v10487_v62, %v10563_v43  ;;  %v1560_v62 = vadd.f32 %v10491_v63, %v10563_v43  ;;  %v1599_v14 = vadd.f32 %v10521_v29, %v10563_v43  ;;  %v10613_v58 = vadd.f32 %v10523_v41, %v10563_v43 }
 0x33d   :  { %v10578_v4 = vmax.f32 %v1476_v53, 0.0  ;;  %v1770_v47 = vmax.f32 %v1478_v1, 0.0  ;;  %v1771_v11 = vmax.f32 %v10572_v32, 0.0  ;;  %v1772_v49 = vmax.f32 %v10576_v38, 0.0 }
 0x33e   :  { %v1773_v20 = vmax.f32 %v10583_v31, 0.0  ;;  %v10603_v36 = vmax.f32 %v1560_v62, 0.0  ;;  %v10617_v63 = vadd.f32 %v10525_v3, %v10563_v43  ;;  %v10623_v44 = vmax.f32 %v1599_v14, 0.0 }
 0x33f   :  { %1881 = vrot.lane.b32.xlu0 %v10578_v4, %s9314_s2  ;;  %1801 = vrot.lane.b32.xlu1 %v10578_v4, %s9302_s20  ;;  %v8367_v7 = vpack.i.bf16 %v1771_v11, %v1770_v47  ;;  %v1776_v51 = vmax.f32 %v10613_v58, 0.0 }
 0x340   :  { %v8377_v57 = vpack.i.bf16 %v1773_v20, %v1772_v49  ;;  %v1777_v29 = vmax.f32 %v10617_v63, 0.0 }
 0x342   :  { %v8392_v41 = vpack.i.bf16 %v1777_v29, %v1776_v51 }
 0x343   :  { %8368 = vrot.lane.b32.xlu0 %v8367_v7, %s9314_s2  ;;  %8363 = vrot.lane.b32.xlu1 %v8367_v7, %s9302_s20 }
 0x347   :  { %8378 = vrot.lane.b32.xlu0 %v8377_v57, %s9302_s20  ;;  %8373 = vrot.lane.b32.xlu1 %v8367_v7, %s9306_s23 }
 0x34b   :  { %8388 = vrot.lane.b32.xlu0 %v8377_v57, %s9306_s23  ;;  %8383 = vrot.lane.b32.xlu1 %v8377_v57, %s9314_s2 }
 0x34f   :  { %1811 = vrot.lane.b32.xlu0 %v10603_v36, %s9302_s20  ;;  %1964 = vrot.lane.b32.xlu1 %v10578_v4, %s9306_s23 }
 0x353   :  { %1974 = vrot.lane.b32.xlu0 %v10603_v36, %s9306_s23  ;;  %1891 = vrot.lane.b32.xlu1 %v10603_v36, %s9314_s2 }
 0x357   :  { %1893 = vrot.lane.b32.xlu0 %v10623_v44, %s9314_s2  ;;  %1813 = vrot.lane.b32.xlu1 %v10623_v44, %s9302_s20 }
 0x35b   :  { %8393 = vrot.lane.b32.xlu0 %v8392_v41, %s9302_s20  ;;  %1976 = vrot.lane.b32.xlu1 %v10623_v44, %s9306_s23 }
 0x35f   :  { %8403 = vrot.lane.b32.xlu0 %v8392_v41, %s9306_s23  ;;  %8398 = vrot.lane.b32.xlu1 %v8392_v41, %s9314_s2 }
 0x398   :  { %v10640_v3 = vpop.f32.mrb[8].mxu0 }
 0x399   :  { %v10642_v59 = vpop.f32.mrb[9].mxu0 }
 0x39a   :  { %v1725_v5 = vpop.f32.mrb[10].mxu0 }
 0x39b   :  { %v1726_v55 = vpop.f32.mrb[11].mxu0 }
 0x3b1   :  { %v1802_v9 = vpop.permute.xlu1 %1801  ;;  %v1882_v0 = vpop.permute.xlu0 %1881 }
 0x3b5   :  { %v8364_v50 = vpop.permute.xlu1 %8363  ;;  %v8369_v45 = vpop.permute.xlu0 %8368 }
 0x3b6   :  { %v8366_v28 = vunpack.i.h.bf16 %v8364_v50  ;;  %v8365_v6 = vunpack.i.l.bf16 %v8364_v50  ;;  %v8371_v54 = vunpack.i.h.bf16 %v8369_v45  ;;  %v8370_v24 = vunpack.i.l.bf16 %v8369_v45 }
 0x3b8   :  { %v1834_v60 = vsel %vm138_vm0, %v8365_v6, %v8366_v28  ;;  %v1833_v40 = vsel %vm138_vm0, %v1802_v9, %v8365_v6  ;;  %v1917_v23 = vsel %vm1915_vm12, %v8370_v24, %v8371_v54  ;;  %v1916_v1 = vsel %vm1915_vm12, %v1882_v0, %v8370_v24 }
 0x3b9   :  { %v8374_v61 = vpop.permute.xlu1 %8373  ;;  %v8379_v12 = vpop.permute.xlu0 %8378  ;;  %v1866_v21 = vmax.f32 %v1770_v47, %v1834_v60  ;;  %v1865_v19 = vmax.f32 %v10578_v4, %v1833_v40  ;;  %v1642_v60 = vadd.f32 %v10527_v48, %v10563_v43 }
 0x3ba   :  { %v8381_v26 = vunpack.i.h.bf16 %v8379_v12  ;;  %v8380_v34 = vunpack.i.l.bf16 %v8379_v12  ;;  %v8376_v17 = vunpack.i.h.bf16 %v8374_v61  ;;  %v8375_v2 = vunpack.i.l.bf16 %v8374_v61 }
 0x3bb   :  { %v1949_v18 = vmax.f32 %v1866_v21, %v1917_v23  ;;  %v1948_v7 = vmax.f32 %v1865_v19, %v1916_v1 }
 0x3bc   :  { %v1835_v42 = vsel %vm138_vm0, %v8366_v28, %v8380_v34  ;;  %v1836_v22 = vsel %vm138_vm0, %v8380_v34, %v8381_v26  ;;  %v2000_v13 = vsel %vm524_vm5, %v8375_v2, %v8376_v17  ;;  %v10697_v34 = vmax.f32 %v1642_v60, 0.0 }
 0x3bd   :  { %v8384_v27 = vpop.permute.xlu1 %8383  ;;  %v8389_v8 = vpop.permute.xlu0 %8388  ;;  %v1867_v37 = vmax.f32 %v1771_v11, %v1835_v42  ;;  %v1868_v46 = vmax.f32 %v1772_v49, %v1836_v22  ;;  %v10661_v49 = vmax.f32 %v1949_v18, %v2000_v13 }
 0x3be   :  { %v8386_v35 = vunpack.i.h.bf16 %v8384_v27  ;;  %v8385_v39 = vunpack.i.l.bf16 %v8384_v27  ;;  %v8391_v30 = vunpack.i.h.bf16 %v8389_v8  ;;  %v8390_v33 = vunpack.i.l.bf16 %v8389_v8 }
 0x3c0   :  { %v1918_v10 = vsel %vm1915_vm12, %v8371_v54, %v8385_v39  ;;  %v1919_v53 = vsel %vm1915_vm12, %v8385_v39, %v8386_v35  ;;  %v2001_v62 = vsel %vm524_vm5, %v8376_v17, %v8390_v33  ;;  %v2002_v32 = vsel %vm524_vm5, %v8390_v33, %v8391_v30 }
 0x3c1   :  { %v1950_v38 = vmax.f32 %v1867_v37, %v1918_v10  ;;  %v1951_v47 = vmax.f32 %v1868_v46, %v1919_v53  ;;  %v1965_v4 = vpop.permute.xlu1 %1964  ;;  %v10656_v57 = vpop.permute.xlu0 %1811 }
 0x3c2   :  { %v1999_v11 = vsel %vm524_vm5, %v1965_v4, %v8375_v2  ;;  %v1837_v45 = vsel %vm138_vm0, %v8381_v26, %v10656_v57  ;;  %v1681_v2 = vadd.f32 %v10550_v56, %v10563_v43 }
 0x3c3   :  { %v10663_v14 = vmax.f32 %v1950_v38, %v2001_v62  ;;  %v10665_v41 = vmax.f32 %v1951_v47, %v2002_v32  ;;  %v10667_v5 = vmax.f32 %v1948_v7, %v1999_v11  ;;  %v1869_v24 = vmax.f32 %v1773_v20, %v1837_v45 }
 0x3c4   :  { %v10725_v19 = vmax.f32 %v1681_v2, 0.0 }
 0x3c5   :  { %v10669_v55 = vpop.permute.xlu1 %1891  ;;  %v10671_v9 = vpop.permute.xlu0 %1974  ;;  %v8407_v0 = vpack.i.bf16 %v10663_v14, %v10661_v49  ;;  %v8412_v50 = vpack.i.bf16 %v10667_v5, %v10665_v41 }
 0x3c6   :  { %v1920_v54 = vsel %vm1915_vm12, %v8386_v35, %v10669_v55  ;;  %v2003_v31 = vsel %vm524_vm5, %v8391_v30, %v10671_v9 }
 0x3c7   :  { %8408 = vrot.lane.b32.xlu1 %v8407_v0, %s9305_s21  ;;  %8413 = vrot.lane.b32.xlu0 %v8412_v50, %s9305_s21  ;;  %v1952_v61 = vmax.f32 %v1869_v24, %v1920_v54 }
 0x3c9   :  { %v10681_v28 = vpop.permute.xlu1 %1813  ;;  %v10683_v6 = vpop.permute.xlu0 %1893  ;;  %v10708_v40 = vmax.f32 %v1952_v61, %v2003_v31 }
 0x3ca   :  { %v1838_v24 = vsel %vm138_vm0, %v10656_v57, %v10681_v28 }
 0x3cb   :  { %8418 = vrot.lane.b32.xlu1 %v8407_v0, %s9315_s24  ;;  %8423 = vrot.lane.b32.xlu0 %v8412_v50, %s9315_s24 }
 0x3cd   :  { %v10693_v12 = vpop.permute.xlu1 %1976  ;;  %v10695_v26 = vpop.permute.xlu0 %8393 }
 0x3ce   :  { %v8395_v48 = vunpack.i.l.bf16 %v10695_v26  ;;  %v8396_v39 = vunpack.i.h.bf16 %v10695_v26  ;;  %v2004_v63 = vsel %vm524_vm5, %v10671_v9, %v10693_v12 }
 0x3cf   :  { %1819 = vrot.lane.b32.xlu1 %v10697_v34, %s9302_s20  ;;  %1899 = vrot.lane.b32.xlu0 %v10697_v34, %s9314_s2 }
 0x3d0   :  { %v1839_v20 = vsel %vm138_vm0, %v10681_v28, %v8395_v48  ;;  %v1840_v18 = vsel %vm138_vm0, %v8395_v48, %v8396_v39 }
 0x3d1   :  { %v10710_v21 = vpop.permute.xlu1 %8398  ;;  %v10712_v17 = vpop.permute.xlu0 %8403  ;;  %v1871_v23 = vmax.f32 %v10623_v44, %v1839_v20  ;;  %v1683_v44 = vadd.f32 %v10552_v52, %v10563_v43  ;;  %v1872_v52 = vmax.f32 %v1776_v51, %v1840_v18  ;;  %v1870_v20 = vmax.f32 %v10603_v36, %v1838_v24 }
 0x3d2   :  { %v8400_v42 = vunpack.i.l.bf16 %v10710_v21  ;;  %v8405_v22 = vunpack.i.l.bf16 %v10712_v17  ;;  %v8401_v33 = vunpack.i.h.bf16 %v10710_v21  ;;  %v8406_v46 = vunpack.i.h.bf16 %v10712_v17 }
 0x3d3   :  { %1982 = vrot.lane.b32.xlu1 %v10697_v34, %s9306_s23  ;;  %2071 = vrot.lane.b32.xlu0 %v10708_v40, %s9305_s21  ;;  %v10742_v30 = vmax.f32 %v1683_v44, 0.0  ;;  %v1921_v36 = vsel %vm1915_vm12, %v10669_v55, %v10683_v6 }
 0x3d4   :  { %v1922_v27 = vsel %vm1915_vm12, %v10683_v6, %v8400_v42  ;;  %v2005_v56 = vsel %vm524_vm5, %v10693_v12, %v8405_v22  ;;  %v1923_v37 = vsel %vm1915_vm12, %v8400_v42, %v8401_v33  ;;  %v2006_v10 = vsel %vm524_vm5, %v8405_v22, %v8406_v46 }
 0x3d5   :  { %v1954_v8 = vmax.f32 %v1871_v23, %v1922_v27  ;;  %v1955_v13 = vmax.f32 %v1872_v52, %v1923_v37  ;;  %v1953_v27 = vmax.f32 %v1870_v20, %v1921_v36 }
 0x3d7   :  { %v10729_v35 = vmax.f32 %v1954_v8, %v2005_v56  ;;  %2271 = vrot.lane.b32.xlu1 %v10708_v40, %s9315_s24  ;;  %1821 = vrot.lane.b32.xlu0 %v10725_v19, %s9302_s20  ;;  %v10757_v53 = vmax.f32 %v1955_v13, %v2006_v10  ;;  %v10815_v18 = vmax.f32 %v1953_v27, %v2004_v63 }
 0x3d9   :  { %v8427_v52 = vpack.i.bf16 %v10729_v35, %v10815_v18 }
 0x3db   :  { %1901 = vrot.lane.b32.xlu1 %v10725_v19, %s9314_s2  ;;  %1984 = vrot.lane.b32.xlu0 %v10725_v19, %s9306_s23 }
 0x3df   :  { %1823 = vrot.lane.b32.xlu0 %v10742_v30, %s9302_s20 }
 0x3e3   :  { %1903 = vrot.lane.b32.xlu0 %v10742_v30, %s9314_s2 }
 0x3e7   :  { %1986 = vrot.lane.b32.xlu0 %v10742_v30, %s9306_s23 }
 0x3eb   :  { %2077 = vrot.lane.b32.xlu0 %v10757_v53, %s9305_s21 }
 0x3ef   :  { %2277 = vrot.lane.b32.xlu0 %v10757_v53, %s9315_s24 }
 0x40e   :  { %v10763_v58 = vpop.f32.mrb[16].mxu1 }
 0x40f   :  { %v10765_v51 = vpop.f32.mrb[17].mxu1 }
 0x410   :  { %v1766_v1 = vpop.f32.mrb[18].mxu1 }
 0x411   :  { %v1767_v38 = vpop.f32.mrb[19].mxu1 }
 0x439   :  { %v8409_v47 = vpop.permute.xlu1 %8408  ;;  %v8414_v4 = vpop.permute.xlu0 %8413 }
 0x43a   :  { %v8411_v7 = vunpack.i.h.bf16 %v8409_v47  ;;  %v8410_v62 = vunpack.i.l.bf16 %v8409_v47  ;;  %v8416_v32 = vunpack.i.h.bf16 %v8414_v4  ;;  %v8415_v61 = vunpack.i.l.bf16 %v8414_v4 }
 0x43c   :  { %v2099_v11 = vsel %vm256_vm3, %v8410_v62, %v8411_v7  ;;  %v2098_v0 = vsel %vm256_vm3, %v8416_v32, %v8410_v62  ;;  %v2100_v42 = vsel %vm256_vm3, %v8411_v7, %v8415_v61  ;;  %v2736_v7 = vpack.c.bf16 %v12586_v15, %v10708_v40 }
 0x43d   :  { %v10770_v50 = vpack.c.bf16 %v2099_v11, %v10661_v49  ;;  %v10772_v45 = vpop.permute.xlu1 %8418  ;;  %v10774_v60 = vpop.permute.xlu0 %8423  ;;  %v2130_v54 = vpack.c.bf16 %v2098_v0, %v10667_v5  ;;  %v1722_v11 = vadd.f32 %v10640_v3, %v10563_v43  ;;  %v2735_v3 = vpack.c.bf16 %v12586_v15, %v10665_v41 }
 0x43e   :  { %v8420_v26 = vunpack.i.l.bf16 %v10772_v45  ;;  %v8426_v48 = vunpack.i.h.bf16 %v10774_v60  ;;  %v8421_v57 = vunpack.i.h.bf16 %v10772_v45 }
 0x43f   :  { %3071 = vmatprep.subr.bf16.mxu0 %v10770_v50  ;;  %v10876_v0 = vmax.f32 %v1722_v11, 0.0 }
 0x440   :  { %v2298_v31 = vsel %vm2297_vm13, %v8426_v48, %v8420_v26  ;;  %3072 = vmatpush1.bf16.msra.mxu0 %v2130_v54 }
 0x441   :  { %v1820_v21 = vpop.permute.xlu1 %1819  ;;  %v1900_v17 = vpop.permute.xlu0 %1899  ;;  %v2331_v2 = vpack.c.bf16 %v2298_v31, %v10667_v5  ;;  %v10797_v5 = vpack.c.bf16 %v2100_v42, %v10663_v14 }
 0x442   :  { %v1841_v28 = vsel %vm138_vm0, %v8396_v39, %v1820_v21  ;;  %v1924_v23 = vsel %vm1915_vm12, %v8401_v33, %v1900_v17 }
 0x443   :  { %v1873_v22 = vmax.f32 %v1777_v29, %v1841_v28  ;;  %2365 = vrot.lane.b32.xlu0 %v2331_v2, %s9316_s26  ;;  %v2299_v29 = vsel %vm2297_vm13, %v8420_v26, %v8421_v57 }
 0x444   :  { %v2332_v12 = vpack.c.bf16 %v2299_v29, %v10661_v49 }
 0x445   :  { %v1956_v8 = vmax.f32 %v1873_v22, %v1924_v23  ;;  %v1983_v56 = vpop.permute.xlu1 %1982  ;;  %v10799_v44 = vpop.permute.xlu0 %2071 }
 0x446   :  { %v2007_v39 = vsel %vm524_vm5, %v8406_v46, %v1983_v56  ;;  %v2101_v55 = vsel %vm256_vm3, %v8415_v61, %v10799_v44 }
 0x447   :  { %v10808_v6 = vmax.f32 %v1956_v8, %v2007_v39  ;;  %v10811_v33 = vpack.c.bf16 %v2101_v55, %v10665_v41  ;;  %2185 = vrot.lane.b32.xlu0 %v10797_v5, %s9304_s18 }
 0x449   :  { %v10817_v37 = vpop.permute.xlu1 %2271  ;;  %2079 = vrot.lane.b32.xlu1 %v10808_v6, %s9305_s21  ;;  %v10821_v9 = vpop.permute.xlu0 %1821  ;;  %3114 = vmatprep.subr.bf16.mxu1 %v10811_v33 }
 0x44a   :  { %3115 = vmatpush1.bf16.msra.mxu1 %v10797_v5  ;;  %v1842_v46 = vsel %vm138_vm0, %v1820_v21, %v10821_v9 }
 0x44b   :  { %2367 = vrot.lane.b32.xlu0 %v2332_v12, %s9316_s26  ;;  %v1874_v1 = vmax.f32 %v10697_v34, %v1842_v46  ;;  %v8425_v34 = vunpack.i.l.bf16 %v10774_v60 }
 0x44d   :  { %v10831_v13 = vpop.permute.xlu1 %1901  ;;  %8428 = vrot.lane.b32.xlu1 %v8427_v52, %s9305_s21  ;;  %v10839_v38 = vpop.permute.xlu0 %1984  ;;  %v2300_v62 = vsel %vm2297_vm13, %v8421_v57, %v8425_v34  ;;  %v2301_v45 = vsel %vm2297_vm13, %v8425_v34, %v10817_v37 }
 0x44e   :  { %v1925_v10 = vsel %vm1915_vm12, %v1900_v17, %v10831_v13  ;;  %v2008_v47 = vsel %vm524_vm5, %v1983_v56, %v10839_v38  ;;  %v2333_v32 = vpack.c.bf16 %v2300_v62, %v10663_v14  ;;  %v2334_v60 = vpack.c.bf16 %v2301_v45, %v10665_v41 }
 0x44f   :  { %2452 = vrot.lane.b32.xlu0 %v10797_v5, %s9308_s25  ;;  %v1957_v49 = vmax.f32 %v1874_v1, %v1925_v10 }
 0x451   :  { %8433 = vrot.lane.b32.xlu1 %v8427_v52, %s9315_s24  ;;  %v10846_v4 = vmax.f32 %v1957_v49, %v2008_v47  ;;  %v10896_v24 = vpop.permute.xlu0 %1823  ;;  %v1724_v49 = vadd.f32 %v10642_v59, %v10563_v43 }
 0x452   :  { %v1843_v59 = vsel %vm138_vm0, %v10821_v9, %v10896_v24 }
 0x453   :  { %2534 = vrot.lane.b32.xlu0 %v10797_v5, %s9317_s27 }
 0x455   :  { %2181 = vrot.lane.b32.xlu1 %v2130_v54, %s9304_s18  ;;  %v10898_v61 = vpop.permute.xlu0 %1903 }
 0x457   :  { %2081 = vrot.lane.b32.xlu0 %v10846_v4, %s9305_s21 }
 0x459   :  { %2448 = vrot.lane.b32.xlu1 %v2130_v54, %s9308_s25  ;;  %v10900_v26 = vpop.permute.xlu0 %1986 }
 0x45b   :  { %2187 = vrot.lane.b32.xlu0 %v10811_v33, %s9304_s18 }
 0x45d   :  { %2530 = vrot.lane.b32.xlu1 %v2130_v54, %s9317_s27  ;;  %v2734_v54 = vpack.c.bf16 %v12586_v15, %v10663_v14  ;;  %v10902_v48 = vpop.permute.xlu0 %2077  ;;  %v10911_v14 = vld [vmem:[%s12576_s3 + $0x4] ss:$8 sps:$4 sm:$0xff]  }
 0x45e   :  { %7576 = vmatprep.mubr.msk.bf16.mxu0 %vm1437_vm2, %v10911_v14  ;;  %7577 = vmatprep.mubr.msk.bf16.mxu1 %vm1437_vm2, %v10911_v14 }
 0x45f   :  { %2766 = vrot.lane.b32.xlu0 %v2736_v7, %s9316_s26 }
 0x461   :  { %2183 = vrot.lane.b32.xlu1 %v10770_v50, %s9304_s18  ;;  %v10904_v31 = vpop.permute.xlu0 %2277 }
 0x463   :  { %2454 = vrot.lane.b32.xlu0 %v10811_v33, %s9308_s25 }
 0x465   :  { %2369 = vrot.lane.b32.xlu1 %v2333_v32, %s9316_s26  ;;  %v10967_v32 = vmax.f32 %v1724_v49, 0.0 }
 0x467   :  { %2536 = vrot.lane.b32.xlu0 %v10811_v33, %s9317_s27 }
 0x469   :  { %2450 = vrot.lane.b32.xlu1 %v10770_v50, %s9308_s25 }
 0x46d   :  { %2532 = vrot.lane.b32.xlu1 %v10770_v50, %s9317_s27 }
 0x471   :  { %2279 = vrot.lane.b32.xlu1 %v10808_v6, %s9315_s24 }
 0x475   :  { %1825 = vrot.lane.b32.xlu1 %v10876_v0, %s9302_s20 }
 0x479   :  { %2371 = vrot.lane.b32.xlu1 %v2334_v60, %s9316_s26 }
 0x47d   :  { %1905 = vrot.lane.b32.xlu1 %v10876_v0, %s9314_s2 }
 0x481   :  { %1988 = vrot.lane.b32.xlu1 %v10876_v0, %s9306_s23 }
 0x485   :  { %2764 = vrot.lane.b32.xlu1 %v2735_v3, %s9316_s26  ;;  %v1926_v3 = vsel %vm1915_vm12, %v10831_v13, %v10898_v61 }
 0x489   :  { %2762 = vrot.lane.b32.xlu1 %v2734_v54, %s9316_s26 }
 0x48d   :  { %2281 = vrot.lane.b32.xlu1 %v10846_v4, %s9315_s24 }
 0x4b5   :  { %v2366_v41 = vpop.permute.xlu0 %2365 }
 0x4b9   :  { %v10913_v17 = vpop.permute.xlu0 %2185 }
 0x4bb   :  { %v10906_v20 = vpop.permute.xlu1 %2079 }
 0x4bd   :  { %v2368_v8 = vpop.permute.xlu0 %2367 }
 0x4be   :  { %v2400_v54 = vsel %vm2399_vm14, %v2366_v41, %v2368_v8 }
 0x4bf   :  { %v8429_v21 = vpop.permute.xlu1 %8428 }
 0x4c0   :  { %v8431_v2 = vunpack.i.h.bf16 %v8429_v21  ;;  %v8430_v42 = vunpack.i.l.bf16 %v8429_v21  ;;  %v1875_v21 = vmax.f32 %v10725_v19, %v1843_v59 }
 0x4c1   :  { %v10942_v46 = vpop.permute.xlu0 %2452 }
 0x4c2   :  { %v2102_v57 = vsel %vm256_vm3, %v10799_v44, %v8430_v42  ;;  %v2104_v36 = vsel %vm256_vm3, %v8431_v2, %v10902_v48  ;;  %v2103_v52 = vsel %vm256_vm3, %v8430_v42, %v8431_v2  ;;  %v2009_v2 = vsel %vm524_vm5, %v10839_v38, %v10900_v26 }
 0x4c3   :  { %v10922_v28 = vpack.c.bf16 %v2102_v57, %v10708_v40  ;;  %v8434_v22 = vpop.permute.xlu1 %8433  ;;  %v10933_v44 = vpack.c.bf16 %v2104_v36, %v10729_v35  ;;  %v2105_v38 = vsel %vm256_vm3, %v10902_v48, %v10906_v20 }
 0x4c4   :  { %v8436_v23 = vunpack.i.h.bf16 %v8434_v22  ;;  %v8435_v27 = vunpack.i.l.bf16 %v8434_v22  ;;  %v1958_v22 = vmax.f32 %v1875_v21, %v1926_v3  ;;  %v1765_v3 = vadd.f32 %v10765_v51, %v10563_v43 }
 0x4c5   :  { %2538 = vrot.lane.b32.xlu1 %v10922_v28, %s9317_s27  ;;  %2189 = vrot.lane.b32.xlu0 %v10922_v28, %s9304_s18  ;;  %v10956_v1 = vpop.permute.xlu0 %2534 }
 0x4c6   :  { %v2302_v56 = vsel %vm2297_vm13, %v10817_v37, %v8435_v27  ;;  %v2303_v39 = vsel %vm2297_vm13, %v8435_v27, %v8436_v23  ;;  %v2304_v10 = vsel %vm2297_vm13, %v8436_v23, %v10904_v31  ;;  %v10996_v19 = vmax.f32 %v1958_v22, %v2009_v2 }
 0x4c7   :  { %v2182_v63 = vpop.permute.xlu1 %2181  ;;  %v2335_v29 = vpack.c.bf16 %v2302_v56, %v10708_v40  ;;  %v2336_v12 = vpack.c.bf16 %v2303_v39, %v10815_v18  ;;  %v10948_v40 = vpack.c.bf16 %v2103_v52, %v10815_v18  ;;  %v2337_v34 = vpack.c.bf16 %v2304_v10, %v10729_v35 }
 0x4c8   :  { %v11009_v27 = vpack.c.bf16 %v2105_v38, %v10757_v53 }
 0x4c9   :  { %2193 = vrot.lane.b32.xlu1 %v10933_v44, %s9304_s18  ;;  %2373 = vrot.lane.b32.xlu0 %v2335_v29, %s9316_s26  ;;  %v10972_v45 = vpop.permute.xlu0 %2081 }
 0x4cb   :  { %v2449_v55 = vpop.permute.xlu1 %2448 }
 0x4cd   :  { %2375 = vrot.lane.b32.xlu1 %v2336_v12, %s9316_s26  ;;  %2456 = vrot.lane.b32.xlu0 %v10922_v28, %s9308_s25  ;;  %v10994_v13 = vpop.permute.xlu0 %2187 }
 0x4cf   :  { %v2531_v37 = vpop.permute.xlu1 %2530 }
 0x4d1   :  { %2458 = vrot.lane.b32.xlu1 %v10948_v40, %s9308_s25  ;;  %2191 = vrot.lane.b32.xlu0 %v10948_v40, %s9304_s18  ;;  %v11011_v56 = vpop.permute.xlu0 %2766 }
 0x4d3   :  { %v2184_v47 = vpop.permute.xlu1 %2183 }
 0x4d4   :  { %v2216_v7 = vsel %vm441_vm4, %v2184_v47, %v10913_v17  ;;  %v2215_v62 = vsel %vm441_vm4, %v2182_v63, %v2184_v47  ;;  %v11024_v63 = vsel %vm441_vm4, %v10913_v17, %v10994_v13 }
 0x4d5   :  { %2542 = vrot.lane.b32.xlu1 %v10933_v44, %s9317_s27  ;;  %2377 = vrot.lane.b32.xlu0 %v2337_v34, %s9316_s26  ;;  %v11031_v39 = vpop.permute.xlu0 %2454 }
 0x4d6   :  { %3073 = vmatprep.subr.bf16.mxu0 %v2216_v7 }
 0x4d7   :  { %3074 = vmatpush1.bf16.msra.mxu0 %v2215_v62  ;;  %v2370_v11 = vpop.permute.xlu1 %2369  ;;  %v2106_v62 = vsel %vm256_vm3, %v10906_v20, %v10972_v45  ;;  %v2739_v20 = vpack.c.bf16 %v12586_v15, %v10757_v53 }
 0x4d8   :  { %v2401_v60 = vsel %vm2399_vm14, %v2368_v8, %v2370_v11  ;;  %v11094_v59 = vpack.c.bf16 %v2106_v62, %v10808_v6 }
 0x4d9   :  { %1827 = vrot.lane.b32.xlu1 %v10967_v32, %s9302_s20  ;;  %2460 = vrot.lane.b32.xlu0 %v10933_v44, %s9308_s25  ;;  %v11056_v10 = vpop.permute.xlu0 %2536 }
 0x4da   :  { %3075 = vmatprep.subr.bf16.mxu0 %v2401_v60 }
 0x4db   :  { %3076 = vmatpush1.bf16.msra.mxu0 %v2400_v54  ;;  %v2451_v9 = vpop.permute.xlu1 %2450 }
 0x4dc   :  { %v2483_v42 = vsel %vm773_vm8, %v2451_v9, %v10942_v46  ;;  %v2482_v57 = vsel %vm773_vm8, %v2449_v55, %v2451_v9 }
 0x4dd   :  { %1907 = vrot.lane.b32.xlu1 %v10967_v32, %s9314_s2  ;;  %2540 = vrot.lane.b32.xlu0 %v10948_v40, %s9317_s27 }
 0x4de   :  { %3077 = vmatprep.subr.bf16.mxu0 %v2483_v42 }
 0x4df   :  { %3078 = vmatpush1.bf16.msra.mxu0 %v2482_v57  ;;  %v2533_v41 = vpop.permute.xlu1 %2532  ;;  %v11144_v57 = vld [vmem:[%s12576_s3] ss:$8 sps:$4 sm:$0xff]  }
 0x4e0   :  { %v2566_v36 = vsel %vm2564_vm15, %v2533_v41, %v10956_v1  ;;  %v2565_v23 = vsel %vm2564_vm15, %v2531_v37, %v2533_v41  ;;  %v11054_v37 = vsel %vm773_vm8, %v10942_v46, %v11031_v39  ;;  %v11070_v46 = vsel %vm2564_vm15, %v10956_v1, %v11056_v10 }
 0x4e1   :  { %1990 = vrot.lane.b32.xlu1 %v10967_v32, %s9306_s23  ;;  %2083 = vrot.lane.b32.xlu0 %v10996_v19, %s9305_s21  ;;  %v2737_v1 = vpack.c.bf16 %v12586_v15, %v10815_v18 }
 0x4e2   :  { %3079 = vmatprep.subr.bf16.mxu0 %v2566_v36 }
 0x4e3   :  { %3080 = vmatpush1.bf16.msra.mxu0 %v2565_v23  ;;  %v2280_v8 = vpop.permute.xlu1 %2279 }
 0x4e4   :  { %3081 = vmatprep.subr.bf16.mxu0 %v10797_v5  ;;  %v2305_v29 = vsel %vm2297_vm13, %v10904_v31, %v2280_v8 }
 0x4e5   :  { %2462 = vrot.lane.b32.xlu1 %v11009_v27, %s9308_s25  ;;  %2283 = vrot.lane.b32.xlu0 %v10996_v19, %s9315_s24  ;;  %v2338_v55 = vpack.c.bf16 %v2305_v29, %v10757_v53  ;;  %v11122_v53 = vmax.f32 %v1765_v3, 0.0 }
 0x4e7   :  { %3082 = vmatpush1.bf16.msra.mxu0 %v10770_v50  ;;  %v11019_v48 = vpop.permute.xlu1 %1825  ;;  %v1763_v50 = vadd.f32 %v10763_v58, %v10563_v43 }
 0x4e8   :  { %3083 = vmatprep.subr.bf16.mxu0 %v11024_v63  ;;  %v1844_v31 = vsel %vm138_vm0, %v10896_v24, %v11019_v48 }
 0x4e9   :  { %2195 = vrot.lane.b32.xlu0 %v11009_v27, %s9304_s18  ;;  %v11047_v52 = vmax.f32 %v1763_v50, 0.0  ;;  %v1876_v24 = vmax.f32 %v10742_v30, %v1844_v31 }
 0x4eb   :  { %3084 = vmatpush1.bf16.msra.mxu0 %v2216_v7  ;;  %v11036_v12 = vpop.permute.xlu1 %2371 }
 0x4ec   :  { %v11040_v17 = vsel %vm2399_vm14, %v2370_v11, %v11036_v12 }
 0x4ed   :  { %2379 = vrot.lane.b32.xlu0 %v2338_v55, %s9316_s26  ;;  %3085 = vmatprep.subr.bf16.mxu0 %v11040_v17 }
 0x4ef   :  { %3086 = vmatpush1.bf16.msra.mxu0 %v2401_v60  ;;  %v11049_v58 = vpop.permute.xlu1 %1905 }
 0x4f0   :  { %v1927_v49 = vsel %vm1915_vm12, %v10898_v61, %v11049_v58  ;;  %3087 = vmatprep.subr.bf16.mxu0 %v11054_v37 }
 0x4f1   :  { %1829 = vrot.lane.b32.xlu0 %v11047_v52, %s9302_s20  ;;  %v1959_v47 = vmax.f32 %v1876_v24, %v1927_v49 }
 0x4f3   :  { %3088 = vmatpush1.bf16.msra.mxu0 %v2483_v42  ;;  %v11065_v34 = vpop.permute.xlu1 %1988 }
 0x4f4   :  { %v2010_v61 = vsel %vm524_vm5, %v10900_v26, %v11065_v34  ;;  %3089 = vmatprep.subr.bf16.mxu0 %v11070_v46  ;;  %v2738_v26 = vpack.c.bf16 %v12586_v15, %v10729_v35  ;;  %v2740_v35 = vpack.c.bf16 %v12586_v15, %v10808_v6 }
 0x4f5   :  { %v11076_v7 = vmax.f32 %v1959_v47, %v2010_v61  ;;  %2544 = vrot.lane.b32.xlu0 %v11009_v27, %s9317_s27 }
 0x4f7   :  { %3090 = vmatpush1.bf16.msra.mxu0 %v2566_v36  ;;  %2085 = vrot.lane.b32.xlu1 %v11076_v7, %s9305_s21  ;;  %v2765_v30 = vpop.permute.xlu1 %2764 }
 0x4f8   :  { %3091 = vmatprep.subr.bf16.mxu0 %v10811_v33  ;;  %v2793_v43 = vsel %vm2399_vm14, %v2765_v30, %v11011_v56 }
 0x4f9   :  { %2768 = vrot.lane.b32.xlu0 %v2737_v1, %s9316_s26 }
 0x4fb   :  { %3092 = vmatpush1.bf16.msra.mxu0 %v10797_v5  ;;  %2770 = vrot.lane.b32.xlu1 %v2738_v26, %s9316_s26  ;;  %v2763_v11 = vpop.permute.xlu1 %2762 }
 0x4fc   :  { %v2792_v42 = vsel %vm2399_vm14, %v2763_v11, %v2765_v30 }
 0x4fd   :  { %1909 = vrot.lane.b32.xlu0 %v11047_v52, %s9314_s2 }
 0x4ff   :  { %v11098_v18 = vpop.permute.xlu1 %2281  ;;  %2197 = vrot.lane.b32.xlu1 %v11094_v59, %s9304_s18 }
 0x500   :  { %v2306_v5 = vsel %vm2297_vm13, %v2280_v8, %v11098_v18 }
 0x501   :  { %2774 = vrot.lane.b32.xlu0 %v2740_v35, %s9316_s26  ;;  %v2339_v60 = vpack.c.bf16 %v2306_v5, %v10808_v6 }
 0x503   :  { %2772 = vrot.lane.b32.xlu1 %v2739_v20, %s9316_s26 }
 0x505   :  { %2381 = vrot.lane.b32.xlu0 %v2339_v60, %s9316_s26 }
 0x507   :  { %1992 = vrot.lane.b32.xlu1 %v11047_v52, %s9306_s23 }
 0x509   :  { %2464 = vrot.lane.b32.xlu0 %v11094_v59, %s9308_s25 }
 0x50b   :  { %2285 = vrot.lane.b32.xlu1 %v11076_v7, %s9315_s24 }
 0x50f   :  { %2546 = vrot.lane.b32.xlu1 %v11094_v59, %s9317_s27 }
 0x513   :  { %1831 = vrot.lane.b32.xlu1 %v11122_v53, %s9302_s20 }
 0x517   :  { %1911 = vrot.lane.b32.xlu1 %v11122_v53, %s9314_s2 }
 0x51b   :  { %1994 = vrot.lane.b32.xlu1 %v11122_v53, %s9306_s23 }
 0x537   :  { %v2539_v6 = vpop.permute.xlu1 %2538  ;;  %v2190_v54 = vpop.permute.xlu0 %2189 }
 0x538   :  { %v2218_v21 = vsel %vm441_vm4, %v10994_v13, %v2190_v54  ;;  %v2568_v38 = vsel %vm2564_vm15, %v11056_v10, %v2539_v6 }
 0x539   :  { %3093 = vmatprep.subr.bf16.mxu0 %v2218_v21  ;;  %3116 = vmatprep.subr.bf16.mxu1 %v2218_v21 }
 0x53a   :  { %3094 = vmatpush1.bf16.msra.mxu0 %v11024_v63  ;;  %3117 = vmatpush1.bf16.msra.mxu1 %v11024_v63 }
 0x53b   :  { %v11136_v51 = vpop.permute.xlu1 %2193  ;;  %3095 = vmatprep.subr.bf16.mxu0 %v2793_v43  ;;  %v2374_v9 = vpop.permute.xlu0 %2373 }
 0x53c   :  { %v2403_v2 = vsel %vm2399_vm14, %v11036_v12, %v2374_v9 }
 0x53d   :  { %3118 = vmatprep.subr.bf16.mxu1 %v2403_v2 }
 0x53e   :  { %3096 = vmatpush1.bf16.msra.mxu0 %v2792_v42  ;;  %3119 = vmatpush1.bf16.msra.mxu1 %v11040_v17 }
 0x53f   :  { %v2376_v22 = vpop.permute.xlu1 %2375  ;;  %3157 = vmatprep.subr.bf16.mxu0 %v10948_v40  ;;  %v2457_v13 = vpop.permute.xlu0 %2456 }
 0x540   :  { %v2485_v41 = vsel %vm773_vm8, %v11031_v39, %v2457_v13  ;;  %v2404_v55 = vsel %vm2399_vm14, %v2374_v9, %v2376_v22 }
 0x541   :  { %3120 = vmatprep.subr.bf16.mxu1 %v2485_v41  ;;  %3104 = vmatmul.mubr.bf16.vlgmr.msra.gmra.mrb[12].mxu0 %v11144_v57 }
 0x542   :  { %3121 = vmatpush1.bf16.msra.mxu1 %v11054_v37  ;;  %3158 = vmatpush1.bf16.msra.mxu0 %v10922_v28 }
 0x543   :  { %v2459_v36 = vpop.permute.xlu1 %2458  ;;  %v2192_v23 = vpop.permute.xlu0 %2191  ;;  %3122 = vmatprep.subr.bf16.mxu1 %v2568_v38  ;;  %7578 = vmatprep.mubr.msk.bf16.mxu0 %vm1437_vm2, %v10911_v14 }
 0x544   :  { %v2220_v8 = vsel %vm441_vm4, %v2192_v23, %v11136_v51  ;;  %v11160_v63 = vsel %vm441_vm4, %v2190_v54, %v2192_v23  ;;  %v2486_v37 = vsel %vm773_vm8, %v2457_v13, %v2459_v36  ;;  %v2741_v13 = vpack.c.bf16 %v12586_v15, %v10846_v4 }
 0x545   :  { %3159 = vmatprep.subr.bf16.mxu0 %v2220_v8 }
 0x546   :  { %3123 = vmatpush1.bf16.msra.mxu1 %v11070_v46  ;;  %3160 = vmatpush1.bf16.msra.mxu0 %v11160_v63 }
 0x547   :  { %v11164_v29 = vpop.permute.xlu1 %2542  ;;  %v2378_v39 = vpop.permute.xlu0 %2377  ;;  %3124 = vmatprep.subr.bf16.mxu1 %v10922_v28 }
 0x548   :  { %v2405_v50 = vsel %vm2399_vm14, %v2376_v22, %v2378_v39 }
 0x549   :  { %3161 = vmatprep.subr.bf16.mxu0 %v2405_v50 }
 0x54a   :  { %3125 = vmatpush1.bf16.msra.mxu1 %v10811_v33  ;;  %3162 = vmatpush1.bf16.msra.mxu0 %v2404_v55 }
 0x54b   :  { %v11170_v12 = vpop.permute.xlu1 %1827  ;;  %v2461_v17 = vpop.permute.xlu0 %2460  ;;  %3126 = vmatprep.subr.bf16.mxu1 %v11160_v63 }
 0x54c   :  { %v2487_v31 = vsel %vm773_vm8, %v2459_v36, %v2461_v17  ;;  %v1845_v10 = vsel %vm138_vm0, %v11019_v48, %v11170_v12 }
 0x54d   :  { %3163 = vmatprep.subr.bf16.mxu0 %v2487_v31  ;;  %v1877_v61 = vmax.f32 %v10876_v0, %v1845_v10 }
 0x54e   :  { %3127 = vmatpush1.bf16.msra.mxu1 %v2218_v21  ;;  %3164 = vmatpush1.bf16.msra.mxu0 %v2486_v37 }
 0x54f   :  { %v11178_v49 = vpop.permute.xlu1 %1907  ;;  %v2541_v33 = vpop.permute.xlu0 %2540  ;;  %3128 = vmatprep.subr.bf16.mxu1 %v2404_v55 }
 0x550   :  { %v1928_v24 = vsel %vm1915_vm12, %v11049_v58, %v11178_v49  ;;  %v2570_v47 = vsel %vm2564_vm15, %v2541_v33, %v11164_v29  ;;  %v2569_v46 = vsel %vm2564_vm15, %v2539_v6, %v2541_v33  ;;  %v2742_v33 = vpack.c.bf16 %v12586_v15, %v10996_v19 }
 0x551   :  { %3165 = vmatprep.subr.bf16.mxu0 %v2570_v47  ;;  %v1960_v48 = vmax.f32 %v1877_v61, %v1928_v24 }
 0x552   :  { %3129 = vmatpush1.bf16.msra.mxu1 %v2403_v2  ;;  %3166 = vmatpush1.bf16.msra.mxu0 %v2569_v46 }
 0x553   :  { %v11187_v30 = vpop.permute.xlu1 %1990  ;;  %3167 = vmatprep.subr.bf16.mxu0 %v10933_v44  ;;  %v2084_v1 = vpop.permute.xlu0 %2083  ;;  %3130 = vmatprep.subr.bf16.mxu1 %v2486_v37 }
 0x554   :  { %v2011_v58 = vsel %vm524_vm5, %v11065_v34, %v11187_v30  ;;  %v2107_v26 = vsel %vm256_vm3, %v10972_v45, %v2084_v1 }
 0x555   :  { %v11195_v62 = vmax.f32 %v1960_v48, %v2011_v58  ;;  %v11198_v0 = vpack.c.bf16 %v2107_v26, %v10846_v4 }
 0x556   :  { %3131 = vmatpush1.bf16.msra.mxu1 %v2485_v41  ;;  %3168 = vmatpush1.bf16.msra.mxu0 %v10948_v40 }
 0x557   :  { %2087 = vrot.lane.b32.xlu0 %v11195_v62, %s9305_s21  ;;  %2466 = vrot.lane.b32.xlu1 %v11198_v0, %s9308_s25  ;;  %v11205_v11 = vpop.permute.xlu0 %2283 }
 0x558   :  { %3132 = vmatprep.subr.bf16.mxu1 %v2569_v46  ;;  %v2307_v45 = vsel %vm2297_vm13, %v11098_v18, %v11205_v11  ;;  %v11219_v18 = vpop.permute.xlu1 %2462 }
 0x559   :  { %v2340_v5 = vpack.c.bf16 %v2307_v45, %v10846_v4 }
 0x55a   :  { %3133 = vmatpush1.bf16.msra.mxu1 %v2568_v38 }
 0x55b   :  { %1913 = vrot.lane.b32.xlu1 %v12586_v15, %s9314_s2  ;;  %2199 = vrot.lane.b32.xlu0 %v11198_v0, %s9304_s18  ;;  %v2196_v34 = vpop.permute.xlu0 %2195 }
 0x55c   :  { %3134 = vmatprep.subr.bf16.mxu1 %v10948_v40  ;;  %v2221_v35 = vsel %vm441_vm4, %v11136_v51, %v2196_v34  ;;  %v11226_v40 = vsel %vm773_vm8, %v2461_v17, %v11219_v18 }
 0x55d   :  { %3169 = vmatprep.subr.bf16.mxu0 %v2221_v35 }
 0x55e   :  { %3135 = vmatpush1.bf16.msra.mxu1 %v10922_v28  ;;  %3170 = vmatpush1.bf16.msra.mxu0 %v2220_v8 }
 0x55f   :  { %2383 = vrot.lane.b32.xlu0 %v2340_v5, %s9316_s26  ;;  %v2380_v20 = vpop.permute.xlu0 %2379  ;;  %3136 = vmatprep.subr.bf16.mxu1 %v2220_v8 }
 0x560   :  { %v2406_v60 = vsel %vm2399_vm14, %v2378_v39, %v2380_v20 }
 0x561   :  { %3171 = vmatprep.subr.bf16.mxu0 %v2406_v60 }
 0x562   :  { %3137 = vmatpush1.bf16.msra.mxu1 %v11160_v63  ;;  %3172 = vmatpush1.bf16.msra.mxu0 %v2405_v50 }
 0x563   :  { %2287 = vrot.lane.b32.xlu0 %v11195_v62, %s9315_s24  ;;  %3173 = vmatprep.subr.bf16.mxu0 %v11226_v40  ;;  %v11231_v28 = vpop.permute.xlu0 %1829 }
 0x564   :  { %v1846_v4 = vsel %vm138_vm0, %v11170_v12, %v11231_v28 }
 0x566   :  { %3174 = vmatpush1.bf16.msra.mxu0 %v2487_v31 }
 0x567   :  { %2548 = vrot.lane.b32.xlu0 %v11198_v0, %s9317_s27  ;;  %v11235_v3 = vpop.permute.xlu0 %2544 }
 0x568   :  { %v11240_v6 = vsel %vm2564_vm15, %v11164_v29, %v11235_v3  ;;  %v1878_v29 = vmax.f32 %v10967_v32, %v1846_v4 }
 0x569   :  { %v11242_v54 = vpop.permute.xlu1 %2085  ;;  %3175 = vmatprep.subr.bf16.mxu0 %v11240_v6 }
 0x56a   :  { %v2108_v21 = vsel %vm256_vm3, %v2084_v1, %v11242_v54  ;;  %3176 = vmatpush1.bf16.msra.mxu0 %v2570_v47 }
 0x56b   :  { %v11248_v43 = vpack.c.bf16 %v2108_v21, %v10996_v19  ;;  %1996 = vrot.lane.b32.xlu0 %v12586_v15, %s9306_s23  ;;  %3177 = vmatprep.subr.bf16.mxu0 %v11009_v27  ;;  %v2769_v51 = vpop.permute.xlu0 %2768 }
 0x56c   :  { %v2794_v22 = vsel %vm2399_vm14, %v11011_v56, %v2769_v51 }
 0x56d   :  { %v2771_v9 = vpop.permute.xlu1 %2770  ;;  %2201 = vrot.lane.b32.xlu1 %v11248_v43, %s9304_s18 }
 0x56e   :  { %3178 = vmatpush1.bf16.msra.mxu0 %v10933_v44  ;;  %v2795_v2 = vsel %vm2399_vm14, %v2769_v51, %v2771_v9 }
 0x56f   :  { %v1910_v42 = vpop.permute.xlu0 %1909  ;;  %3138 = vmatprep.subr.bf16.mxu1 %v2795_v2 }
 0x570   :  { %3139 = vmatpush1.bf16.msra.mxu1 %v2794_v22  ;;  %v1929_v23 = vsel %vm1915_vm12, %v11178_v49, %v1910_v42 }
 0x571   :  { %v11261_v41 = vpop.permute.xlu1 %2197  ;;  %2776 = vrot.lane.b32.xlu1 %v2741_v13, %s9316_s26  ;;  %3200 = vmatprep.subr.bf16.mxu1 %v11009_v27  ;;  %v1961_v50 = vmax.f32 %v1878_v29, %v1929_v23 }
 0x572   :  { %v11267_v38 = vsel %vm441_vm4, %v2196_v34, %v11261_v41 }
 0x573   :  { %3179 = vmatprep.subr.bf16.mxu0 %v11267_v38  ;;  %v11270_v36 = vpop.permute.xlu0 %2774  ;;  %3147 = vmatmul.mubr.bf16.vlgmr.msra.gmra.mrb[20].mxu1 %v11144_v57 }
 0x574   :  { %3180 = vmatpush1.bf16.msra.mxu0 %v2221_v35  ;;  %3201 = vmatpush1.bf16.msra.mxu1 %v10933_v44 }
 0x575   :  { %v2773_v56 = vpop.permute.xlu1 %2772  ;;  %3202 = vmatprep.subr.bf16.mxu1 %v11267_v38  ;;  %7579 = vmatprep.mubr.msk.bf16.mxu1 %vm1437_vm2, %v10911_v14 }
 0x576   :  { %v2797_v8 = vsel %vm2399_vm14, %v2773_v56, %v11270_v36  ;;  %v2796_v63 = vsel %vm2399_vm14, %v2771_v9, %v2773_v56 }
 0x577   :  { %3181 = vmatprep.subr.bf16.mxu0 %v2797_v8  ;;  %v2382_v39 = vpop.permute.xlu0 %2381 }
 0x578   :  { %3182 = vmatpush1.bf16.msra.mxu0 %v2796_v63  ;;  %3203 = vmatpush1.bf16.msra.mxu1 %v2221_v35  ;;  %v2407_v44 = vsel %vm2399_vm14, %v2380_v20, %v2382_v39 }
 0x579   :  { %v1993_v55 = vpop.permute.xlu1 %1992  ;;  %3204 = vmatprep.subr.bf16.mxu1 %v2407_v44  ;;  %3243 = vmatprep.subr.bf16.mxu0 %v11198_v0 }
 0x57a   :  { %v2012_v12 = vsel %vm524_vm5, %v11187_v30, %v1993_v55 }
 0x57b   :  { %v11290_v17 = vmax.f32 %v1961_v50, %v2012_v12  ;;  %v2465_v31 = vpop.permute.xlu0 %2464  ;;  %3190 = vmatmul.mubr.bf16.vlgmr.msra.gmra.mrb[16].mxu0 %v11144_v57 }
 0x57c   :  { %3205 = vmatpush1.bf16.msra.mxu1 %v2406_v60  ;;  %3244 = vmatpush1.bf16.msra.mxu0 %v11094_v59  ;;  %v2489_v32 = vsel %vm773_vm8, %v11219_v18, %v2465_v31 }
 0x57d   :  { %v2286_v37 = vpop.permute.xlu1 %2285  ;;  %2089 = vrot.lane.b32.xlu0 %v11290_v17, %s9305_s21  ;;  %3206 = vmatprep.subr.bf16.mxu1 %v2489_v32 }
 0x57e   :  { %v2308_v10 = vsel %vm2297_vm13, %v11205_v11, %v2286_v37  ;;  %7580 = vmatprep.mubr.msk.bf16.mxu0 %vm1437_vm2, %v10911_v14 }
 0x57f   :  { %v2341_v49 = vpack.c.bf16 %v2308_v10, %v10996_v19 }
 0x580   :  { %3207 = vmatpush1.bf16.msra.mxu1 %v11226_v40 }
 0x581   :  { %v2547_v24 = vpop.permute.xlu1 %2546  ;;  %2385 = vrot.lane.b32.xlu1 %v2341_v49, %s9316_s26  ;;  %2778 = vrot.lane.b32.xlu0 %v2742_v33, %s9316_s26 }
 0x582   :  { %v2572_v47 = vsel %vm2564_vm15, %v11235_v3, %v2547_v24 }
 0x583   :  { %3208 = vmatprep.subr.bf16.mxu1 %v2572_v47 }
 0x584   :  { %3209 = vmatpush1.bf16.msra.mxu1 %v11240_v6 }
 0x585   :  { %v1832_v46 = vpop.permute.xlu1 %1831  ;;  %2468 = vrot.lane.b32.xlu1 %v11248_v43, %s9308_s25  ;;  %2289 = vrot.lane.b32.xlu0 %v11290_v17, %s9315_s24 }
 0x586   :  { %3210 = vmatprep.subr.bf16.mxu1 %v11094_v59  ;;  %v1847_v19 = vsel %vm138_vm0, %v11231_v28, %v1832_v46 }
 0x587   :  { %v1879_v30 = vmax.f32 %v11047_v52, %v1847_v19 }
 0x588   :  { %3211 = vmatpush1.bf16.msra.mxu1 %v11009_v27 }
 0x589   :  { %v1912_v61 = vpop.permute.xlu1 %1911  ;;  %2550 = vrot.lane.b32.xlu0 %v11248_v43, %s9317_s27 }
 0x58a   :  { %v1930_v48 = vsel %vm1915_vm12, %v1910_v42, %v1912_v61 }
 0x58b   :  { %v1962_v1 = vmax.f32 %v1879_v30, %v1930_v48 }
 0x58d   :  { %v1995_v58 = vpop.permute.xlu1 %1994 }
 0x58e   :  { %v2013_v26 = vsel %vm524_vm5, %v1993_v55, %v1995_v58 }
 0x58f   :  { %v11324_v11 = vmax.f32 %v1962_v1, %v2013_v26 }
 0x591   :  { %2091 = vrot.lane.b32.xlu0 %v11324_v11, %s9305_s21 }
 0x595   :  { %2291 = vrot.lane.b32.xlu0 %v11324_v11, %s9315_s24 }
 0x5c9   :  { %v2088_v27 = vpop.permute.xlu0 %2087  ;;  %v2467_v5 = vpop.permute.xlu1 %2466 }
 0x5ca   :  { %v2109_v45 = vsel %vm256_vm3, %v11242_v54, %v2088_v27  ;;  %v2490_v60 = vsel %vm773_vm8, %v2465_v31, %v2467_v5  ;;  %v1848_v54 = vsel %vm138_vm0, %v1832_v46, %v10354_v16  ;;  %vm5937_vm0 = vcmask 1040384  }
 0x5cb   :  { %v11333_v34 = vpack.c.bf16 %v2109_v45, %v11076_v7  ;;  %v1880_v2 = vmax.f32 %v11122_v53, %v1848_v54  ;;  %v2743_v53 = vpack.c.bf16 %v12586_v15, %v11076_v7 }
 0x5cd   :  { %2203 = vrot.lane.b32.xlu1 %v11333_v34, %s9304_s18  ;;  %v2200_v52 = vpop.permute.xlu0 %2199  ;;  %v1914_v3 = vpop.permute.xlu1 %1913 }
 0x5ce   :  { %v2223_v35 = vsel %vm441_vm4, %v11261_v41, %v2200_v52  ;;  %v1931_v51 = vsel %vm1915_vm12, %v1912_v61, %v1914_v3 }
 0x5cf   :  { %3212 = vmatprep.subr.bf16.mxu1 %v2223_v35  ;;  %v1963_v42 = vmax.f32 %v1880_v2, %v1931_v51 }
 0x5d0   :  { %3213 = vmatpush1.bf16.msra.mxu1 %v11267_v38 }
 0x5d1   :  { %v2384_v18 = vpop.permute.xlu0 %2383 }
 0x5d2   :  { %v2408_v20 = vsel %vm2399_vm14, %v2382_v39, %v2384_v18 }
 0x5d3   :  { %3214 = vmatprep.subr.bf16.mxu1 %v2408_v20 }
 0x5d4   :  { %3215 = vmatpush1.bf16.msra.mxu1 %v2407_v44  ;;  %v2744_v44 = vpack.c.bf16 %v12586_v15, %v11195_v62 }
 0x5d5   :  { %v2288_v40 = vpop.permute.xlu0 %2287  ;;  %3216 = vmatprep.subr.bf16.mxu1 %v2490_v60 }
 0x5d6   :  { %v2309_v28 = vsel %vm2297_vm13, %v2286_v37, %v2288_v40 }
 0x5d7   :  { %v2342_v6 = vpack.c.bf16 %v2309_v28, %v11076_v7  ;;  %v2745_v28 = vpack.c.bf16 %v12586_v15, %v11290_v17 }
 0x5d8   :  { %3217 = vmatpush1.bf16.msra.mxu1 %v2489_v32 }
 0x5d9   :  { %2387 = vrot.lane.b32.xlu1 %v2342_v6, %s9316_s26  ;;  %v2549_v21 = vpop.permute.xlu0 %2548 }
 0x5da   :  { %v2573_v9 = vsel %vm2564_vm15, %v2547_v24, %v2549_v21 }
 0x5db   :  { %3218 = vmatprep.subr.bf16.mxu1 %v2573_v9 }
 0x5dc   :  { %3219 = vmatpush1.bf16.msra.mxu1 %v2572_v47 }
 0x5dd   :  { %2470 = vrot.lane.b32.xlu1 %v11333_v34, %s9308_s25  ;;  %v1997_v22 = vpop.permute.xlu0 %1996  ;;  %3220 = vmatprep.subr.bf16.mxu1 %v11198_v0 }
 0x5de   :  { %v2014_v16 = vsel %vm524_vm5, %v1995_v58, %v1997_v22 }
 0x5df   :  { %v11354_v13 = vmax.f32 %v1963_v42, %v2014_v16  ;;  %v2202_v41 = vpop.permute.xlu1 %2201 }
 0x5e0   :  { %3221 = vmatpush1.bf16.msra.mxu1 %v11094_v59  ;;  %v2224_v38 = vsel %vm441_vm4, %v2200_v52, %v2202_v41 }
 0x5e1   :  { %3245 = vmatprep.subr.bf16.mxu0 %v2224_v38  ;;  %2552 = vrot.lane.b32.xlu1 %v11333_v34, %s9317_s27 }
 0x5e2   :  { %2093 = vrot.lane.b32.xlu0 %v11354_v13, %s9305_s21  ;;  %3222 = vmatprep.subr.bf16.mxu1 %v2224_v38 }
 0x5e3   :  { %3246 = vmatpush1.bf16.msra.mxu0 %v2223_v35  ;;  %v2777_v59 = vpop.permute.xlu1 %2776 }
 0x5e4   :  { %3223 = vmatpush1.bf16.msra.mxu1 %v2223_v35  ;;  %v2798_v39 = vsel %vm2399_vm14, %v11270_v36, %v2777_v59 }
 0x5e6   :  { %2293 = vrot.lane.b32.xlu0 %v11354_v13, %s9315_s24 }
 0x5ea   :  { %2780 = vrot.lane.b32.xlu0 %v2743_v53, %s9316_s26 }
 0x5ee   :  { %2095 = vrot.lane.b32.xlu0 %v12586_v15, %s9305_s21 }
 0x5ef   :  { %v2090_v4 = vpop.permute.xlu0 %2089 }
 0x5f0   :  { %v2110_v56 = vsel %vm256_vm3, %v2088_v27, %v2090_v4 }
 0x5f1   :  { %v11371_v23 = vpack.c.bf16 %v2110_v56, %v11195_v62 }
 0x5f3   :  { %v2386_v8 = vpop.permute.xlu1 %2385  ;;  %2205 = vrot.lane.b32.xlu1 %v11371_v23, %s9304_s18  ;;  %v11375_v63 = vpop.permute.xlu0 %2778 }
 0x5f4   :  { %v2799_v7 = vsel %vm2399_vm14, %v2777_v59, %v11375_v63  ;;  %v2409_v29 = vsel %vm2399_vm14, %v2384_v18, %v2386_v8 }
 0x5f5   :  { %3224 = vmatprep.subr.bf16.mxu1 %v2799_v7  ;;  %3247 = vmatprep.subr.bf16.mxu0 %v2409_v29 }
 0x5f6   :  { %3225 = vmatpush1.bf16.msra.mxu1 %v2798_v39  ;;  %3248 = vmatpush1.bf16.msra.mxu0 %v2408_v20 }
 0x5f7   :  { %v2469_v50 = vpop.permute.xlu1 %2468  ;;  %2782 = vrot.lane.b32.xlu1 %v2744_v44, %s9316_s26  ;;  %v2290_v55 = vpop.permute.xlu0 %2289  ;;  %3286 = vmatprep.subr.bf16.mxu1 %v11333_v34 }
 0x5f8   :  { %v2310_v12 = vsel %vm2297_vm13, %v2288_v40, %v2290_v55  ;;  %v2491_v31 = vsel %vm773_vm8, %v2467_v5, %v2469_v50 }
 0x5f9   :  { %v2343_v32 = vpack.c.bf16 %v2310_v12, %v11195_v62  ;;  %3249 = vmatprep.subr.bf16.mxu0 %v2491_v31  ;;  %3233 = vmatmul.mubr.bf16.vlgmr.msra.gmra.mrb[24].mxu1 %v11144_v57 }
 0x5fa   :  { %3250 = vmatpush1.bf16.msra.mxu0 %v2490_v60  ;;  %3287 = vmatpush1.bf16.msra.mxu1 %v11248_v43 }
 0x5fb   :  { %2295 = vrot.lane.b32.xlu1 %v12586_v15, %s9315_s24  ;;  %2389 = vrot.lane.b32.xlu0 %v2343_v32, %s9316_s26  ;;  %v2551_v36 = vpop.permute.xlu0 %2550 }
 0x5fc   :  { %v2574_v37 = vsel %vm2564_vm15, %v2549_v21, %v2551_v36  ;;  %7581 = vmatprep.mubr.msk.bf16.mxu1 %vm1437_vm2, %v10911_v14 }
 0x5fd   :  { %3251 = vmatprep.subr.bf16.mxu0 %v2574_v37 }
 0x5fe   :  { %3252 = vmatpush1.bf16.msra.mxu0 %v2573_v9 }
 0x5ff   :  { %2472 = vrot.lane.b32.xlu1 %v11371_v23, %s9308_s25  ;;  %2554 = vrot.lane.b32.xlu0 %v11371_v23, %s9317_s27 }
 0x600   :  { %3253 = vmatprep.subr.bf16.mxu0 %v11248_v43 }
 0x602   :  { %3254 = vmatpush1.bf16.msra.mxu0 %v11198_v0 }
 0x603   :  { %v2092_v62 = vpop.permute.xlu0 %2091 }
 0x604   :  { %v2111_v10 = vsel %vm256_vm3, %v2090_v4, %v2092_v62 }
 0x605   :  { %v11405_v49 = vpack.c.bf16 %v2111_v10, %v11290_v17 }
 0x607   :  { %2207 = vrot.lane.b32.xlu1 %v11405_v49, %s9304_s18  ;;  %v2292_v33 = vpop.permute.xlu0 %2291 }
 0x608   :  { %v2311_v24 = vsel %vm2297_vm13, %v2290_v55, %v2292_v33 }
 0x609   :  { %v2344_v47 = vpack.c.bf16 %v2311_v24, %v11290_v17 }
 0x60b   :  { %2474 = vrot.lane.b32.xlu1 %v11405_v49, %s9308_s25  ;;  %2391 = vrot.lane.b32.xlu0 %v2344_v47, %s9316_s26 }
 0x60f   :  { %2556 = vrot.lane.b32.xlu1 %v11405_v49, %s9317_s27 }
 0x614   :  { %v11417_v19 = vpop.f32.mrb[12].mxu0 }
 0x615   :  { %v11419_v48 = vpop.f32.mrb[13].mxu0 }
 0x616   :  { %v11424_v1 = vpop.f32.mrb[14].mxu0 }
 0x617   :  { %v11427_v58 = vpop.f32.mrb[15].mxu0 }
 0x63f   :  { %v2204_v0 = vpop.permute.xlu1 %2203 }
 0x640   :  { %v2225_v46 = vsel %vm441_vm4, %v2202_v41, %v2204_v0 }
 0x641   :  { %3255 = vmatprep.subr.bf16.mxu0 %v2225_v46 }
 0x642   :  { %3256 = vmatpush1.bf16.msra.mxu0 %v2224_v38  ;;  %v3047_v38 = vld [vmem:[%s12577_s4] sm:$0xff] }
 0x646   :  { %v11470_v17 = vpop.f32.mrb[20].mxu1 }
 0x647   :  { %v11475_v9 = vpop.f32.mrb[21].mxu1 }
 0x648   :  { %v11478_v42 = vpop.f32.mrb[22].mxu1 }
 0x64b   :  { %v2388_v61 = vpop.permute.xlu1 %2387 }
 0x64c   :  { %v11422_v30 = vsel %vm2399_vm14, %v2386_v8, %v2388_v61 }
 0x64d   :  { %3257 = vmatprep.subr.bf16.mxu0 %v11422_v30 }
 0x64e   :  { %3258 = vmatpush1.bf16.msra.mxu0 %v2409_v29  ;;  %v11480_v22 = vpop.f32.mrb[16].mxu0 }
 0x64f   :  { %v11429_v26 = vpop.permute.xlu1 %2470  ;;  %v11486_v16 = vpop.f32.mrb[17].mxu0 }
 0x650   :  { %v11433_v27 = vsel %vm773_vm8, %v2469_v50, %v11429_v26  ;;  %v2747_v50 = vpack.c.bf16 %v12586_v15, %v11354_v13  ;;  %v11527_v32 = vpop.f32.mrb[18].mxu0 }
 0x651   :  { %3259 = vmatprep.subr.bf16.mxu0 %v11433_v27 }
 0x652   :  { %3260 = vmatpush1.bf16.msra.mxu0 %v2491_v31  ;;  %v3048_v31 = vld [vmem:[%s12577_s4 + $0x8] sm:$0xff] }
 0x653   :  { %v11436_v45 = vpop.permute.xlu1 %2552 }
 0x654   :  { %v2094_v52 = vpop.permute.xlu0 %2093  ;;  %v11440_v35 = vsel %vm2564_vm15, %v2551_v36, %v11436_v45 }
 0x655   :  { %v2112_v5 = vsel %vm256_vm3, %v2092_v62, %v2094_v52  ;;  %3261 = vmatprep.subr.bf16.mxu0 %v11440_v35 }
 0x656   :  { %v11445_v18 = vpack.c.bf16 %v2112_v5, %v11324_v11  ;;  %3262 = vmatpush1.bf16.msra.mxu0 %v2574_v37 }
 0x657   :  { %3263 = vmatprep.subr.bf16.mxu0 %v11333_v34 }
 0x658   :  { %2476 = vrot.lane.b32.xlu1 %v11445_v18, %s9308_s25  ;;  %2209 = vrot.lane.b32.xlu0 %v11445_v18, %s9304_s18  ;;  %v2294_v20 = vpop.permute.xlu0 %2293 }
 0x659   :  { %v2312_v60 = vsel %vm2297_vm13, %v2292_v33, %v2294_v20 }
 0x65a   :  { %v2345_v40 = vpack.c.bf16 %v2312_v60, %v11324_v11  ;;  %3264 = vmatpush1.bf16.msra.mxu0 %v11248_v43  ;;  %v2746_v43 = vpack.c.bf16 %v12586_v15, %v11324_v11  ;;  %v11484_v11 = vpop.f32.mrb[23].mxu1 }
 0x65c   :  { %2784 = vrot.lane.b32.xlu1 %v2745_v28, %s9316_s26  ;;  %2393 = vrot.lane.b32.xlu0 %v2345_v40, %s9316_s26  ;;  %v2781_v3 = vpop.permute.xlu0 %2780 }
 0x65d   :  { %v2800_v59 = vsel %vm2399_vm14, %v11375_v63, %v2781_v3 }
 0x660   :  { %2558 = vrot.lane.b32.xlu0 %v11445_v18, %s9317_s27  ;;  %v11461_v6 = vpop.permute.xlu0 %2095 }
 0x661   :  { %12618 = vst [vmem:[#allocation12_spill] sm:$0xff] %v11461_v6  ;;  %v2113_v54 = vsel %vm256_vm3, %v2094_v52, %v11461_v6  ;;  %v11499_v4 = vpack.c.bf16 %v11461_v6, %v12586_v15 }
 0x662   :  { %v11466_v21 = vpack.c.bf16 %v2113_v54, %v11354_v13 }
 0x664   :  { %2786 = vrot.lane.b32.xlu0 %v2746_v43, %s9316_s26  ;;  %2211 = vrot.lane.b32.xlu1 %v11466_v21, %s9304_s18  ;;  %v9221_v43 = vld [vmem:[%s12576_s3 + $0x4] ss:$8 sps:$4 sm:$0xff]  }
 0x665   :  { %v2206_v51 = vpop.permute.xlu1 %2205 }
 0x666   :  { %v2226_v2 = vsel %vm441_vm4, %v2204_v0, %v2206_v51 }
 0x667   :  { %3265 = vmatprep.subr.bf16.mxu0 %v2226_v2  ;;  %3288 = vmatprep.subr.bf16.mxu1 %v2226_v2 }
 0x668   :  { %2478 = vrot.lane.b32.xlu1 %v11466_v21, %s9308_s25  ;;  %3266 = vmatpush1.bf16.msra.mxu0 %v2225_v46 }
 0x669   :  { %3289 = vmatpush1.bf16.msra.mxu1 %v2225_v46  ;;  %v11488_v41 = vpop.permute.xlu1 %2782 }
 0x66a   :  { %v2801_v53 = vsel %vm2399_vm14, %v2781_v3, %v11488_v41 }
 0x66b   :  { %3267 = vmatprep.subr.bf16.mxu0 %v2801_v53 }
 0x66c   :  { %3051 = vperm.xlu1 %8361, %v3047_v38   ;;  %3268 = vmatpush1.bf16.msra.mxu0 %v2800_v59 }
 0x66d   :  { %v2296_v56 = vpop.permute.xlu1 %2295  ;;  %3329 = vmatprep.subr.bf16.mxu0 %v11405_v49  ;;  %v2390_v8 = vpop.permute.xlu0 %2389 }
 0x66e   :  { %v2313_v7 = vsel %vm2297_vm13, %v2294_v20, %v2296_v56  ;;  %v2411_v29 = vsel %vm2399_vm14, %v2388_v61, %v2390_v8 }
 0x66f   :  { %v2346_v39 = vpack.c.bf16 %v2313_v7, %v11354_v13  ;;  %3276 = vmatmul.mubr.bf16.vlgmr.msra.gmra.mrb[20].mxu0 %v11144_v57  ;;  %3290 = vmatprep.subr.bf16.mxu1 %v2411_v29  ;;  %v2347_v13 = vpack.c.bf16 %v2296_v56, %v12586_v15 }
 0x670   :  { %2213 = vrot.lane.b32.xlu1 %v11499_v4, %s9304_s18  ;;  %3291 = vmatpush1.bf16.msra.mxu1 %v11422_v30 }
 0x671   :  { %3330 = vmatpush1.bf16.msra.mxu0 %v11371_v23  ;;  %v2473_v63 = vpop.permute.xlu1 %2472  ;;  %2395 = vrot.lane.b32.xlu0 %v2346_v39, %s9316_s26  ;;  %v2555_v44 = vpop.permute.xlu0 %2554 }
 0x672   :  { %v2493_v55 = vsel %vm773_vm8, %v11429_v26, %v2473_v63  ;;  %7582 = vmatprep.mubr.msk.bf16.mxu0 %vm1437_vm2, %v10911_v14  ;;  %v2576_v12 = vsel %vm2564_vm15, %v11436_v45, %v2555_v44  ;;  %v11531_v14 = vpop.f32.mrb[19].mxu0 }
 0x673   :  { %3292 = vmatprep.subr.bf16.mxu1 %v2493_v55 }
 0x674   :  { %2788 = vrot.lane.b32.xlu1 %v2747_v50, %s9316_s26  ;;  %3293 = vmatpush1.bf16.msra.mxu1 %v11433_v27 }
 0x675   :  { %2560 = vrot.lane.b32.xlu0 %v11466_v21, %s9317_s27  ;;  %3294 = vmatprep.subr.bf16.mxu1 %v2576_v12 }
 0x678   :  { %2397 = vrot.lane.b32.xlu1 %v2347_v13, %s9316_s26  ;;  %3295 = vmatpush1.bf16.msra.mxu1 %v11440_v35 }
 0x679   :  { %v2208_v36 = vpop.permute.xlu1 %2207  ;;  %3056 = vperm.xlu0 %8437, %v3048_v31   ;;  %3296 = vmatprep.subr.bf16.mxu1 %v11371_v23 }
 0x67a   :  { %v2227_v37 = vsel %vm441_vm4, %v2206_v51, %v2208_v36 }
 0x67c   :  { %2480 = vrot.lane.b32.xlu1 %v11499_v4, %s9308_s25  ;;  %3297 = vmatpush1.bf16.msra.mxu1 %v11333_v34 }
 0x67d   :  { %v2392_v62 = vpop.permute.xlu0 %2391  ;;  %3298 = vmatprep.subr.bf16.mxu1 %v2227_v37  ;;  %2790 = vrot.lane.b32.xlu0 %v9313_v25, %s9316_s26  ;;  %v2475_v10 = vpop.permute.xlu1 %2474 }
 0x67e   :  { %v2412_v33 = vsel %vm2399_vm14, %v2390_v8, %v2392_v62  ;;  %v2494_v24 = vsel %vm773_vm8, %v2473_v63, %v2475_v10 }
 0x680   :  { %3299 = vmatpush1.bf16.msra.mxu1 %v2226_v2 }
 0x681   :  { %3300 = vmatprep.subr.bf16.mxu1 %v2412_v33  ;;  %v2557_v47 = vpop.permute.xlu1 %2556 }
 0x682   :  { %v2577_v34 = vsel %vm2564_vm15, %v2555_v44, %v2557_v47 }
 0x684   :  { %3301 = vmatpush1.bf16.msra.mxu1 %v2411_v29 }
 0x685   :  { %3302 = vmatprep.subr.bf16.mxu1 %v2494_v24 }
 0x688   :  { %3303 = vmatpush1.bf16.msra.mxu1 %v2493_v55 }
 0x689   :  { %3304 = vmatprep.subr.bf16.mxu1 %v2577_v34 }
 0x68c   :  { %3305 = vmatpush1.bf16.msra.mxu1 %v2576_v12 }
 0x68d   :  { %3306 = vmatprep.subr.bf16.mxu1 %v11405_v49 }
 0x690   :  { %3307 = vmatpush1.bf16.msra.mxu1 %v11371_v23 }
 0x6ca   :  { %v2210_v25 = vpop.permute.xlu0 %2209  ;;  %v2477_v30 = vpop.permute.xlu1 %2476 }
 0x6cb   :  { %v2228_v0 = vsel %vm441_vm4, %v2208_v36, %v2210_v25  ;;  %v2495_v23 = vsel %vm773_vm8, %v2475_v10, %v2477_v30 }
 0x6cc   :  { %3308 = vmatprep.subr.bf16.mxu1 %v2228_v0  ;;  %3331 = vmatprep.subr.bf16.mxu0 %v2228_v0  ;;  %v11546_v46 = vpop.f32.mrb[24].mxu1 }
 0x6cd   :  { %3309 = vmatpush1.bf16.msra.mxu1 %v2227_v37  ;;  %3332 = vmatpush1.bf16.msra.mxu0 %v2227_v37  ;;  %v11548_v61 = vpop.f32.mrb[25].mxu1 }
 0x6ce   :  { %v2394_v26 = vpop.permute.xlu0 %2393  ;;  %v11551_v45 = vpop.f32.mrb[26].mxu1 }
 0x6cf   :  { %v2413_v27 = vsel %vm2399_vm14, %v2392_v62, %v2394_v26  ;;  %v11553_v52 = vpop.f32.mrb[27].mxu1  ;;  %v2785_v5 = vpop.permute.xlu1 %2784 }
 0x6d0   :  { %3333 = vmatprep.subr.bf16.mxu0 %v2413_v27  ;;  %v2802_v28 = vsel %vm2399_vm14, %v11488_v41, %v2785_v5 }
 0x6d1   :  { %3334 = vmatpush1.bf16.msra.mxu0 %v2412_v33  ;;  %v8685_v33 = vld [vmem:[#allocation3 + $0x104] ss:$8 sps:$4 sm:$0xff]  }
 0x6d2   :  { %3335 = vmatprep.subr.bf16.mxu0 %v2495_v23  ;;  %v2559_v35 = vpop.permute.xlu0 %2558 }
 0x6d3   :  { %v2578_v20 = vsel %vm2564_vm15, %v2557_v47, %v2559_v35 }
 0x6d5   :  { %3336 = vmatpush1.bf16.msra.mxu0 %v2494_v24 }
 0x6d6   :  { %3337 = vmatprep.subr.bf16.mxu0 %v2578_v20  ;;  %v11557_v60 = vpop.permute.xlu0 %2786  ;;  %v2212_v3 = vpop.permute.xlu1 %2211 }
 0x6d7   :  { %v2803_v40 = vsel %vm2399_vm14, %v2785_v5, %v11557_v60  ;;  %v2229_v54 = vsel %vm441_vm4, %v2210_v25, %v2212_v3  ;;  %v8683_v25 = vld [vmem:[#allocation3 + $0x100] ss:$8 sps:$4 sm:$0xff]  }
 0x6d8   :  { %3310 = vmatprep.subr.bf16.mxu1 %v2803_v40 }
 0x6d9   :  { %3311 = vmatpush1.bf16.msra.mxu1 %v2802_v28  ;;  %3338 = vmatpush1.bf16.msra.mxu0 %v2577_v34 }
 0x6da   :  { %3339 = vmatprep.subr.bf16.mxu0 %v11445_v18  ;;  %3372 = vmatprep.subr.bf16.mxu1 %v11466_v21  ;;  %v2479_v51 = vpop.permute.xlu1 %2478 }
 0x6dc   :  { %3319 = vmatmul.mubr.bf16.vlgmr.msra.gmra.mrb[28].mxu1 %v11144_v57 }
 0x6dd   :  { %3340 = vmatpush1.bf16.msra.mxu0 %v11405_v49  ;;  %3373 = vmatpush1.bf16.msra.mxu1 %v11445_v18  ;;  %v2496_v49 = vsel %vm773_vm8, %v2477_v30, %v2479_v51 }
 0x6de   :  { %3341 = vmatprep.subr.bf16.mxu0 %v2229_v54  ;;  %7583 = vmatprep.mubr.msk.bf16.mxu1 %vm1437_vm2, %v9221_v43 }
 0x6e1   :  { %3342 = vmatpush1.bf16.msra.mxu0 %v2228_v0  ;;  %v8688_v0 = vld [vmem:[#allocation3 + $0x114] ss:$8 sps:$4 sm:$0xff]  }
 0x6e3   :  { %v2396_v2 = vpop.permute.xlu0 %2395 }
 0x6e4   :  { %v2414_v41 = vsel %vm2399_vm14, %v2394_v26, %v2396_v2 }
 0x6e5   :  { %3343 = vmatprep.subr.bf16.mxu0 %v2414_v41 }
 0x6e6   :  { %3344 = vmatpush1.bf16.msra.mxu0 %v2413_v27  ;;  %v8686_v27 = vld [vmem:[#allocation3 + $0x110] ss:$8 sps:$4 sm:$0xff]  }
 0x6e7   :  { %3345 = vmatprep.subr.bf16.mxu0 %v2496_v49  ;;  %v11575_v38 = vpop.permute.xlu0 %2560 }
 0x6e8   :  { %v11579_v53 = vsel %vm2564_vm15, %v2559_v35, %v11575_v38 }
 0x6ea   :  { %3346 = vmatpush1.bf16.msra.mxu0 %v2495_v23  ;;  %v8691_v23 = vld [vmem:[#allocation3 + $0x124] ss:$8 sps:$4 sm:$0xff]  }
 0x6eb   :  { %v11581_v59 = vpop.permute.xlu1 %3051  ;;  %3347 = vmatprep.subr.bf16.mxu0 %v11579_v53 }
 0x6ec   :  { %v11586_v56 = vadd.f32 %v11475_v9, %v11581_v59  ;;  %v11590_v8 = vadd.f32 %v11480_v22, %v11581_v59  ;;  %v11613_v50 = vadd.f32 %v11470_v17, %v11581_v59  ;;  %v11663_v30 = vadd.f32 %v11486_v16, %v11581_v59  ;;  %v8689_v16 = vld [vmem:[#allocation3 + $0x120] ss:$8 sps:$4 sm:$0xff]  }
 0x6ed   :  { %v11667_v26 = vadd.f32 %v11546_v46, %v11581_v59 }
 0x6ee   :  { %3348 = vmatpush1.bf16.msra.mxu0 %v2578_v20  ;;  %v3418_v7 = vmax.f32 %v11586_v56, 0.0  ;;  %v3419_v29 = vmax.f32 %v11590_v8, 0.0  ;;  %v3417_v62 = vmax.f32 %v11613_v50, 0.0  ;;  %v12595_v35 = vmax.f32 %v11663_v30, 0.0  ;;  %v8692_v20 = vld [vmem:[#allocation3 + $0x130] ss:$8 sps:$4 sm:$0xff]  }
 0x6ef   :  { %v11594_v39 = vpop.permute.xlu1 %2213  ;;  %3349 = vmatprep.subr.bf16.mxu0 %v11466_v21  ;;  %v12593_v5 = vmax.f32 %v11667_v26, 0.0 }
 0x6f0   :  { %v11599_v63 = vsel %vm441_vm4, %v2212_v3, %v11594_v39  ;;  %v8453_v9 = vpack.i.bf16 %v3419_v29, %v3418_v7  ;;  %v8695_v3 = vld [vmem:[#allocation3 + $0x140] ss:$8 sps:$4 sm:$0xff]  }
 0x6f1   :  { %3374 = vmatprep.subr.bf16.mxu1 %v11599_v63  ;;  %v8483_v46 = vpack.i.bf16 %v12593_v5, %v12595_v35 }
 0x6f2   :  { %3375 = vmatpush1.bf16.msra.mxu1 %v2229_v54  ;;  %8454 = vrot.lane.b32.xlu1 %v8453_v9, %s9299_s5 }
 0x6f3   :  { %v2789_v22 = vpop.permute.xlu1 %2788  ;;  %3350 = vmatpush1.bf16.msra.mxu0 %v11445_v18 }
 0x6f4   :  { %3351 = vmatprep.subr.bf16.mxu0 %v11599_v63  ;;  %v2804_v34 = vsel %vm2399_vm14, %v11557_v60, %v2789_v22  ;;  %v8697_v60 = vld [vmem:[#allocation3 + $0x144] ss:$8 sps:$4 sm:$0xff]  }
 0x6f7   :  { %v11609_v44 = vpop.permute.xlu1 %2397  ;;  %3352 = vmatpush1.bf16.msra.mxu0 %v2229_v54  ;;  %v8700_v54 = vld [vmem:[#allocation3 + $0x154] ss:$8 sps:$4 sm:$0xff]  }
 0x6f8   :  { %v11615_v55 = vpop.permute.xlu0 %3056  ;;  %v11619_v12 = vsel %vm2399_vm14, %v2396_v2, %v11609_v44 }
 0x6f9   :  { %3376 = vmatprep.subr.bf16.mxu1 %v11619_v12  ;;  %v11624_v18 = vadd.f32 %v11484_v11, %v11615_v55  ;;  %v11628_v13 = vadd.f32 %v11527_v32, %v11615_v55  ;;  %v11632_v17 = vadd.f32 %v11478_v42, %v11615_v55  ;;  %v11684_v40 = vadd.f32 %v11531_v14, %v11615_v55  ;;  %v8698_v14 = vld [vmem:[#allocation3 + $0x150] ss:$8 sps:$4 sm:$0xff]  }
 0x6fa   :  { %3377 = vmatpush1.bf16.msra.mxu1 %v2414_v41  ;;  %v11688_v28 = vadd.f32 %v11551_v45, %v11615_v55  ;;  %v8703_v45 = vld [vmem:[#allocation3 + $0x164] ss:$8 sps:$4 sm:$0xff]   ;;  %v8701_v41 = vld [vmem:[#allocation3 + $0x160] ss:$8 sps:$4 sm:$0xff]  }
 0x6fb   :  { %v11634_v31 = vpop.permute.xlu1 %2480  ;;  %v3434_v36 = vmax.f32 %v11624_v18, 0.0  ;;  %v12596_v37 = vmax.f32 %v11628_v13, 0.0  ;;  %v3433_v11 = vmax.f32 %v11632_v17, 0.0  ;;  %v12594_v43 = vmax.f32 %v11684_v40, 0.0 }
 0x6fc   :  { %v11640_v10 = vpop.permute.xlu0 %2790  ;;  %v11644_v32 = vsel %vm773_vm8, %v2479_v51, %v11634_v31  ;;  %v12592_v51 = vmax.f32 %v11688_v28, 0.0 }
 0x6fd   :  { %3378 = vmatprep.subr.bf16.mxu1 %v11644_v32  ;;  %v2805_v42 = vsel %vm2399_vm14, %v2789_v22, %v11640_v10  ;;  %v8458_v24 = vpack.i.bf16 %v12596_v37, %v3434_v36  ;;  %v8438_v47 = vpack.i.bf16 %v3433_v11, %v3417_v62  ;;  %v8709_v22 = vld [vmem:[#allocation3 + $0x184] ss:$8 sps:$4 sm:$0xff]  }
 0x6fe   :  { %3379 = vmatpush1.bf16.msra.mxu1 %v2496_v49  ;;  %3353 = vmatprep.subr.bf16.mxu0 %v2805_v42  ;;  %v8498_v2 = vpack.i.bf16 %v12592_v51, %v12594_v43  ;;  %v8706_v49 = vld [vmem:[#allocation3 + $0x174] ss:$8 sps:$4 sm:$0xff]  }
 0x6ff   :  { %3354 = vmatpush1.bf16.msra.mxu0 %v2804_v34  ;;  %8459 = vrot.lane.b32.xlu1 %v8458_v24, %s9305_s21  ;;  %v8712_v42 = vld [vmem:[#allocation3 + $0x194] ss:$8 sps:$4 sm:$0xff]   ;;  %v8713_v34 = vld [vmem:[#allocation3 + $0x1a0] ss:$8 sps:$4 sm:$0xff]  }
 0x700   :  { %8439 = vrot.lane.b32.xlu0 %v8438_v47, %s9305_s21  ;;  %5560 = vmatprep.subr.bf16.mxu0 %v8685_v33  ;;  %v8707_v33 = vld [vmem:[#allocation3 + $0x180] ss:$8 sps:$4 sm:$0xff]  }
 0x702   :  { %3362 = vmatmul.mubr.bf16.vlgmr.msra.gmra.mrb[24].mxu0 %v11144_v57  ;;  %v8694_v57 = vld [vmem:[#allocation3 + $0x134] ss:$8 sps:$4 sm:$0xff]  }
 0x703   :  { %8464 = vrot.lane.b32.xlu1 %v8453_v9, %s9308_s25  ;;  %5561 = vmatpush1.bf16.msra.mxu0 %v8683_v25  ;;  %v8718_v25 = vld [vmem:[#allocation3 + $0x1b4] ss:$8 sps:$4 sm:$0xff]  }
 0x704   :  { %8444 = vrot.lane.b32.xlu0 %v8438_v47, %s9299_s5  ;;  %5562 = vmatprep.subr.bf16.mxu0 %v8688_v0  ;;  %v8716_v0 = vld [vmem:[#allocation3 + $0x1b0] ss:$8 sps:$4 sm:$0xff]  }
 0x707   :  { %8469 = vrot.lane.b32.xlu1 %v8438_v47, %s9308_s25  ;;  %5563 = vmatpush1.bf16.msra.mxu0 %v8686_v27  ;;  %v8715_v47 = vld [vmem:[#allocation3 + $0x1a4] ss:$8 sps:$4 sm:$0xff]  }
 0x708   :  { %8449 = vrot.lane.b32.xlu0 %v8453_v9, %s9305_s21  ;;  %5564 = vmatprep.subr.bf16.mxu0 %v8691_v23  ;;  %v8704_v9 = vld [vmem:[#allocation3 + $0x170] ss:$8 sps:$4 sm:$0xff]   ;;  %v8721_v27 = vld [vmem:[#allocation3 + $0x1c4] ss:$8 sps:$4 sm:$0xff]   ;;  %v8719_v23 = vld [vmem:[#allocation3 + $0x1c0] ss:$8 sps:$4 sm:$0xff]  }
 0x70b   :  { %8484 = vrot.lane.b32.xlu1 %v8483_v46, %s9305_s21  ;;  %5565 = vmatpush1.bf16.msra.mxu0 %v8689_v16  ;;  %v8724_v16 = vld [vmem:[#allocation3 + $0x1d4] ss:$8 sps:$4 sm:$0xff]  }
 0x70c   :  { %8474 = vrot.lane.b32.xlu0 %v8458_v24, %s9299_s5  ;;  %5566 = vmatprep.subr.bf16.mxu0 %v8694_v57  ;;  %v8722_v57 = vld [vmem:[#allocation3 + $0x1d0] ss:$8 sps:$4 sm:$0xff]  }
 0x70f   :  { %8489 = vrot.lane.b32.xlu1 %v8483_v46, %s9299_s5  ;;  %5567 = vmatpush1.bf16.msra.mxu0 %v8692_v20  ;;  %v8725_v20 = vld [vmem:[#allocation3 + $0x1e0] ss:$8 sps:$4 sm:$0xff]  }
 0x710   :  { %8479 = vrot.lane.b32.xlu0 %v8458_v24, %s9308_s25  ;;  %5568 = vmatprep.subr.bf16.mxu0 %v8697_v60  ;;  %v8710_v24 = vld [vmem:[#allocation3 + $0x190] ss:$8 sps:$4 sm:$0xff]   ;;  %v8730_v60 = vld [vmem:[#allocation3 + $0x1f4] ss:$8 sps:$4 sm:$0xff]  }
 0x713   :  { %8494 = vrot.lane.b32.xlu1 %v8483_v46, %s9308_s25  ;;  %5569 = vmatpush1.bf16.msra.mxu0 %v8695_v3  ;;  %v8727_v46 = vld [vmem:[#allocation3 + $0x1e4] ss:$8 sps:$4 sm:$0xff]   ;;  %v8728_v3 = vld [vmem:[#allocation3 + $0x1f0] ss:$8 sps:$4 sm:$0xff]  }
 0x714   :  { %2562 = vrot.lane.b32.xlu0 %v11499_v4, %s9317_s27  ;;  %5570 = vmatprep.subr.bf16.mxu0 %v8700_v54  ;;  %v8733_v54 = vld [vmem:[#allocation3 + $0x204] ss:$8 sps:$4 sm:$0xff]  }
 0x717   :  { %5571 = vmatpush1.bf16.msra.mxu0 %v8698_v14  ;;  %v11706_v14 = vadd.f32 %v11548_v61, %v11581_v59 }
 0x718   :  { %8499 = vrot.lane.b32.xlu0 %v8498_v2, %s9305_s21  ;;  %5572 = vmatprep.subr.bf16.mxu0 %v8703_v45 }
 0x71b   :  { %5573 = vmatpush1.bf16.msra.mxu0 %v8701_v41 }
 0x71c   :  { %8504 = vrot.lane.b32.xlu0 %v8498_v2, %s9299_s5  ;;  %5574 = vmatprep.subr.bf16.mxu0 %v8706_v49 }
 0x71f   :  { %5575 = vmatpush1.bf16.msra.mxu0 %v8704_v9 }
 0x720   :  { %8509 = vrot.lane.b32.xlu0 %v8498_v2, %s9308_s25  ;;  %5576 = vmatprep.subr.bf16.mxu0 %v8709_v22  ;;  %v11710_v2 = vadd.f32 %v11553_v52, %v11615_v55  ;;  %v12591_v22 = vmax.f32 %v11706_v14, 0.0 }
 0x723   :  { %5577 = vmatpush1.bf16.msra.mxu0 %v8707_v33 }
 0x724   :  { %5578 = vmatprep.subr.bf16.mxu0 %v8712_v42 }
 0x727   :  { %5579 = vmatpush1.bf16.msra.mxu0 %v8710_v24  ;;  %v12590_v24 = vmax.f32 %v11710_v2, 0.0 }
 0x728   :  { %5580 = vmatprep.subr.bf16.mxu0 %v8715_v47 }
 0x72b   :  { %5581 = vmatpush1.bf16.msra.mxu0 %v8713_v34 }
 0x72c   :  { %5582 = vmatprep.subr.bf16.mxu0 %v8718_v25 }
 0x72f   :  { %5583 = vmatpush1.bf16.msra.mxu0 %v8716_v0 }
 0x730   :  { %5584 = vmatprep.subr.bf16.mxu0 %v8721_v27 }
 0x733   :  { %5585 = vmatpush1.bf16.msra.mxu0 %v8719_v23 }
 0x734   :  { %5586 = vmatprep.subr.bf16.mxu0 %v8724_v16 }
 0x737   :  { %5587 = vmatpush1.bf16.msra.mxu0 %v8722_v57 }
 0x738   :  { %5588 = vmatprep.subr.bf16.mxu0 %v8727_v46 }
 0x73b   :  { %5589 = vmatpush1.bf16.msra.mxu0 %v8725_v20 }
 0x73c   :  { %5590 = vmatprep.subr.bf16.mxu0 %v8730_v60 }
 0x73f   :  { %5591 = vmatpush1.bf16.msra.mxu0 %v8728_v3 }
 0x740   :  { %5603 = vmatprep.subr.bf16.mxu0 %v8733_v54 }
 0x742   :  { %v3277_v45 = vpop.f32.mrb[20].mxu0 }
 0x743   :  { %v11713_v41 = vadd.f32 %v3277_v45, %v11581_v59  ;;  %v11715_v49 = vpop.f32.mrb[21].mxu0 }
 0x744   :  { %v3281_v9 = vpop.f32.mrb[22].mxu0 }
 0x745   :  { %v12588_v33 = vmax.f32 %v11713_v41, 0.0  ;;  %v11720_v42 = vadd.f32 %v3281_v9, %v11615_v55  ;;  %v11722_v61 = vpop.f32.mrb[23].mxu0 }
 0x747   :  { %v12589_v52 = vmax.f32 %v11720_v42, 0.0  ;;  %v8513_v47 = vpack.i.bf16 %v12588_v33, %v12591_v22 }
 0x749   :  { %8514 = vrot.lane.b32.xlu1 %v8513_v47, %s9305_s21  ;;  %v8528_v34 = vpack.i.bf16 %v12589_v52, %v12590_v24 }
 0x74b   :  { %8529 = vrot.lane.b32.xlu0 %v8528_v34, %s9305_s21 }
 0x74d   :  { %8519 = vrot.lane.b32.xlu1 %v8513_v47, %s9299_s5 }
 0x74f   :  { %8534 = vrot.lane.b32.xlu0 %v8528_v34, %s9299_s5 }
 0x751   :  { %8524 = vrot.lane.b32.xlu1 %v8513_v47, %s9308_s25 }
 0x753   :  { %8539 = vrot.lane.b32.xlu0 %v8528_v34, %s9308_s25 }
 0x764   :  { %v8455_v25 = vpop.permute.xlu1 %8454 }
 0x765   :  { %v8457_v47 = vunpack.i.h.bf16 %v8455_v25  ;;  %v8456_v34 = vunpack.i.l.bf16 %v8455_v25 }
 0x767   :  { %v3709_v50 = vsel %vm690_vm7, %v8456_v34, %v8457_v47 }
 0x771   :  { %v11740_v0 = vpop.permute.xlu1 %8459 }
 0x772   :  { %v11742_v27 = vpop.permute.xlu0 %8439  ;;  %v12599_v57 = vunpack.i.h.bf16 %v11740_v0  ;;  %v8461_v46 = vunpack.i.l.bf16 %v11740_v0 }
 0x773   :  { %v12598_v3 = vunpack.i.h.bf16 %v11742_v27  ;;  %v12597_v54 = vunpack.i.l.bf16 %v11742_v27 }
 0x774   :  { %v3562_v15 = vsel %vm256_vm3, %v8461_v46, %v12599_v57 }
 0x775   :  { %v8465_v23 = vpop.permute.xlu1 %8464  ;;  %v3561_v37 = vsel %vm256_vm3, %v12598_v3, %v8461_v46  ;;  %v3626_v56 = vmax.f32 %v3434_v36, %v3562_v15 }
 0x776   :  { %v11744_v16 = vpop.permute.xlu0 %8444  ;;  %v8467_v33 = vunpack.i.h.bf16 %v8465_v23  ;;  %v8466_v5 = vunpack.i.l.bf16 %v8465_v23  ;;  %v3625_v15 = vmax.f32 %v3433_v11, %v3561_v37 }
 0x777   :  { %v12600_v52 = vunpack.i.l.bf16 %v11744_v16 }
 0x778   :  { %v3872_v36 = vsel %vm773_vm8, %v8466_v5, %v8467_v33 }
 0x779   :  { %v11748_v20 = vpop.permute.xlu1 %8469 }
 0x77a   :  { %v8450_v60 = vpop.permute.xlu0 %8449 }
 0x77b   :  { %v8452_v45 = vunpack.i.h.bf16 %v8450_v60  ;;  %v8451_v9 = vunpack.i.l.bf16 %v8450_v60 }
 0x77d   :  { %v3545_v24 = vsel %vm256_vm3, %v12597_v54, %v8451_v9  ;;  %v3546_v22 = vsel %vm256_vm3, %v8451_v9, %v8452_v45  ;;  %v11760_v51 = vpop.permute.xlu1 %8484  ;;  %v12601_v54 = vunpack.i.h.bf16 %v11744_v16 }
 0x77e   :  { %v3609_v60 = vmax.f32 %v3417_v62, %v3545_v24  ;;  %v3610_v25 = vmax.f32 %v3418_v7, %v3546_v22  ;;  %v8486_v43 = vunpack.i.l.bf16 %v11760_v51  ;;  %v11767_v35 = vpop.permute.xlu0 %8474  ;;  %v12606_v7 = vunpack.i.l.bf16 %v11748_v20 }
 0x77f   :  { %v12602_v9 = vunpack.i.h.bf16 %v11767_v35  ;;  %v8476_v23 = vunpack.i.l.bf16 %v11767_v35  ;;  %v3708_v22 = vsel %vm690_vm7, %v12600_v52, %v8456_v34  ;;  %v12605_v52 = vunpack.i.h.bf16 %v11748_v20 }
 0x780   :  { %v3547_v62 = vsel %vm256_vm3, %v8452_v45, %v8486_v43  ;;  %v3773_v18 = vmax.f32 %v3610_v25, %v3709_v50  ;;  %v3772_v45 = vmax.f32 %v3609_v60, %v3708_v22  ;;  %v3871_v17 = vsel %vm773_vm8, %v12606_v7, %v8466_v5 }
 0x781   :  { %v3724_v24 = vsel %vm690_vm7, %v12601_v54, %v8476_v23  ;;  %v3725_v46 = vsel %vm690_vm7, %v8476_v23, %v12602_v9  ;;  %v11789_v3 = vpop.permute.xlu1 %8489  ;;  %v3611_v54 = vmax.f32 %v3419_v29, %v3547_v62 }
 0x782   :  { %v8491_v57 = vunpack.i.l.bf16 %v11789_v3  ;;  %v11795_v34 = vpop.permute.xlu0 %8479  ;;  %v3788_v37 = vmax.f32 %v3625_v15, %v3724_v24  ;;  %v3789_v11 = vmax.f32 %v3626_v56, %v3725_v46  ;;  %v3936_v62 = vmax.f32 %v3773_v18, %v3872_v36  ;;  %v8736_v36 = vld [vmem:[#allocation3 + $0x214] ss:$8 sps:$4 sm:$0xff]  }
 0x783   :  { %v8482_v23 = vunpack.i.h.bf16 %v11795_v34  ;;  %v8481_v9 = vunpack.i.l.bf16 %v11795_v34  ;;  %v3935_v24 = vmax.f32 %v3772_v45, %v3871_v17  ;;  %v8734_v17 = vld [vmem:[#allocation3 + $0x210] ss:$8 sps:$4 sm:$0xff]  }
 0x784   :  { %v3710_v60 = vsel %vm690_vm7, %v8457_v47, %v8491_v57 }
 0x785   :  { %v3774_v25 = vmax.f32 %v3611_v54, %v3710_v60  ;;  %v3887_v50 = vsel %vm773_vm8, %v12605_v52, %v8481_v9  ;;  %v3888_v8 = vsel %vm773_vm8, %v8481_v9, %v8482_v23  ;;  %v11812_v29 = vpop.permute.xlu1 %8494  ;;  %v8731_v9 = vld [vmem:[#allocation3 + $0x200] ss:$8 sps:$4 sm:$0xff]   ;;  %v12619_v60 = vunpack.i.h.bf16 %v11740_v0 }
 0x786   :  { %v3951_v22 = vmax.f32 %v3788_v37, %v3887_v50  ;;  %v8496_v6 = vunpack.i.l.bf16 %v11812_v29  ;;  %v11815_v5 = vpop.permute.xlu0 %2562  ;;  %v3952_v56 = vmax.f32 %v3789_v11, %v3888_v8  ;;  %v8487_v37 = vunpack.i.h.bf16 %v11760_v51  ;;  %v8773_v51 = vld [vmem:[#allocation3 + $0x2e0] ss:$8 sps:$4 sm:$0xff]  }
 0x787   :  { %v11820_v54 = vsel %vm2564_vm15, %v11575_v38, %v11815_v5  ;;  %v8492_v11 = vunpack.i.h.bf16 %v11789_v3 }
 0x788   :  { %v3873_v47 = vsel %vm773_vm8, %v8467_v33, %v8496_v6  ;;  %3380 = vmatprep.subr.bf16.mxu1 %v11820_v54  ;;  %v3968_v46 = vpack.c.bf16 %v3952_v56, %v3936_v62  ;;  %v3967_v15 = vpack.c.bf16 %v3951_v22, %v3935_v24  ;;  %v3548_v50 = vsel %vm256_vm3, %v8486_v43, %v8487_v37 }
 0x789   :  { %v11824_v18 = vmax.f32 %v3774_v25, %v3873_v47  ;;  %3381 = vmatpush1.bf16.msra.mxu1 %v11579_v53  ;;  %v8739_v25 = vld [vmem:[#allocation3 + $0x224] ss:$8 sps:$4 sm:$0xff]   ;;  %v8497_v62 = vunpack.i.h.bf16 %v11812_v29  ;;  %v12620_v56 = vmax.f32 %v11628_v13, 0.0  ;;  %v8737_v47 = vld [vmem:[#allocation3 + $0x220] ss:$8 sps:$4 sm:$0xff]   ;;  %v3711_v43 = vsel %vm690_vm7, %v8491_v57, %v8492_v11 }
 0x78a   :  { %3382 = vmatprep.subr.bf16.mxu1 %v11499_v4  ;;  %v11829_v45 = vpop.permute.xlu0 %8499  ;;  %5592 = vmatprep.mubr.bf16.mxu0 %v3968_v46  ;;  %v12622_v13 = vmax.f32 %v11663_v30, 0.0  ;;  %v8740_v30 = vld [vmem:[#allocation3 + $0x230] ss:$8 sps:$4 sm:$0xff]  }
 0x78b   :  { %v8502_v38 = vunpack.i.h.bf16 %v11829_v45  ;;  %v8501_v33 = vunpack.i.l.bf16 %v11829_v45  ;;  %5593 = vmatmul.mubr.bf16.vlgmr.msra.gmra.mrb[28].mxu0 %v3967_v15  ;;  %v3874_v57 = vsel %vm773_vm8, %v8496_v6, %v8497_v62  ;;  %v8745_v6 = vld [vmem:[#allocation3 + $0x244] ss:$8 sps:$4 sm:$0xff]   ;;  %v8778_v45 = vld [vmem:[#allocation3 + $0x2f4] ss:$8 sps:$4 sm:$0xff]  }
 0x78c   :  { %5604 = vmatpush1.bf16.msra.mxu0 %v8731_v9  ;;  %v12621_v9 = vunpack.i.h.bf16 %v11767_v35 }
 0x78d   :  { %v3563_v53 = vsel %vm256_vm3, %v12619_v60, %v8501_v33  ;;  %3383 = vmatpush1.bf16.msra.mxu1 %v11466_v21  ;;  %5605 = vmatprep.subr.bf16.mxu0 %v8736_v36  ;;  %v3564_v0 = vsel %vm256_vm3, %v8501_v33, %v8502_v38  ;;  %v8742_v36 = vld [vmem:[#allocation3 + $0x234] ss:$8 sps:$4 sm:$0xff]   ;;  %v3612_v33 = vmax.f32 %v12622_v13, %v3548_v50  ;;  %v8763_v13 = vld [vmem:[#allocation3 + $0x2a4] ss:$8 sps:$4 sm:$0xff]  }
 0x78e   :  { %3384 = vmatprep.subr.bf16.mxu1 %v11594_v39  ;;  %v11842_v8 = vpop.permute.xlu0 %8504  ;;  %v3627_v24 = vmax.f32 %v12620_v56, %v3563_v53 }
 0x78f   :  { %v8507_v22 = vunpack.i.h.bf16 %v11842_v8  ;;  %v8506_v21 = vunpack.i.l.bf16 %v11842_v8 }
 0x790   :  { %5606 = vmatpush1.bf16.msra.mxu0 %v8734_v17  ;;  %v12623_v17 = vmax.f32 %v11684_v40, 0.0 }
 0x791   :  { %v3726_v46 = vsel %vm690_vm7, %v12621_v9, %v8506_v21  ;;  %v3727_v15 = vsel %vm690_vm7, %v8506_v21, %v8507_v22  ;;  %3385 = vmatpush1.bf16.msra.mxu1 %v11599_v63  ;;  %5607 = vmatprep.subr.bf16.mxu0 %v8739_v25  ;;  %v3775_v25 = vmax.f32 %v3612_v33, %v3711_v43  ;;  %v8749_v9 = vld [vmem:[#allocation3 + $0x260] ss:$8 sps:$4 sm:$0xff]  }
 0x792   :  { %v3628_v60 = vmax.f32 %v12623_v17, %v3564_v0  ;;  %v3790_v53 = vmax.f32 %v3627_v24, %v3726_v46  ;;  %3386 = vmatprep.subr.bf16.mxu1 %v11609_v44  ;;  %v11867_v35 = vpop.permute.xlu0 %8509  ;;  %v8754_v46 = vld [vmem:[#allocation3 + $0x274] ss:$8 sps:$4 sm:$0xff]   ;;  %v11904_v17 = vadd.f32 %v11722_v61, %v11615_v55 }
 0x793   :  { %v8512_v21 = vunpack.i.h.bf16 %v11867_v35  ;;  %v8511_v63 = vunpack.i.l.bf16 %v11867_v35  ;;  %v3938_v0 = vmax.f32 %v3775_v25, %v3874_v57 }
 0x794   :  { %v3791_v56 = vmax.f32 %v3628_v60, %v3727_v15  ;;  %5608 = vmatpush1.bf16.msra.mxu0 %v8737_v47  ;;  %v8743_v47 = vld [vmem:[#allocation3 + $0x240] ss:$8 sps:$4 sm:$0xff]   ;;  %v8760_v15 = vld [vmem:[#allocation3 + $0x294] ss:$8 sps:$4 sm:$0xff]   ;;  %v3440_v61 = vmax.f32 %v11904_v17, 0.0 }
 0x795   :  { %v3889_v40 = vsel %vm773_vm8, %v8482_v23, %v8511_v63  ;;  %v3890_v44 = vsel %vm773_vm8, %v8511_v63, %v8512_v21  ;;  %3387 = vmatpush1.bf16.msra.mxu1 %v11619_v12  ;;  %5609 = vmatprep.subr.bf16.mxu0 %v8742_v36  ;;  %v8748_v23 = vld [vmem:[#allocation3 + $0x254] ss:$8 sps:$4 sm:$0xff]   ;;  %v8746_v12 = vld [vmem:[#allocation3 + $0x250] ss:$8 sps:$4 sm:$0xff]  }
 0x796   :  { %v11881_v50 = vmax.f32 %v3790_v53, %v3889_v40  ;;  %3388 = vmatprep.subr.bf16.mxu1 %v11634_v31  ;;  %v3954_v24 = vmax.f32 %v3791_v56, %v3890_v44  ;;  %v8751_v31 = vld [vmem:[#allocation3 + $0x264] ss:$8 sps:$4 sm:$0xff]   ;;  %v8758_v36 = vld [vmem:[#allocation3 + $0x290] ss:$8 sps:$4 sm:$0xff]   ;;  %v8761_v53 = vld [vmem:[#allocation3 + $0x2a0] ss:$8 sps:$4 sm:$0xff]  }
 0x797   :  { %v8766_v63 = vld [vmem:[#allocation3 + $0x2b4] ss:$8 sps:$4 sm:$0xff]  }
 0x798   :  { %5610 = vmatpush1.bf16.msra.mxu0 %v8740_v30  ;;  %v3970_v43 = vpack.c.bf16 %v3954_v24, %v3938_v0  ;;  %v3969_v34 = vpack.c.bf16 %v11881_v50, %v11824_v18  ;;  %v8769_v0 = vld [vmem:[#allocation3 + $0x2c4] ss:$8 sps:$4 sm:$0xff]   ;;  %v8788_v18 = vld [vmem:[#allocation3 + $0x330] ss:$8 sps:$4 sm:$0xff]  }
 0x799   :  { %3389 = vmatpush1.bf16.msra.mxu1 %v11644_v32  ;;  %5611 = vmatprep.subr.bf16.mxu0 %v8745_v6  ;;  %v8752_v32 = vld [vmem:[#allocation3 + $0x270] ss:$8 sps:$4 sm:$0xff]  }
 0x79a   :  { %3390 = vmatprep.subr.bf16.mxu1 %v11815_v5  ;;  %5635 = vmatprep.mubr.bf16.mxu0 %v3970_v43  ;;  %v8757_v5 = vld [vmem:[#allocation3 + $0x284] ss:$8 sps:$4 sm:$0xff]   ;;  %v8764_v6 = vld [vmem:[#allocation3 + $0x2b0] ss:$8 sps:$4 sm:$0xff]   ;;  %v8772_v43 = vld [vmem:[#allocation3 + $0x2d4] ss:$8 sps:$4 sm:$0xff]  }
 0x79c   :  { %5612 = vmatpush1.bf16.msra.mxu0 %v8743_v47  ;;  %v8767_v47 = vld [vmem:[#allocation3 + $0x2c0] ss:$8 sps:$4 sm:$0xff]  }
 0x79d   :  { %3391 = vmatpush1.bf16.msra.mxu1 %v11820_v54  ;;  %5613 = vmatprep.subr.bf16.mxu0 %v8748_v23  ;;  %v8755_v54 = vld [vmem:[#allocation3 + $0x280] ss:$8 sps:$4 sm:$0xff]  }
 0x79e   :  { %3392 = vmatprep.subr.bf16.mxu1 %v11499_v4 }
 0x7a0   :  { %5614 = vmatpush1.bf16.msra.mxu0 %v8746_v12 }
 0x7a1   :  { %3393 = vmatpush1.bf16.msra.mxu1 %v11499_v4  ;;  %5615 = vmatprep.subr.bf16.mxu0 %v8751_v31  ;;  %v9222_v4 = vld [vmem:[%s12576_s3] ss:$8 sps:$4 sm:$0xff]   ;;  %v8770_v31 = vld [vmem:[#allocation3 + $0x2d0] ss:$8 sps:$4 sm:$0xff]  }
 0x7a2   :  { %3394 = vmatprep.subr.bf16.mxu1 %v11594_v39 }
 0x7a4   :  { %5616 = vmatpush1.bf16.msra.mxu0 %v8749_v9 }
 0x7a5   :  { %3395 = vmatpush1.bf16.msra.mxu1 %v11594_v39  ;;  %5617 = vmatprep.subr.bf16.mxu0 %v8754_v46  ;;  %v11900_v39 = vadd.f32 %v11715_v49, %v11581_v59 }
 0x7a6   :  { %3396 = vmatprep.subr.bf16.mxu1 %v11640_v10 }
 0x7a7   :  { %v3424_v25 = vmax.f32 %v11900_v39, 0.0  ;;  %v8956_v39 = vld [vmem:[#allocation3 + $0x30] ss:$8 sps:$4 sm:$0xff]  }
 0x7a8   :  { %5618 = vmatpush1.bf16.msra.mxu0 %v8752_v32  ;;  %v8775_v32 = vld [vmem:[#allocation3 + $0x2e4] ss:$8 sps:$4 sm:$0xff]  }
 0x7a9   :  { %3397 = vmatpush1.bf16.msra.mxu1 %v11640_v10  ;;  %5619 = vmatprep.subr.bf16.mxu0 %v8757_v5 }
 0x7ac   :  { %5620 = vmatpush1.bf16.msra.mxu0 %v8755_v54  ;;  %3405 = vmatmul.mubr.bf16.vlgmr.msra.gmra.mrb[32].mxu1 %v9222_v4 }
 0x7ad   :  { %5621 = vmatprep.subr.bf16.mxu0 %v8760_v15 }
 0x7af   :  { %v3320_v33 = vpop.f32.mrb[28].mxu1 }
 0x7b0   :  { %v11907_v10 = vadd.f32 %v3320_v33, %v11581_v59  ;;  %5622 = vmatpush1.bf16.msra.mxu0 %v8758_v36  ;;  %v11909_v60 = vpop.f32.mrb[29].mxu1 }
 0x7b1   :  { %v3324_v57 = vpop.f32.mrb[30].mxu1  ;;  %5623 = vmatprep.subr.bf16.mxu0 %v8763_v13 }
 0x7b2   :  { %v12614_v49 = vmax.f32 %v11907_v10, 0.0  ;;  %v11914_v56 = vadd.f32 %v3324_v57, %v11615_v55  ;;  %v11916_v30 = vpop.f32.mrb[31].mxu1 }
 0x7b4   :  { %v12611_v40 = vmax.f32 %v11914_v56, 0.0  ;;  %5624 = vmatpush1.bf16.msra.mxu0 %v8761_v53  ;;  %v8543_v44 = vpack.i.bf16 %v12614_v49, %v3424_v25  ;;  %v12624_v53 = vmax.f32 %v11667_v26, 0.0 }
 0x7b5   :  { %5625 = vmatprep.subr.bf16.mxu0 %v8766_v63 }
 0x7b6   :  { %8544 = vrot.lane.b32.xlu1 %v8543_v44, %s9305_s21  ;;  %v8558_v24 = vpack.i.bf16 %v12611_v40, %v3440_v61 }
 0x7b8   :  { %5626 = vmatpush1.bf16.msra.mxu0 %v8764_v6  ;;  %8559 = vrot.lane.b32.xlu0 %v8558_v24, %s9305_s21 }
 0x7b9   :  { %5627 = vmatprep.subr.bf16.mxu0 %v8769_v0 }
 0x7ba   :  { %8549 = vrot.lane.b32.xlu1 %v8543_v44, %s9299_s5 }
 0x7bb   :  { %v11931_v23 = vpop.permute.xlu1 %8514 }
 0x7bc   :  { %5628 = vmatpush1.bf16.msra.mxu0 %v8767_v47  ;;  %v8516_v12 = vunpack.i.l.bf16 %v11931_v23  ;;  %8564 = vrot.lane.b32.xlu0 %v8558_v24, %s9299_s5  ;;  %v8517_v9 = vunpack.i.h.bf16 %v11931_v23 }
 0x7bd   :  { %v11936_v46 = vpop.permute.xlu0 %8529  ;;  %5629 = vmatprep.subr.bf16.mxu0 %v8772_v43 }
 0x7be   :  { %v3549_v5 = vsel %vm256_vm3, %v8487_v37, %v8516_v12  ;;  %8554 = vrot.lane.b32.xlu1 %v8543_v44, %s9308_s25  ;;  %v8532_v54 = vunpack.i.h.bf16 %v11936_v46  ;;  %v8531_v15 = vunpack.i.l.bf16 %v11936_v46  ;;  %v3550_v37 = vsel %vm256_vm3, %v8516_v12, %v8517_v9  ;;  %v8874_v46 = vld [vmem:[#allocation3 + $0x4f4] ss:$8 sps:$4 sm:$0xff]  }
 0x7bf   :  { %v11944_v4 = vpop.permute.xlu1 %8519  ;;  %v3613_v57 = vmax.f32 %v12624_v53, %v3549_v5  ;;  %v12626_v5 = vmax.f32 %v11706_v14, 0.0 }
 0x7c0   :  { %v3565_v36 = vsel %vm256_vm3, %v8502_v38, %v8531_v15  ;;  %5630 = vmatpush1.bf16.msra.mxu0 %v8770_v31  ;;  %v8522_v13 = vunpack.i.h.bf16 %v11944_v4  ;;  %v8521_v33 = vunpack.i.l.bf16 %v11944_v4  ;;  %8569 = vrot.lane.b32.xlu0 %v8558_v24, %s9308_s25  ;;  %v3566_v38 = vsel %vm256_vm3, %v8531_v15, %v8532_v54  ;;  %v8877_v4 = vld [vmem:[#allocation3 + $0x504] ss:$8 sps:$4 sm:$0xff]  }
 0x7c1   :  { %v11957_v63 = vpop.permute.xlu0 %8534  ;;  %5631 = vmatprep.subr.bf16.mxu0 %v8775_v32  ;;  %v12625_v24 = vmax.f32 %v11688_v28, 0.0  ;;  %v8776_v32 = vld [vmem:[#allocation3 + $0x2f0] ss:$8 sps:$4 sm:$0xff]   ;;  %v3614_v15 = vmax.f32 %v12626_v5, %v3550_v37  ;;  %v12017_v5 = vadd.f32 %v11916_v30, %v11615_v55  ;;  %v8796_v30 = vld [vmem:[#allocation3 + $0x354] ss:$8 sps:$4 sm:$0xff]  }
 0x7c2   :  { %v3712_v44 = vsel %vm690_vm7, %v8492_v11, %v8521_v33  ;;  %v8537_v6 = vunpack.i.h.bf16 %v11957_v63  ;;  %v8536_v0 = vunpack.i.l.bf16 %v11957_v63  ;;  %v3713_v47 = vsel %vm690_vm7, %v8521_v33, %v8522_v13 }
 0x7c3   :  { %v3629_v26 = vmax.f32 %v12625_v24, %v3565_v36  ;;  %v3776_v43 = vmax.f32 %v3613_v57, %v3712_v44  ;;  %v11972_v12 = vpop.permute.xlu1 %8524  ;;  %v12627_v36 = vmax.f32 %v11710_v2, 0.0  ;;  %v3777_v37 = vmax.f32 %v3614_v15, %v3713_v47  ;;  %v8784_v24 = vld [vmem:[#allocation3 + $0x314] ss:$8 sps:$4 sm:$0xff]  }
 0x7c4   :  { %v3728_v3 = vsel %vm690_vm7, %v8507_v22, %v8536_v0  ;;  %v3729_v11 = vsel %vm690_vm7, %v8536_v0, %v8537_v6  ;;  %5632 = vmatpush1.bf16.msra.mxu0 %v8773_v51  ;;  %v8527_v31 = vunpack.i.h.bf16 %v11972_v12  ;;  %v8526_v28 = vunpack.i.l.bf16 %v11972_v12  ;;  %v8781_v22 = vld [vmem:[#allocation3 + $0x304] ss:$8 sps:$4 sm:$0xff]  }
 0x7c5   :  { %v3630_v33 = vmax.f32 %v12627_v36, %v3566_v38  ;;  %v3792_v53 = vmax.f32 %v3629_v26, %v3728_v3  ;;  %v11986_v8 = vpop.permute.xlu0 %8539  ;;  %5633 = vmatprep.subr.bf16.mxu0 %v8778_v45  ;;  %v8883_v12 = vld [vmem:[#allocation3 + $0x524] ss:$8 sps:$4 sm:$0xff]  }
 0x7c6   :  { %v3875_v51 = vsel %vm773_vm8, %v8497_v62, %v8526_v28  ;;  %v3876_v57 = vsel %vm773_vm8, %v8526_v28, %v8527_v31  ;;  %v8542_v44 = vunpack.i.h.bf16 %v11986_v8  ;;  %v8541_v14 = vunpack.i.l.bf16 %v11986_v8  ;;  %v8779_v62 = vld [vmem:[#allocation3 + $0x300] ss:$8 sps:$4 sm:$0xff]   ;;  %v8790_v28 = vld [vmem:[#allocation3 + $0x334] ss:$8 sps:$4 sm:$0xff]  }
 0x7c7   :  { %v3793_v2 = vmax.f32 %v3630_v33, %v3729_v11  ;;  %v11996_v38 = vmax.f32 %v3776_v43, %v3875_v51  ;;  %v3940_v26 = vmax.f32 %v3777_v37, %v3876_v57  ;;  %v8787_v43 = vld [vmem:[#allocation3 + $0x324] ss:$8 sps:$4 sm:$0xff]   ;;  %v8785_v11 = vld [vmem:[#allocation3 + $0x320] ss:$8 sps:$4 sm:$0xff]  }
 0x7c8   :  { %v3891_v45 = vsel %vm773_vm8, %v8512_v21, %v8541_v14  ;;  %v3892_v29 = vsel %vm773_vm8, %v8541_v14, %v8542_v44  ;;  %5634 = vmatpush1.bf16.msra.mxu0 %v8776_v32  ;;  %v8782_v21 = vld [vmem:[#allocation3 + $0x310] ss:$8 sps:$4 sm:$0xff]   ;;  %v12013_v32 = vadd.f32 %v11909_v60, %v11581_v59  ;;  %v8791_v57 = vld [vmem:[#allocation3 + $0x340] ss:$8 sps:$4 sm:$0xff]   ;;  %v12609_v14 = vmax.f32 %v12017_v5, 0.0 }
 0x7c9   :  { %v12004_v0 = vmax.f32 %v3792_v53, %v3891_v45  ;;  %5646 = vmatprep.subr.bf16.mxu0 %v8781_v22  ;;  %v3956_v3 = vmax.f32 %v3793_v2, %v3892_v29  ;;  %v8794_v45 = vld [vmem:[#allocation3 + $0x350] ss:$8 sps:$4 sm:$0xff]   ;;  %v8875_v8 = vld [vmem:[#allocation3 + $0x500] ss:$8 sps:$4 sm:$0xff]  }
 0x7ca   :  { %v12610_v53 = vmax.f32 %v12013_v32, 0.0 }
 0x7cb   :  { %5636 = vmatmul.mubr.bf16.vlgmr.msra.gmra.mrb[28].mxu0 %v3969_v34  ;;  %v3972_v47 = vpack.c.bf16 %v3956_v3, %v3940_v26  ;;  %v3971_v35 = vpack.c.bf16 %v12004_v0, %v11996_v38  ;;  %v8793_v34 = vld [vmem:[#allocation3 + $0x344] ss:$8 sps:$4 sm:$0xff]   ;;  %v8802_v26 = vld [vmem:[#allocation3 + $0x374] ss:$8 sps:$4 sm:$0xff]   ;;  %v8800_v3 = vld [vmem:[#allocation3 + $0x370] ss:$8 sps:$4 sm:$0xff]  }
 0x7cc   :  { %5647 = vmatpush1.bf16.msra.mxu0 %v8779_v62  ;;  %v8799_v62 = vld [vmem:[#allocation3 + $0x364] ss:$8 sps:$4 sm:$0xff]   ;;  %v8845_v0 = vld [vmem:[#allocation3 + $0x460] ss:$8 sps:$4 sm:$0xff]  }
 0x7cd   :  { %5648 = vmatprep.subr.bf16.mxu0 %v8784_v24  ;;  %5678 = vmatprep.mubr.bf16.mxu0 %v3972_v47  ;;  %v8797_v24 = vld [vmem:[#allocation3 + $0x360] ss:$8 sps:$4 sm:$0xff]   ;;  %v8805_v47 = vld [vmem:[#allocation3 + $0x384] ss:$8 sps:$4 sm:$0xff]  }
 0x7ce   :  { %v8847_v38 = vld [vmem:[#allocation3 + $0x464] ss:$8 sps:$4 sm:$0xff]  }
 0x7d0   :  { %5649 = vmatpush1.bf16.msra.mxu0 %v8782_v21  ;;  %v8803_v21 = vld [vmem:[#allocation3 + $0x380] ss:$8 sps:$4 sm:$0xff]  }
 0x7d1   :  { %5650 = vmatprep.subr.bf16.mxu0 %v8787_v43  ;;  %v8808_v43 = vld [vmem:[#allocation3 + $0x394] ss:$8 sps:$4 sm:$0xff]  }
 0x7d4   :  { %5651 = vmatpush1.bf16.msra.mxu0 %v8785_v11  ;;  %v8806_v11 = vld [vmem:[#allocation3 + $0x390] ss:$8 sps:$4 sm:$0xff]  }
 0x7d5   :  { %v3363_v50 = vpop.f32.mrb[24].mxu0  ;;  %5652 = vmatprep.subr.bf16.mxu0 %v8790_v28  ;;  %v8811_v28 = vld [vmem:[#allocation3 + $0x3a4] ss:$8 sps:$4 sm:$0xff]  }
 0x7d6   :  { %v12020_v15 = vadd.f32 %v3363_v50, %v11581_v59  ;;  %v12022_v36 = vpop.f32.mrb[25].mxu0  ;;  %v8814_v50 = vld [vmem:[#allocation3 + $0x3b4] ss:$8 sps:$4 sm:$0xff]  }
 0x7d7   :  { %v3367_v33 = vpop.f32.mrb[26].mxu0 }
 0x7d8   :  { %v12608_v60 = vmax.f32 %v12020_v15, 0.0  ;;  %5653 = vmatpush1.bf16.msra.mxu0 %v8788_v18  ;;  %v12027_v22 = vadd.f32 %v3367_v33, %v11615_v55  ;;  %v12029_v51 = vpop.f32.mrb[27].mxu0  ;;  %v8809_v18 = vld [vmem:[#allocation3 + $0x3a0] ss:$8 sps:$4 sm:$0xff]   ;;  %v8817_v33 = vld [vmem:[#allocation3 + $0x3c4] ss:$8 sps:$4 sm:$0xff]  }
 0x7d9   :  { %5654 = vmatprep.subr.bf16.mxu0 %v8793_v34  ;;  %v8812_v34 = vld [vmem:[#allocation3 + $0x3b0] ss:$8 sps:$4 sm:$0xff]  }
 0x7da   :  { %v12607_v37 = vmax.f32 %v12027_v22, 0.0  ;;  %v8573_v2 = vpack.i.bf16 %v12608_v60, %v12610_v53 }
 0x7dc   :  { %5655 = vmatpush1.bf16.msra.mxu0 %v8791_v57  ;;  %8574 = vrot.lane.b32.xlu1 %v8573_v2, %s9305_s21  ;;  %v8588_v29 = vpack.i.bf16 %v12607_v37, %v12609_v14  ;;  %v8815_v57 = vld [vmem:[#allocation3 + $0x3c0] ss:$8 sps:$4 sm:$0xff]   ;;  %v8958_v14 = vld [vmem:[#allocation3 + $0x34] ss:$8 sps:$4 sm:$0xff]  }
 0x7dd   :  { %5656 = vmatprep.subr.bf16.mxu0 %v8796_v30  ;;  %v8820_v30 = vld [vmem:[#allocation3 + $0x3d4] ss:$8 sps:$4 sm:$0xff]  }
 0x7de   :  { %8589 = vrot.lane.b32.xlu0 %v8588_v29, %s9305_s21 }
 0x7e0   :  { %5657 = vmatpush1.bf16.msra.mxu0 %v8794_v45  ;;  %8579 = vrot.lane.b32.xlu1 %v8573_v2, %s9299_s5  ;;  %v8823_v45 = vld [vmem:[#allocation3 + $0x3e4] ss:$8 sps:$4 sm:$0xff]  }
 0x7e1   :  { %5658 = vmatprep.subr.bf16.mxu0 %v8799_v62  ;;  %v8826_v62 = vld [vmem:[#allocation3 + $0x3f4] ss:$8 sps:$4 sm:$0xff]  }
 0x7e2   :  { %8594 = vrot.lane.b32.xlu0 %v8588_v29, %s9299_s5 }
 0x7e4   :  { %5659 = vmatpush1.bf16.msra.mxu0 %v8797_v24  ;;  %8584 = vrot.lane.b32.xlu1 %v8573_v2, %s9308_s25  ;;  %v8818_v2 = vld [vmem:[#allocation3 + $0x3d0] ss:$8 sps:$4 sm:$0xff]  }
 0x7e5   :  { %5660 = vmatprep.subr.bf16.mxu0 %v8802_v26  ;;  %v8824_v24 = vld [vmem:[#allocation3 + $0x3f0] ss:$8 sps:$4 sm:$0xff]   ;;  %v8829_v26 = vld [vmem:[#allocation3 + $0x404] ss:$8 sps:$4 sm:$0xff]  }
 0x7e6   :  { %8599 = vrot.lane.b32.xlu0 %v8588_v29, %s9308_s25  ;;  %v8821_v29 = vld [vmem:[#allocation3 + $0x3e0] ss:$8 sps:$4 sm:$0xff]  }
 0x7e8   :  { %5661 = vmatpush1.bf16.msra.mxu0 %v8800_v3  ;;  %v8827_v3 = vld [vmem:[#allocation3 + $0x400] ss:$8 sps:$4 sm:$0xff]  }
 0x7e9   :  { %5662 = vmatprep.subr.bf16.mxu0 %v8805_v47  ;;  %v8832_v47 = vld [vmem:[#allocation3 + $0x414] ss:$8 sps:$4 sm:$0xff]  }
 0x7ec   :  { %5663 = vmatpush1.bf16.msra.mxu0 %v8803_v21  ;;  %v8830_v21 = vld [vmem:[#allocation3 + $0x410] ss:$8 sps:$4 sm:$0xff]  }
 0x7ed   :  { %5664 = vmatprep.subr.bf16.mxu0 %v8808_v43  ;;  %v8835_v43 = vld [vmem:[#allocation3 + $0x424] ss:$8 sps:$4 sm:$0xff]  }
 0x7f0   :  { %5665 = vmatpush1.bf16.msra.mxu0 %v8806_v11  ;;  %v8833_v11 = vld [vmem:[#allocation3 + $0x420] ss:$8 sps:$4 sm:$0xff]  }
 0x7f1   :  { %5666 = vmatprep.subr.bf16.mxu0 %v8811_v28  ;;  %v8838_v28 = vld [vmem:[#allocation3 + $0x434] ss:$8 sps:$4 sm:$0xff]  }
 0x7f4   :  { %5667 = vmatpush1.bf16.msra.mxu0 %v8809_v18  ;;  %v8836_v18 = vld [vmem:[#allocation3 + $0x430] ss:$8 sps:$4 sm:$0xff]  }
 0x7f5   :  { %5668 = vmatprep.subr.bf16.mxu0 %v8814_v50  ;;  %v8841_v50 = vld [vmem:[#allocation3 + $0x444] ss:$8 sps:$4 sm:$0xff]  }
 0x7f8   :  { %5669 = vmatpush1.bf16.msra.mxu0 %v8812_v34  ;;  %v8839_v34 = vld [vmem:[#allocation3 + $0x440] ss:$8 sps:$4 sm:$0xff]  }
 0x7f9   :  { %5670 = vmatprep.subr.bf16.mxu0 %v8817_v33  ;;  %v8844_v33 = vld [vmem:[#allocation3 + $0x454] ss:$8 sps:$4 sm:$0xff]  }
 0x7fc   :  { %5671 = vmatpush1.bf16.msra.mxu0 %v8815_v57  ;;  %v8842_v57 = vld [vmem:[#allocation3 + $0x450] ss:$8 sps:$4 sm:$0xff]  }
 0x7fd   :  { %5672 = vmatprep.subr.bf16.mxu0 %v8820_v30  ;;  %v8848_v30 = vld [vmem:[#allocation3 + $0x470] ss:$8 sps:$4 sm:$0xff]  }
 0x800   :  { %5673 = vmatpush1.bf16.msra.mxu0 %v8818_v2  ;;  %v8853_v2 = vld [vmem:[#allocation3 + $0x484] ss:$8 sps:$4 sm:$0xff]  }
 0x801   :  { %5674 = vmatprep.subr.bf16.mxu0 %v8823_v45 }
 0x804   :  { %5675 = vmatpush1.bf16.msra.mxu0 %v8821_v29  ;;  %v8851_v29 = vld [vmem:[#allocation3 + $0x480] ss:$8 sps:$4 sm:$0xff]  }
 0x805   :  { %5676 = vmatprep.subr.bf16.mxu0 %v8826_v62  ;;  %v8856_v62 = vld [vmem:[#allocation3 + $0x494] ss:$8 sps:$4 sm:$0xff]  }
 0x808   :  { %5677 = vmatpush1.bf16.msra.mxu0 %v8824_v24  ;;  %v8938_v24 = vld [vmem:[#allocation3] ss:$8 sps:$4 sm:$0xff]  }
 0x809   :  { %5689 = vmatprep.subr.bf16.mxu0 %v8829_v26  ;;  %v8940_v26 = vld [vmem:[#allocation3 + $0x4] ss:$8 sps:$4 sm:$0xff]  }
 0x80a   :  { %5517 = vmatprep.subr.bf16.mxu1 %v8940_v26  ;;  %v8857_v26 = vld [vmem:[#allocation3 + $0x4a0] ss:$8 sps:$4 sm:$0xff]  }
 0x80b   :  { %5679 = vmatmul.mubr.bf16.vlgmr.msra.gmra.mrb[28].mxu0 %v3971_v35  ;;  %v8850_v35 = vld [vmem:[#allocation3 + $0x474] ss:$8 sps:$4 sm:$0xff]   ;;  %5518 = vmatpush1.bf16.msra.mxu1 %v8938_v24 }
 0x80c   :  { %5690 = vmatpush1.bf16.msra.mxu0 %v8827_v3 }
 0x80d   :  { %5691 = vmatprep.subr.bf16.mxu0 %v8832_v47 }
 0x810   :  { %5692 = vmatpush1.bf16.msra.mxu0 %v8830_v21 }
 0x811   :  { %5693 = vmatprep.subr.bf16.mxu0 %v8835_v43 }
 0x814   :  { %5694 = vmatpush1.bf16.msra.mxu0 %v8833_v11 }
 0x815   :  { %5695 = vmatprep.subr.bf16.mxu0 %v8838_v28  ;;  %v8946_v28 = vld [vmem:[#allocation3 + $0x14] ss:$8 sps:$4 sm:$0xff]  }
 0x816   :  { %5519 = vmatprep.subr.bf16.mxu1 %v8946_v28  ;;  %v8950_v28 = vld [vmem:[#allocation3 + $0x20] ss:$8 sps:$4 sm:$0xff]  }
 0x818   :  { %5696 = vmatpush1.bf16.msra.mxu0 %v8836_v18 }
 0x819   :  { %5697 = vmatprep.subr.bf16.mxu0 %v8841_v50  ;;  %v8854_v50 = vld [vmem:[#allocation3 + $0x490] ss:$8 sps:$4 sm:$0xff]  }
 0x81c   :  { %5698 = vmatpush1.bf16.msra.mxu0 %v8839_v34  ;;  %v8944_v34 = vld [vmem:[#allocation3 + $0x10] ss:$8 sps:$4 sm:$0xff]  }
 0x81d   :  { %5699 = vmatprep.subr.bf16.mxu0 %v8844_v33  ;;  %5520 = vmatpush1.bf16.msra.mxu1 %v8944_v34 }
 0x820   :  { %5700 = vmatpush1.bf16.msra.mxu0 %v8842_v57 }
 0x821   :  { %5701 = vmatprep.subr.bf16.mxu0 %v8847_v38  ;;  %v8859_v38 = vld [vmem:[#allocation3 + $0x4a4] ss:$8 sps:$4 sm:$0xff]  }
 0x824   :  { %5702 = vmatpush1.bf16.msra.mxu0 %v8845_v0  ;;  %v8952_v0 = vld [vmem:[#allocation3 + $0x24] ss:$8 sps:$4 sm:$0xff]  }
 0x825   :  { %5703 = vmatprep.subr.bf16.mxu0 %v8850_v35  ;;  %5521 = vmatprep.subr.bf16.mxu1 %v8952_v0  ;;  %v8860_v0 = vld [vmem:[#allocation3 + $0x4b0] ss:$8 sps:$4 sm:$0xff]  }
 0x826   :  { %5522 = vmatpush1.bf16.msra.mxu1 %v8950_v28  ;;  %v8968_v28 = vld [vmem:[#allocation3 + $0x50] ss:$8 sps:$4 sm:$0xff]  }
 0x827   :  { %5523 = vmatprep.subr.bf16.mxu1 %v8958_v14  ;;  %v8976_v14 = vld [vmem:[#allocation3 + $0x64] ss:$8 sps:$4 sm:$0xff]  }
 0x828   :  { %5704 = vmatpush1.bf16.msra.mxu0 %v8848_v30  ;;  %v12050_v45 = vpop.permute.xlu1 %8544 }
 0x829   :  { %5705 = vmatprep.subr.bf16.mxu0 %v8853_v2  ;;  %v12617_v47 = vunpack.i.h.bf16 %v12050_v45  ;;  %v8546_v21 = vunpack.i.l.bf16 %v12050_v45 }
 0x82a   :  { %v12052_v3 = vpop.permute.xlu0 %8559  ;;  %5524 = vmatpush1.bf16.msra.mxu1 %v8956_v39 }
 0x82b   :  { %v12615_v43 = vunpack.i.h.bf16 %v12052_v3  ;;  %v8561_v11 = vunpack.i.l.bf16 %v12052_v3  ;;  %v3552_v30 = vsel %vm256_vm3, %v8546_v21, %v12617_v47 }
 0x82c   :  { %5706 = vmatpush1.bf16.msra.mxu0 %v8851_v29  ;;  %v12058_v18 = vpop.permute.xlu1 %8549  ;;  %v3616_v34 = vmax.f32 %v3424_v25, %v3552_v30  ;;  %v8865_v25 = vld [vmem:[#allocation3 + $0x4c4] ss:$8 sps:$4 sm:$0xff]  }
 0x82d   :  { %v12613_v33 = vunpack.i.h.bf16 %v12058_v18  ;;  %v8551_v57 = vunpack.i.l.bf16 %v12058_v18  ;;  %5707 = vmatprep.subr.bf16.mxu0 %v8856_v62  ;;  %v3568_v2 = vsel %vm256_vm3, %v8561_v11, %v12615_v43 }
 0x82e   :  { %v12062_v35 = vpop.permute.xlu0 %8564  ;;  %v3632_v53 = vmax.f32 %v3440_v61, %v3568_v2  ;;  %v8964_v61 = vld [vmem:[#allocation3 + $0x44] ss:$8 sps:$4 sm:$0xff]  }
 0x82f   :  { %v12612_v29 = vunpack.i.h.bf16 %v12062_v35  ;;  %v8566_v62 = vunpack.i.l.bf16 %v12062_v35  ;;  %v3715_v52 = vsel %vm690_vm7, %v8551_v57, %v12613_v33  ;;  %5525 = vmatprep.subr.bf16.mxu1 %v8964_v61  ;;  %v3714_v23 = vsel %vm690_vm7, %v8522_v13, %v8551_v57 }
 0x830   :  { %5708 = vmatpush1.bf16.msra.mxu0 %v8854_v50  ;;  %v12076_v24 = vpop.permute.xlu1 %8554  ;;  %v8862_v50 = vld [vmem:[#allocation3 + $0x4b4] ss:$8 sps:$4 sm:$0xff]  }
 0x831   :  { %v3731_v7 = vsel %vm690_vm7, %v8566_v62, %v12612_v29  ;;  %v12616_v37 = vunpack.i.h.bf16 %v12076_v24  ;;  %v8556_v60 = vunpack.i.l.bf16 %v12076_v24  ;;  %5709 = vmatprep.subr.bf16.mxu0 %v8859_v38  ;;  %v3779_v38 = vmax.f32 %v3616_v34, %v3715_v52  ;;  %v8962_v52 = vld [vmem:[#allocation3 + $0x40] ss:$8 sps:$4 sm:$0xff]  }
 0x832   :  { %v12092_v40 = vpop.permute.xlu0 %8569  ;;  %v3795_v43 = vmax.f32 %v3632_v53, %v3731_v7  ;;  %v8868_v7 = vld [vmem:[#allocation3 + $0x4d4] ss:$8 sps:$4 sm:$0xff]   ;;  %5526 = vmatpush1.bf16.msra.mxu1 %v8962_v52  ;;  %v8974_v34 = vld [vmem:[#allocation3 + $0x60] ss:$8 sps:$4 sm:$0xff]  }
 0x833   :  { %v3878_v29 = vsel %vm773_vm8, %v8556_v60, %v12616_v37  ;;  %v8572_v33 = vunpack.i.h.bf16 %v12092_v40  ;;  %v8571_v49 = vunpack.i.l.bf16 %v12092_v40  ;;  %v8863_v37 = vld [vmem:[#allocation3 + $0x4c0] ss:$8 sps:$4 sm:$0xff]   ;;  %v8970_v53 = vld [vmem:[#allocation3 + $0x54] ss:$8 sps:$4 sm:$0xff]  }
 0x834   :  { %5710 = vmatpush1.bf16.msra.mxu0 %v8857_v26  ;;  %v3942_v30 = vmax.f32 %v3779_v38, %v3878_v29  ;;  %v8866_v26 = vld [vmem:[#allocation3 + $0x4d0] ss:$8 sps:$4 sm:$0xff]   ;;  %5527 = vmatprep.subr.bf16.mxu1 %v8970_v53  ;;  %v8869_v29 = vld [vmem:[#allocation3 + $0x4e0] ss:$8 sps:$4 sm:$0xff]   ;;  %v12628_v38 = vmax.f32 %v11720_v42, 0.0  ;;  %v3877_v42 = vsel %vm773_vm8, %v8527_v31, %v8556_v60  ;;  %v12631_v53 = vunpack.i.h.bf16 %v12052_v3 }
 0x835   :  { %v3894_v17 = vsel %vm773_vm8, %v8571_v49, %v8572_v33  ;;  %5711 = vmatprep.subr.bf16.mxu0 %v8862_v50  ;;  %v8871_v50 = vld [vmem:[#allocation3 + $0x4e4] ss:$8 sps:$4 sm:$0xff]   ;;  %v8886_v52 = vld [vmem:[#allocation3 + $0x534] ss:$8 sps:$4 sm:$0xff]   ;;  %v8893_v40 = vld [vmem:[#allocation3 + $0x560] ss:$8 sps:$4 sm:$0xff]  }
 0x836   :  { %v3958_v2 = vmax.f32 %v3795_v43, %v3894_v17  ;;  %v3567_v43 = vsel %vm256_vm3, %v8532_v54, %v8561_v11  ;;  %5528 = vmatpush1.bf16.msra.mxu1 %v8968_v28  ;;  %v12629_v54 = vmax.f32 %v11713_v41, 0.0  ;;  %v8878_v41 = vld [vmem:[#allocation3 + $0x510] ss:$8 sps:$4 sm:$0xff]   ;;  %v8881_v17 = vld [vmem:[#allocation3 + $0x520] ss:$8 sps:$4 sm:$0xff]  }
 0x837   :  { %5529 = vmatprep.subr.bf16.mxu1 %v8976_v14  ;;  %v12632_v14 = vmax.f32 %v11907_v10, 0.0  ;;  %v12634_v10 = vmax.f32 %v11914_v56, 0.0 }
 0x838   :  { %5712 = vmatpush1.bf16.msra.mxu0 %v8860_v0  ;;  %v3974_v47 = vpack.c.bf16 %v3958_v2, %v3942_v30  ;;  %v3631_v0 = vmax.f32 %v12628_v38, %v3567_v43 }
 0x839   :  { %5713 = vmatprep.subr.bf16.mxu0 %v8865_v25  ;;  %v12630_v25 = vunpack.i.h.bf16 %v12050_v45 }
 0x83a   :  { %5721 = vmatprep.mubr.bf16.mxu0 %v3974_v47  ;;  %v3551_v47 = vsel %vm256_vm3, %v8517_v9, %v8546_v21  ;;  %v3893_v9 = vsel %vm773_vm8, %v8542_v44, %v8571_v49  ;;  %v8872_v21 = vld [vmem:[#allocation3 + $0x4f0] ss:$8 sps:$4 sm:$0xff]   ;;  %5530 = vmatpush1.bf16.msra.mxu1 %v8974_v34  ;;  %v8880_v49 = vld [vmem:[#allocation3 + $0x514] ss:$8 sps:$4 sm:$0xff]  }
 0x83b   :  { %v3615_v63 = vmax.f32 %v12629_v54, %v3551_v47 }
 0x83c   :  { %5714 = vmatpush1.bf16.msra.mxu0 %v8863_v37  ;;  %v3730_v37 = vsel %vm690_vm7, %v8537_v6, %v8566_v62 }
 0x83d   :  { %5715 = vmatprep.subr.bf16.mxu0 %v8868_v7  ;;  %v3794_v6 = vmax.f32 %v3631_v0, %v3730_v37  ;;  %v3778_v11 = vmax.f32 %v3615_v63, %v3714_v23  ;;  %v8884_v37 = vld [vmem:[#allocation3 + $0x530] ss:$8 sps:$4 sm:$0xff]  }
 0x83f   :  { %v3957_v62 = vmax.f32 %v3794_v6, %v3893_v9  ;;  %v3941_v13 = vmax.f32 %v3778_v11, %v3877_v42  ;;  %v12636_v11 = vmax.f32 %v12013_v32, 0.0 }
 0x840   :  { %5716 = vmatpush1.bf16.msra.mxu0 %v8866_v26 }
 0x841   :  { %5717 = vmatprep.subr.bf16.mxu0 %v8871_v50  ;;  %v3973_v57 = vpack.c.bf16 %v3957_v62, %v3941_v13 }
 0x844   :  { %5718 = vmatpush1.bf16.msra.mxu0 %v8869_v29  ;;  %v12633_v29 = vunpack.i.h.bf16 %v12058_v18  ;;  %v12635_v18 = vunpack.i.h.bf16 %v12062_v35  ;;  %v8887_v35 = vld [vmem:[#allocation3 + $0x540] ss:$8 sps:$4 sm:$0xff]  }
 0x845   :  { %5719 = vmatprep.subr.bf16.mxu0 %v8874_v46  ;;  %v8889_v46 = vld [vmem:[#allocation3 + $0x544] ss:$8 sps:$4 sm:$0xff]  }
 0x848   :  { %5720 = vmatpush1.bf16.msra.mxu0 %v8872_v21 }
 0x849   :  { %5732 = vmatprep.subr.bf16.mxu0 %v8877_v4  ;;  %v12637_v4 = vmax.f32 %v12017_v5, 0.0  ;;  %v8892_v5 = vld [vmem:[#allocation3 + $0x554] ss:$8 sps:$4 sm:$0xff]  }
 0x84b   :  { %5722 = vmatmul.mubr.bf16.vlgmr.msra.gmra.mrb[28].mxu0 %v3973_v57 }
 0x84c   :  { %5733 = vmatpush1.bf16.msra.mxu0 %v8875_v8 }
 0x84d   :  { %5734 = vmatprep.subr.bf16.mxu0 %v8880_v49  ;;  %v12638_v49 = vunpack.i.h.bf16 %v12076_v24 }
 0x84e   :  { %v12130_v44 = vpop.permute.xlu1 %8574 }
 0x84f   :  { %v8576_v31 = vunpack.i.l.bf16 %v12130_v44  ;;  %v8577_v60 = vunpack.i.h.bf16 %v12130_v44 }
 0x850   :  { %5735 = vmatpush1.bf16.msra.mxu0 %v8878_v41  ;;  %v12134_v39 = vpop.permute.xlu0 %8589 }
 0x851   :  { %v3553_v61 = vsel %vm256_vm3, %v12630_v25, %v8576_v31  ;;  %v8592_v30 = vunpack.i.h.bf16 %v12134_v39  ;;  %v8591_v2 = vunpack.i.l.bf16 %v12134_v39  ;;  %5736 = vmatprep.subr.bf16.mxu0 %v8883_v12  ;;  %v3554_v45 = vsel %vm256_vm3, %v8576_v31, %v8577_v60 }
 0x852   :  { %v12141_v7 = vpop.permute.xlu1 %8579  ;;  %v3617_v43 = vmax.f32 %v12632_v14, %v3553_v61  ;;  %v3618_v62 = vmax.f32 %v12636_v11, %v3554_v45  ;;  %v8895_v45 = vld [vmem:[#allocation3 + $0x564] ss:$8 sps:$4 sm:$0xff]   ;;  %v8982_v11 = vld [vmem:[#allocation3 + $0x74] ss:$8 sps:$4 sm:$0xff]  }
 0x853   :  { %v3569_v26 = vsel %vm256_vm3, %v12631_v53, %v8591_v2  ;;  %v8582_v28 = vunpack.i.h.bf16 %v12141_v7  ;;  %v8581_v50 = vunpack.i.l.bf16 %v12141_v7  ;;  %v3570_v3 = vsel %vm256_vm3, %v8591_v2, %v8592_v30  ;;  %v8890_v53 = vld [vmem:[#allocation3 + $0x550] ss:$8 sps:$4 sm:$0xff]   ;;  %5531 = vmatprep.subr.bf16.mxu1 %v8982_v11  ;;  %v9012_v11 = vld [vmem:[#allocation3 + $0xc4] ss:$8 sps:$4 sm:$0xff]  }
 0x854   :  { %5737 = vmatpush1.bf16.msra.mxu0 %v8881_v17  ;;  %v12153_v47 = vpop.permute.xlu0 %8594  ;;  %v3633_v23 = vmax.f32 %v12634_v10, %v3569_v26  ;;  %v3634_v13 = vmax.f32 %v12637_v4, %v3570_v3  ;;  %v8901_v3 = vld [vmem:[#allocation3 + $0x584] ss:$8 sps:$4 sm:$0xff]   ;;  %v8905_v10 = vld [vmem:[#allocation3 + $0x5a0] ss:$8 sps:$4 sm:$0xff]   ;;  %v12206_v4 = vadd.f32 %v12022_v36, %v11581_v59 }
 0x855   :  { %v3716_v34 = vsel %vm690_vm7, %v12633_v29, %v8581_v50  ;;  %v8597_v38 = vunpack.i.h.bf16 %v12153_v47  ;;  %v8596_v0 = vunpack.i.l.bf16 %v12153_v47  ;;  %5738 = vmatprep.subr.bf16.mxu0 %v8886_v52  ;;  %v3717_v9 = vsel %vm690_vm7, %v8581_v50, %v8582_v28  ;;  %v8899_v29 = vld [vmem:[#allocation3 + $0x580] ss:$8 sps:$4 sm:$0xff]  }
 0x856   :  { %v3780_v54 = vmax.f32 %v3617_v43, %v3716_v34  ;;  %v12168_v63 = vpop.permute.xlu1 %8584  ;;  %v3781_v17 = vmax.f32 %v3618_v62, %v3717_v9  ;;  %v8904_v34 = vld [vmem:[#allocation3 + $0x594] ss:$8 sps:$4 sm:$0xff]   ;;  %v8908_v9 = vld [vmem:[#allocation3 + $0x5b0] ss:$8 sps:$4 sm:$0xff]   ;;  %v8919_v62 = vld [vmem:[#allocation3 + $0x5e4] ss:$8 sps:$4 sm:$0xff]  }
 0x857   :  { %v3732_v6 = vsel %vm690_vm7, %v12635_v18, %v8596_v0  ;;  %v3733_v42 = vsel %vm690_vm7, %v8596_v0, %v8597_v38  ;;  %v8587_v21 = vunpack.i.h.bf16 %v12168_v63  ;;  %v8586_v56 = vunpack.i.l.bf16 %v12168_v63  ;;  %v8902_v0 = vld [vmem:[#allocation3 + $0x590] ss:$8 sps:$4 sm:$0xff]   ;;  %v8911_v18 = vld [vmem:[#allocation3 + $0x5c0] ss:$8 sps:$4 sm:$0xff]  }
 0x858   :  { %v3796_v8 = vmax.f32 %v3633_v23, %v3732_v6  ;;  %5739 = vmatpush1.bf16.msra.mxu0 %v8884_v37  ;;  %v12182_v57 = vpop.permute.xlu0 %8599  ;;  %v3797_v25 = vmax.f32 %v3634_v13, %v3733_v42  ;;  %v8896_v37 = vld [vmem:[#allocation3 + $0x570] ss:$8 sps:$4 sm:$0xff]   ;;  %v8910_v23 = vld [vmem:[#allocation3 + $0x5b4] ss:$8 sps:$4 sm:$0xff]   ;;  %v3428_v36 = vmax.f32 %v12206_v4, 0.0 }
 0x859   :  { %v3879_v41 = vsel %vm773_vm8, %v12638_v49, %v8586_v56  ;;  %v3880_v12 = vsel %vm773_vm8, %v8586_v56, %v8587_v21  ;;  %v8602_v31 = vunpack.i.h.bf16 %v12182_v57  ;;  %v8601_v32 = vunpack.i.l.bf16 %v12182_v57  ;;  %5740 = vmatprep.subr.bf16.mxu0 %v8889_v46  ;;  %v8907_v46 = vld [vmem:[#allocation3 + $0x5a4] ss:$8 sps:$4 sm:$0xff]   ;;  %v8916_v6 = vld [vmem:[#allocation3 + $0x5d4] ss:$8 sps:$4 sm:$0xff]   ;;  %v8914_v42 = vld [vmem:[#allocation3 + $0x5d0] ss:$8 sps:$4 sm:$0xff]  }
 0x85a   :  { %v12192_v61 = vmax.f32 %v3780_v54, %v3879_v41  ;;  %v3944_v26 = vmax.f32 %v3781_v17, %v3880_v12  ;;  %v8913_v54 = vld [vmem:[#allocation3 + $0x5c4] ss:$8 sps:$4 sm:$0xff]   ;;  %v8980_v56 = vld [vmem:[#allocation3 + $0x70] ss:$8 sps:$4 sm:$0xff]   ;;  %v8986_v12 = vld [vmem:[#allocation3 + $0x80] ss:$8 sps:$4 sm:$0xff]  }
 0x85b   :  { %v3895_v24 = vsel %vm773_vm8, %v8572_v33, %v8601_v32  ;;  %v3896_v2 = vsel %vm773_vm8, %v8601_v32, %v8602_v31  ;;  %v8898_v33 = vld [vmem:[#allocation3 + $0x574] ss:$8 sps:$4 sm:$0xff]   ;;  %5532 = vmatpush1.bf16.msra.mxu1 %v8980_v56  ;;  %v8988_v32 = vld [vmem:[#allocation3 + $0x84] ss:$8 sps:$4 sm:$0xff]   ;;  %v9010_v56 = vld [vmem:[#allocation3 + $0xc0] ss:$8 sps:$4 sm:$0xff]  }
 0x85c   :  { %v12200_v52 = vmax.f32 %v3796_v8, %v3895_v24  ;;  %5741 = vmatpush1.bf16.msra.mxu0 %v8887_v35  ;;  %v3960_v50 = vmax.f32 %v3797_v25, %v3896_v2  ;;  %v8917_v8 = vld [vmem:[#allocation3 + $0x5e0] ss:$8 sps:$4 sm:$0xff]   ;;  %v12210_v35 = vadd.f32 %v12029_v51, %v11615_v55  ;;  %v8922_v17 = vld [vmem:[#allocation3 + $0x5f4] ss:$8 sps:$4 sm:$0xff]   ;;  %5533 = vmatprep.subr.bf16.mxu1 %v8988_v32  ;;  %v8920_v51 = vld [vmem:[#allocation3 + $0x5f0] ss:$8 sps:$4 sm:$0xff]  }
 0x85d   :  { %5742 = vmatprep.subr.bf16.mxu0 %v8892_v5  ;;  %v8937_v32 = vld [vmem:[#allocation3 + $0x644] ss:$8 sps:$4 sm:$0xff]  }
 0x85e   :  { %v3976_v14 = vpack.c.bf16 %v3960_v50, %v3944_v26  ;;  %v3975_v43 = vpack.c.bf16 %v12200_v52, %v12192_v61  ;;  %v3106_v61 = vadd.f32 %v11417_v19, %v11581_v59  ;;  %v3112_v52 = vadd.f32 %v11427_v58, %v11615_v55  ;;  %v8934_v19 = vld [vmem:[#allocation3 + $0x634] ss:$8 sps:$4 sm:$0xff]  }
 0x85f   :  { %5534 = vmatpush1.bf16.msra.mxu1 %v8986_v12  ;;  %v9018_v12 = vld [vmem:[#allocation3 + $0xd4] ss:$8 sps:$4 sm:$0xff]  }
 0x860   :  { %5743 = vmatpush1.bf16.msra.mxu0 %v8890_v53  ;;  %5764 = vmatprep.mubr.bf16.mxu0 %v3976_v14  ;;  %v3444_v53 = vmax.f32 %v12210_v35, 0.0  ;;  %v8994_v14 = vld [vmem:[#allocation3 + $0x94] ss:$8 sps:$4 sm:$0xff]   ;;  %v12264_v58 = vmax.f32 %v3112_v52, 0.0  ;;  %v8973_v52 = vld [vmem:[#allocation3 + $0x6a4] ss:$8 sps:$4 sm:$0xff]  }
 0x861   :  { %5744 = vmatprep.subr.bf16.mxu0 %v8895_v45  ;;  %v8992_v45 = vld [vmem:[#allocation3 + $0x90] ss:$8 sps:$4 sm:$0xff]   ;;  %5535 = vmatprep.subr.bf16.mxu1 %v8994_v14 }
 0x863   :  { %5536 = vmatpush1.bf16.msra.mxu1 %v8992_v45  ;;  %v8943_v45 = vld [vmem:[#allocation3 + $0x654] ss:$8 sps:$4 sm:$0xff]  }
 0x864   :  { %5745 = vmatpush1.bf16.msra.mxu0 %v8893_v40  ;;  %v8925_v40 = vld [vmem:[#allocation3 + $0x604] ss:$8 sps:$4 sm:$0xff]  }
 0x865   :  { %5746 = vmatprep.subr.bf16.mxu0 %v8898_v33 }
 0x868   :  { %5747 = vmatpush1.bf16.msra.mxu0 %v8896_v37 }
 0x869   :  { %5748 = vmatprep.subr.bf16.mxu0 %v8901_v3  ;;  %v8923_v3 = vld [vmem:[#allocation3 + $0x600] ss:$8 sps:$4 sm:$0xff]  }
 0x86c   :  { %5749 = vmatpush1.bf16.msra.mxu0 %v8899_v29  ;;  %v8998_v29 = vld [vmem:[#allocation3 + $0xa0] ss:$8 sps:$4 sm:$0xff]  }
 0x86d   :  { %5750 = vmatprep.subr.bf16.mxu0 %v8904_v34  ;;  %v9000_v34 = vld [vmem:[#allocation3 + $0xa4] ss:$8 sps:$4 sm:$0xff]  }
 0x86e   :  { %5537 = vmatprep.subr.bf16.mxu1 %v9000_v34 }
 0x86f   :  { %5538 = vmatpush1.bf16.msra.mxu1 %v8998_v29  ;;  %v8949_v29 = vld [vmem:[#allocation3 + $0x664] ss:$8 sps:$4 sm:$0xff]  }
 0x870   :  { %5751 = vmatpush1.bf16.msra.mxu0 %v8902_v0  ;;  %v8928_v0 = vld [vmem:[#allocation3 + $0x614] ss:$8 sps:$4 sm:$0xff]  }
 0x871   :  { %5752 = vmatprep.subr.bf16.mxu0 %v8907_v46  ;;  %v12238_v46 = vadd.f32 %v11419_v48, %v11581_v59  ;;  %v8931_v48 = vld [vmem:[#allocation3 + $0x624] ss:$8 sps:$4 sm:$0xff]  }
 0x874   :  { %5753 = vmatpush1.bf16.msra.mxu0 %v8905_v10  ;;  %v3110_v10 = vadd.f32 %v11424_v1, %v11615_v55 }
 0x875   :  { %5754 = vmatprep.subr.bf16.mxu0 %v8910_v23  ;;  %v8926_v23 = vld [vmem:[#allocation3 + $0x610] ss:$8 sps:$4 sm:$0xff]  }
 0x876   :  { %v12251_v1 = vmax.f32 %v3110_v10, 0.0  ;;  %v8955_v10 = vld [vmem:[#allocation3 + $0x674] ss:$8 sps:$4 sm:$0xff]  }
 0x878   :  { %5755 = vmatpush1.bf16.msra.mxu0 %v8908_v9 }
 0x879   :  { %5756 = vmatprep.subr.bf16.mxu0 %v8913_v54  ;;  %v9004_v54 = vld [vmem:[#allocation3 + $0xb0] ss:$8 sps:$4 sm:$0xff]  }
 0x87c   :  { %5757 = vmatpush1.bf16.msra.mxu0 %v8911_v18  ;;  %v9006_v18 = vld [vmem:[#allocation3 + $0xb4] ss:$8 sps:$4 sm:$0xff]  }
 0x87d   :  { %5758 = vmatprep.subr.bf16.mxu0 %v8916_v6  ;;  %v3416_v6 = vmax.f32 %v12238_v46, 0.0  ;;  %5539 = vmatprep.subr.bf16.mxu1 %v9006_v18  ;;  %v8959_v18 = vld [vmem:[#allocation3 + $0x680] ss:$8 sps:$4 sm:$0xff]  }
 0x87e   :  { %5540 = vmatpush1.bf16.msra.mxu1 %v9004_v54  ;;  %v8961_v54 = vld [vmem:[#allocation3 + $0x684] ss:$8 sps:$4 sm:$0xff]  }
 0x87f   :  { %v3406_v13 = vpop.f32.mrb[32].mxu1  ;;  %5541 = vmatprep.subr.bf16.mxu1 %v9012_v11  ;;  %v8985_v11 = vld [vmem:[#allocation3 + $0x6c4] ss:$8 sps:$4 sm:$0xff]  }
 0x880   :  { %v12213_v49 = vadd.f32 %v3406_v13, %v11581_v59  ;;  %5759 = vmatpush1.bf16.msra.mxu0 %v8914_v42  ;;  %v3408_v41 = vpop.f32.mrb[33].mxu1  ;;  %v8929_v42 = vld [vmem:[#allocation3 + $0x620] ss:$8 sps:$4 sm:$0xff]  }
 0x881   :  { %v3410_v5 = vpop.f32.mrb[34].mxu1  ;;  %5760 = vmatprep.subr.bf16.mxu0 %v8919_v62  ;;  %v12232_v37 = vadd.f32 %v3408_v41, %v11581_v59  ;;  %v12262_v62 = vmax.f32 %v3106_v61, 0.0  ;;  %v9016_v41 = vld [vmem:[#allocation3 + $0xd0] ss:$8 sps:$4 sm:$0xff]  }
 0x882   :  { %v3429_v25 = vmax.f32 %v12213_v49, 0.0  ;;  %v12218_v24 = vadd.f32 %v3410_v5, %v11615_v55  ;;  %v3412_v2 = vpop.f32.mrb[35].mxu1  ;;  %5542 = vmatpush1.bf16.msra.mxu1 %v9010_v56  ;;  %v12639_v5 = vmov 0.0   ;;  %v8965_v61 = vld [vmem:[#allocation3 + $0x690] ss:$8 sps:$4 sm:$0xff]  }
 0x883   :  { %v3430_v9 = vmax.f32 %v12232_v37, 0.0  ;;  %v3413_v59 = vadd.f32 %v3412_v2, %v11615_v55  ;;  %v8638_v13 = vpack.i.bf16 %v12251_v1, %v12262_v62  ;;  %5543 = vmatprep.subr.bf16.mxu1 %v9018_v12  ;;  %v8935_v2 = vld [vmem:[#allocation3 + $0x640] ss:$8 sps:$4 sm:$0xff]   ;;  %v8977_v56 = vld [vmem:[#allocation3 + $0x6b0] ss:$8 sps:$4 sm:$0xff]  }
 0x884   :  { %v3445_v26 = vmax.f32 %v12218_v24, 0.0  ;;  %5761 = vmatpush1.bf16.msra.mxu0 %v8917_v8  ;;  %v8603_v50 = vpack.i.bf16 %v3429_v25, %v3428_v36  ;;  %v8932_v8 = vld [vmem:[#allocation3 + $0x630] ss:$8 sps:$4 sm:$0xff]   ;;  %v9003_v12 = vld [vmem:[#allocation3 + $0x6f4] ss:$8 sps:$4 sm:$0xff]  }
 0x885   :  { %5762 = vmatprep.subr.bf16.mxu0 %v8922_v17  ;;  %v12269_v55 = vmax.f32 %v3413_v59, 0.0  ;;  %v8648_v17 = vpack.i.bf16 %v12264_v58, %v12639_v5  ;;  %v8991_v59 = vld [vmem:[#allocation3 + $0x6d4] ss:$8 sps:$4 sm:$0xff]   ;;  %v9033_v24 = vld [vmem:[#allocation3 + $0x744] ss:$8 sps:$4 sm:$0xff]  }
 0x886   :  { %8604 = vrot.lane.b32.xlu1 %v8603_v50, %s9305_s21  ;;  %v8618_v33 = vpack.i.bf16 %v3445_v26, %v3444_v53  ;;  %5544 = vmatpush1.bf16.msra.mxu1 %v9016_v41  ;;  %v8995_v41 = vld [vmem:[#allocation3 + $0x6e0] ss:$8 sps:$4 sm:$0xff]  }
 0x887   :  { %v8663_v14 = vpack.i.bf16 %v12269_v55, %v12264_v58  ;;  %v8668_v34 = vpack.i.bf16 %v12262_v62, %v12269_v55 }
 0x888   :  { %5763 = vmatpush1.bf16.msra.mxu0 %v8920_v51  ;;  %8619 = vrot.lane.b32.xlu0 %v8618_v33, %s9305_s21  ;;  %v9022_v51 = vld [vmem:[#allocation3 + $0xe0] ss:$8 sps:$4 sm:$0xff]  }
 0x889   :  { %5775 = vmatprep.subr.bf16.mxu0 %v8925_v40  ;;  %v8941_v40 = vld [vmem:[#allocation3 + $0x650] ss:$8 sps:$4 sm:$0xff]  }
 0x88a   :  { %8609 = vrot.lane.b32.xlu1 %v8603_v50, %s9299_s5 }
 0x88b   :  { %5765 = vmatmul.mubr.bf16.vlgmr.msra.gmra.mrb[28].mxu0 %v3975_v43  ;;  %v8633_v43 = vpack.i.bf16 %v3430_v9, %v3416_v6 }
 0x88c   :  { %8624 = vrot.lane.b32.xlu0 %v8618_v33, %s9299_s5  ;;  %5776 = vmatpush1.bf16.msra.mxu0 %v8923_v3  ;;  %v9030_v3 = vld [vmem:[#allocation3 + $0xf4] ss:$8 sps:$4 sm:$0xff]  }
 0x88d   :  { %5777 = vmatprep.subr.bf16.mxu0 %v8928_v0  ;;  %v8947_v0 = vld [vmem:[#allocation3 + $0x660] ss:$8 sps:$4 sm:$0xff]  }
 0x88e   :  { %8614 = vrot.lane.b32.xlu1 %v8603_v50, %s9308_s25  ;;  %v9024_v50 = vld [vmem:[#allocation3 + $0xe4] ss:$8 sps:$4 sm:$0xff]  }
 0x88f   :  { %5545 = vmatprep.subr.bf16.mxu1 %v9024_v50 }
 0x890   :  { %8629 = vrot.lane.b32.xlu0 %v8618_v33, %s9308_s25  ;;  %5778 = vmatpush1.bf16.msra.mxu0 %v8926_v23  ;;  %v9028_v33 = vld [vmem:[#allocation3 + $0xf0] ss:$8 sps:$4 sm:$0xff]  }
 0x891   :  { %5779 = vmatprep.subr.bf16.mxu0 %v8931_v48  ;;  %5546 = vmatpush1.bf16.msra.mxu1 %v9022_v51  ;;  %v8953_v23 = vld [vmem:[#allocation3 + $0x670] ss:$8 sps:$4 sm:$0xff]   ;;  %v8967_v48 = vld [vmem:[#allocation3 + $0x694] ss:$8 sps:$4 sm:$0xff]  }
 0x892   :  { %8634 = vrot.lane.b32.xlu1 %v8633_v43, %s9305_s21  ;;  %5547 = vmatprep.subr.bf16.mxu1 %v9030_v3 }
 0x894   :  { %8644 = vrot.lane.b32.xlu0 %v8633_v43, %s9299_s5  ;;  %5780 = vmatpush1.bf16.msra.mxu0 %v8929_v42  ;;  %v8979_v42 = vld [vmem:[#allocation3 + $0x6b4] ss:$8 sps:$4 sm:$0xff]  }
 0x895   :  { %5781 = vmatprep.subr.bf16.mxu0 %v8934_v19  ;;  %5548 = vmatpush1.bf16.msra.mxu1 %v9028_v33  ;;  %v8983_v19 = vld [vmem:[#allocation3 + $0x6c0] ss:$8 sps:$4 sm:$0xff]  }
 0x896   :  { %8639 = vrot.lane.b32.xlu1 %v8638_v13, %s9305_s21  ;;  %v8989_v13 = vld [vmem:[#allocation3 + $0x6d0] ss:$8 sps:$4 sm:$0xff]  }
 0x898   :  { %8654 = vrot.lane.b32.xlu0 %v8633_v43, %s9308_s25  ;;  %5782 = vmatpush1.bf16.msra.mxu0 %v8932_v8  ;;  %v8971_v43 = vld [vmem:[#allocation3 + $0x6a0] ss:$8 sps:$4 sm:$0xff]   ;;  %v8997_v8 = vld [vmem:[#allocation3 + $0x6e4] ss:$8 sps:$4 sm:$0xff]  }
 0x899   :  { %5783 = vmatprep.subr.bf16.mxu0 %v8937_v32  ;;  %v9001_v32 = vld [vmem:[#allocation3 + $0x6f0] ss:$8 sps:$4 sm:$0xff]  }
 0x89a   :  { %8649 = vrot.lane.b32.xlu1 %v8648_v17, %s9299_s5 }
 0x89c   :  { %8664 = vrot.lane.b32.xlu0 %v8663_v14, %s9305_s21  ;;  %5784 = vmatpush1.bf16.msra.mxu0 %v8935_v2 }
 0x89d   :  { %5785 = vmatprep.subr.bf16.mxu0 %v8943_v45 }
 0x89e   :  { %3673 = vrot.lane.b32.xlu1 %v12251_v1, %s9299_s5 }
 0x8a0   :  { %8669 = vrot.lane.b32.xlu0 %v8668_v34, %s9299_s5  ;;  %5786 = vmatpush1.bf16.msra.mxu0 %v8941_v40 }
 0x8a1   :  { %5787 = vmatprep.subr.bf16.mxu0 %v8949_v29 }
 0x8a2   :  { %8659 = vrot.lane.b32.xlu1 %v8648_v17, %s9308_s25  ;;  %v9009_v17 = vld [vmem:[#allocation3 + $0x704] ss:$8 sps:$4 sm:$0xff]  }
 0x8a4   :  { %8674 = vrot.lane.b32.xlu0 %v8668_v34, %s9308_s25  ;;  %5788 = vmatpush1.bf16.msra.mxu0 %v8947_v0 }
 0x8a5   :  { %5789 = vmatprep.subr.bf16.mxu0 %v8955_v10 }
 0x8a6   :  { %3836 = vrot.lane.b32.xlu1 %v12251_v1, %s9308_s25 }
 0x8a8   :  { %5790 = vmatpush1.bf16.msra.mxu0 %v8953_v23 }
 0x8a9   :  { %5791 = vmatprep.subr.bf16.mxu0 %v8961_v54 }
 0x8ac   :  { %5792 = vmatpush1.bf16.msra.mxu0 %v8959_v18 }
 0x8ad   :  { %5793 = vmatprep.subr.bf16.mxu0 %v8967_v48 }
 0x8b0   :  { %5794 = vmatpush1.bf16.msra.mxu0 %v8965_v61 }
 0x8b1   :  { %5795 = vmatprep.subr.bf16.mxu0 %v8973_v52 }
 0x8b4   :  { %5796 = vmatpush1.bf16.msra.mxu0 %v8971_v43 }
 0x8b5   :  { %5797 = vmatprep.subr.bf16.mxu0 %v8979_v42  ;;  %v12640_v42 = vmax.f32 %v12020_v15, 0.0 }
 0x8b8   :  { %5798 = vmatpush1.bf16.msra.mxu0 %v8977_v56 }
 0x8b9   :  { %5799 = vmatprep.subr.bf16.mxu0 %v8985_v11  ;;  %v12641_v11 = vmax.f32 %v12027_v22, 0.0 }
 0x8bc   :  { %5800 = vmatpush1.bf16.msra.mxu0 %v8983_v19 }
 0x8bd   :  { %5801 = vmatprep.subr.bf16.mxu0 %v8991_v59 }
 0x8c0   :  { %5802 = vmatpush1.bf16.msra.mxu0 %v8989_v13 }
 0x8c1   :  { %5803 = vmatprep.subr.bf16.mxu0 %v8997_v8 }
 0x8c4   :  { %5804 = vmatpush1.bf16.msra.mxu0 %v8995_v41 }
 0x8c5   :  { %5805 = vmatprep.subr.bf16.mxu0 %v9003_v12 }
 0x8c8   :  { %5806 = vmatpush1.bf16.msra.mxu0 %v9001_v32 }
 0x8c9   :  { %5818 = vmatprep.subr.bf16.mxu0 %v9009_v17 }
 0x8f8   :  { %v8605_v2 = vpop.permute.xlu1 %8604 }
 0x8f9   :  { %v8607_v51 = vunpack.i.h.bf16 %v8605_v2  ;;  %v8606_v50 = vunpack.i.l.bf16 %v8605_v2 }
 0x8fa   :  { %v12288_v45 = vpop.permute.xlu0 %8619 }
 0x8fb   :  { %v8622_v14 = vunpack.i.h.bf16 %v12288_v45  ;;  %v8621_v40 = vunpack.i.l.bf16 %v12288_v45  ;;  %v3556_v3 = vsel %vm256_vm3, %v8606_v50, %v8607_v51  ;;  %v3555_v0 = vsel %vm256_vm3, %v8577_v60, %v8606_v50 }
 0x8fc   :  { %v8610_v33 = vpop.permute.xlu1 %8609  ;;  %v3620_v61 = vmax.f32 %v3428_v36, %v3556_v3  ;;  %v3619_v56 = vmax.f32 %v12640_v42, %v3555_v0  ;;  %v12642_v3 = vunpack.i.l.bf16 %v11742_v27 }
 0x8fd   :  { %v8612_v29 = vunpack.i.h.bf16 %v8610_v33  ;;  %v8611_v34 = vunpack.i.l.bf16 %v8610_v33  ;;  %v3571_v23 = vsel %vm256_vm3, %v8592_v30, %v8621_v40  ;;  %v3572_v54 = vsel %vm256_vm3, %v8621_v40, %v8622_v14 }
 0x8fe   :  { %v12296_v10 = vpop.permute.xlu0 %8624  ;;  %v3635_v4 = vmax.f32 %v12641_v11, %v3571_v23  ;;  %v3636_v36 = vmax.f32 %v3444_v53, %v3572_v54 }
 0x8ff   :  { %v8627_v18 = vunpack.i.h.bf16 %v12296_v10  ;;  %v8626_v48 = vunpack.i.l.bf16 %v12296_v10  ;;  %v3719_v44 = vsel %vm690_vm7, %v8611_v34, %v8612_v29  ;;  %v3718_v47 = vsel %vm690_vm7, %v8582_v28, %v8611_v34 }
 0x900   :  { %v8615_v60 = vpop.permute.xlu1 %8614  ;;  %v3782_v32 = vmax.f32 %v3619_v56, %v3718_v47 }
 0x901   :  { %v3734_v39 = vsel %vm690_vm7, %v8597_v38, %v8626_v48  ;;  %v3735_v30 = vsel %vm690_vm7, %v8626_v48, %v8627_v18  ;;  %v8617_v52 = vunpack.i.h.bf16 %v8615_v60  ;;  %v8616_v43 = vunpack.i.l.bf16 %v8615_v60  ;;  %v9007_v48 = vld [vmem:[#allocation3 + $0x700] ss:$8 sps:$4 sm:$0xff]   ;;  %v9015_v60 = vld [vmem:[#allocation3 + $0x714] ss:$8 sps:$4 sm:$0xff]  }
 0x902   :  { %v12321_v19 = vpop.permute.xlu0 %8629  ;;  %v3783_v38 = vmax.f32 %v3620_v61, %v3719_v44  ;;  %v3798_v8 = vmax.f32 %v3635_v4, %v3734_v39  ;;  %v3799_v15 = vmax.f32 %v3636_v36, %v3735_v30  ;;  %v9013_v4 = vld [vmem:[#allocation3 + $0x710] ss:$8 sps:$4 sm:$0xff]   ;;  %v12644_v36 = vld [vmem:[#allocation12_spill] sm:$0xff] }
 0x903   :  { %v8632_v59 = vunpack.i.h.bf16 %v12321_v19  ;;  %v8631_v13 = vunpack.i.l.bf16 %v12321_v19  ;;  %v3881_v22 = vsel %vm773_vm8, %v8587_v21, %v8616_v43  ;;  %v3882_v35 = vsel %vm773_vm8, %v8616_v43, %v8617_v52 }
 0x904   :  { %v8635_v53 = vpop.permute.xlu1 %8634  ;;  %v3946_v40 = vmax.f32 %v3783_v38, %v3882_v35  ;;  %v3945_v33 = vmax.f32 %v3782_v32, %v3881_v22  ;;  %v12643_v43 = vunpack.i.l.bf16 %v11744_v16  ;;  %v9021_v38 = vld [vmem:[#allocation3 + $0x724] ss:$8 sps:$4 sm:$0xff]  }
 0x905   :  { %v3897_v7 = vsel %vm773_vm8, %v8602_v31, %v8631_v13  ;;  %v3898_v28 = vsel %vm773_vm8, %v8631_v13, %v8632_v59  ;;  %v8637_v41 = vunpack.i.h.bf16 %v8635_v53  ;;  %v8636_v12 = vunpack.i.l.bf16 %v8635_v53 }
 0x906   :  { %v3961_v17 = vmax.f32 %v3798_v8, %v3897_v7  ;;  %v12338_v2 = vpop.permute.xlu0 %8644  ;;  %v3962_v63 = vmax.f32 %v3799_v15, %v3898_v28  ;;  %v12645_v53 = vunpack.i.l.bf16 %v11748_v20 }
 0x907   :  { %v3557_v21 = vsel %vm256_vm3, %v8607_v51, %v8637_v41  ;;  %v8647_v50 = vunpack.i.h.bf16 %v12338_v2  ;;  %v3544_v34 = vsel %vm256_vm3, %v8636_v12, %v12642_v3  ;;  %v8646_v23 = vunpack.i.l.bf16 %v12338_v2 }
 0x908   :  { %v3621_v57 = vmax.f32 %v3429_v25, %v3557_v21  ;;  %v8640_v31 = vpop.permute.xlu1 %8639  ;;  %v3978_v54 = vpack.c.bf16 %v3962_v63, %v3946_v40  ;;  %v3977_v44 = vpack.c.bf16 %v3961_v17, %v3945_v33  ;;  %v3608_v25 = vmax.f32 %v3416_v6, %v3544_v34  ;;  %v9019_v21 = vld [vmem:[#allocation3 + $0x720] ss:$8 sps:$4 sm:$0xff]  }
 0x909   :  { %v3720_v0 = vsel %vm690_vm7, %v8612_v29, %v8647_v50  ;;  %v8641_v39 = vunpack.i.l.bf16 %v8640_v31  ;;  %v3707_v42 = vsel %vm690_vm7, %v8646_v23, %v12643_v43  ;;  %v3558_v47 = vsel %vm256_vm3, %v8637_v41, %v12644_v36 }
 0x90a   :  { %v3784_v61 = vmax.f32 %v3621_v57, %v3720_v0  ;;  %v12349_v51 = vpop.permute.xlu0 %8654  ;;  %5807 = vmatprep.mubr.bf16.mxu0 %v3978_v54  ;;  %v8642_v13 = vunpack.i.h.bf16 %v8640_v31  ;;  %v3771_v35 = vmax.f32 %v3608_v25, %v3707_v42  ;;  %v12646_v17 = vunpack.i.h.bf16 %v11742_v27  ;;  %v9027_v27 = vld [vmem:[#allocation3 + $0x734] ss:$8 sps:$4 sm:$0xff]  }
 0x90b   :  { %v8657_v49 = vunpack.i.h.bf16 %v12349_v51  ;;  %v8656_v30 = vunpack.i.l.bf16 %v12349_v51  ;;  %5808 = vmatmul.mubr.bf16.vlgmr.msra.gmra.mrb[28].mxu0 %v3977_v44  ;;  %v3543_v8 = vsel %vm256_vm3, %v8641_v39, %v8636_v12  ;;  %v3622_v40 = vmax.f32 %v3430_v9, %v3558_v47 }
 0x90c   :  { %v8650_v29 = vpop.permute.xlu1 %8649  ;;  %5819 = vmatpush1.bf16.msra.mxu0 %v9007_v48 }
 0x90d   :  { %v3883_v56 = vsel %vm773_vm8, %v8617_v52, %v8657_v49  ;;  %v8651_v11 = vunpack.i.l.bf16 %v8650_v29  ;;  %5820 = vmatprep.subr.bf16.mxu0 %v9015_v60  ;;  %v3870_v52 = vsel %vm773_vm8, %v8656_v30, %v12645_v53  ;;  %v8652_v7 = vunpack.i.h.bf16 %v8650_v29 }
 0x90e   :  { %v12363_v46 = vmax.f32 %v3784_v61, %v3883_v56  ;;  %v8665_v6 = vpop.permute.xlu0 %8664  ;;  %v3934_v34 = vmax.f32 %v3771_v35, %v3870_v52  ;;  %v9039_v52 = vld [vmem:[#allocation3 + $0x764] ss:$8 sps:$4 sm:$0xff]  }
 0x90f   :  { %v8667_v15 = vunpack.i.h.bf16 %v8665_v6  ;;  %v8666_v22 = vunpack.i.l.bf16 %v8665_v6  ;;  %v3721_v28 = vsel %vm690_vm7, %v8647_v50, %v8651_v11  ;;  %v3607_v50 = vmax.f32 %v12262_v62, %v3543_v8 }
 0x910   :  { %v3674_v41 = vpop.permute.xlu1 %3673  ;;  %5821 = vmatpush1.bf16.msra.mxu0 %v9013_v4  ;;  %v3785_v54 = vmax.f32 %v3622_v40, %v3721_v28  ;;  %v9042_v28 = vld [vmem:[#allocation3 + $0x774] ss:$8 sps:$4 sm:$0xff]   ;;  %v9052_v40 = vld [vmem:[#allocation3 + $0x7b0] ss:$8 sps:$4 sm:$0xff]  }
 0x911   :  { %v3574_v32 = vsel %vm256_vm3, %v8667_v15, %v12644_v36  ;;  %v3560_v12 = vsel %vm256_vm3, %v8666_v22, %v12646_v17  ;;  %v3573_v2 = vsel %vm256_vm3, %v8622_v14, %v8667_v15  ;;  %v3559_v63 = vsel %vm256_vm3, %v8642_v13, %v8666_v22  ;;  %5822 = vmatprep.subr.bf16.mxu0 %v9021_v38  ;;  %v9031_v38 = vld [vmem:[#allocation3 + $0x740] ss:$8 sps:$4 sm:$0xff]   ;;  %v9036_v22 = vld [vmem:[#allocation3 + $0x754] ss:$8 sps:$4 sm:$0xff]  }
 0x912   :  { %v3624_v33 = vmax.f32 %v12264_v58, %v3560_v12  ;;  %v8670_v57 = vpop.permute.xlu0 %8669  ;;  %v3623_v31 = vmax.f32 %v12251_v1, %v3559_v63  ;;  %v12647_v14 = vunpack.i.h.bf16 %v11744_v16  ;;  %v3638_v37 = vmax.f32 %v12269_v55, %v3574_v32  ;;  %v9025_v16 = vld [vmem:[#allocation3 + $0x730] ss:$8 sps:$4 sm:$0xff]   ;;  %v9045_v32 = vld [vmem:[#allocation3 + $0x784] ss:$8 sps:$4 sm:$0xff]   ;;  %v9043_v17 = vld [vmem:[#allocation3 + $0x780] ss:$8 sps:$4 sm:$0xff]  }
 0x913   :  { %v8672_v3 = vunpack.i.h.bf16 %v8670_v57  ;;  %v8671_v45 = vunpack.i.l.bf16 %v8670_v57  ;;  %v3637_v9 = vmax.f32 %v3445_v26, %v3573_v2  ;;  %v3722_v44 = vsel %vm690_vm7, %v3674_v41, %v8652_v7  ;;  %v9040_v41 = vld [vmem:[#allocation3 + $0x770] ss:$8 sps:$4 sm:$0xff]   ;;  %v9048_v12 = vld [vmem:[#allocation3 + $0x794] ss:$8 sps:$4 sm:$0xff]   ;;  %v9051_v2 = vld [vmem:[#allocation3 + $0x7a4] ss:$8 sps:$4 sm:$0xff]  }
 0x914   :  { %v3723_v0 = vsel %vm690_vm7, %v8652_v7, %v12647_v14  ;;  %v8660_v62 = vpop.permute.xlu1 %8659  ;;  %5823 = vmatpush1.bf16.msra.mxu0 %v9019_v21  ;;  %v3786_v25 = vmax.f32 %v3623_v31, %v3722_v44  ;;  %v9037_v7 = vld [vmem:[#allocation3 + $0x760] ss:$8 sps:$4 sm:$0xff]   ;;  %v9054_v21 = vld [vmem:[#allocation3 + $0x7b4] ss:$8 sps:$4 sm:$0xff]   ;;  %v9063_v31 = vld [vmem:[#allocation3 + $0x7e4] ss:$8 sps:$4 sm:$0xff]  }
 0x915   :  { %v3706_v58 = vsel %vm690_vm7, %v8672_v3, %v8646_v23  ;;  %v3736_v1 = vsel %vm690_vm7, %v8627_v18, %v8671_v45  ;;  %v3737_v48 = vsel %vm690_vm7, %v8671_v45, %v8651_v11  ;;  %v8662_v61 = vunpack.i.h.bf16 %v8660_v62  ;;  %5824 = vmatprep.subr.bf16.mxu0 %v9027_v27  ;;  %v9049_v63 = vld [vmem:[#allocation3 + $0x7a0] ss:$8 sps:$4 sm:$0xff]   ;;  %v9060_v57 = vld [vmem:[#allocation3 + $0x7d4] ss:$8 sps:$4 sm:$0xff]   ;;  %v9058_v27 = vld [vmem:[#allocation3 + $0x7d0] ss:$8 sps:$4 sm:$0xff]  }
 0x916   :  { %v3800_v60 = vmax.f32 %v3637_v9, %v3736_v1  ;;  %v8661_v39 = vunpack.i.l.bf16 %v8660_v62  ;;  %v8675_v55 = vpop.permute.xlu0 %8674  ;;  %v3787_v26 = vmax.f32 %v3624_v33, %v3723_v0  ;;  %v12648_v23 = vunpack.i.h.bf16 %v11748_v20  ;;  %v9055_v33 = vld [vmem:[#allocation3 + $0x7c0] ss:$8 sps:$4 sm:$0xff]   ;;  %v9066_v45 = vld [vmem:[#allocation3 + $0x7f4] ss:$8 sps:$4 sm:$0xff]  }
 0x917   :  { %v8677_v29 = vunpack.i.h.bf16 %v8675_v55  ;;  %v8676_v18 = vunpack.i.l.bf16 %v8675_v55  ;;  %v3770_v43 = vmax.f32 %v3607_v50, %v3706_v58  ;;  %v3801_v42 = vmax.f32 %v3638_v37, %v3737_v48  ;;  %v9057_v50 = vld [vmem:[#allocation3 + $0x7c4] ss:$8 sps:$4 sm:$0xff]   ;;  %v9061_v3 = vld [vmem:[#allocation3 + $0x7e0] ss:$8 sps:$4 sm:$0xff]   ;;  %v9075_v48 = vld [vmem:[#allocation6 + $0x50] sm:$0xff]  }
 0x918   :  { %v3886_v10 = vsel %vm773_vm8, %v8662_v61, %v12648_v23  ;;  %v3884_v56 = vsel %vm773_vm8, %v8657_v49, %v8661_v39  ;;  %v3837_v11 = vpop.permute.xlu1 %3836  ;;  %5825 = vmatpush1.bf16.msra.mxu0 %v9025_v16  ;;  %v9067_v14 = vld [vmem:[#allocation6 + $0x40] sm:$0xff]   ;;  %v9071_v9 = vld [vmem:[#allocation6 + $0x48] sm:$0xff]   ;;  %v9077_v16 = vld [vmem:[#allocation6 + $0x10] sm:$0xff]  }
 0x919   :  { %v3950_v4 = vmax.f32 %v3787_v26, %v3886_v10  ;;  %v3869_v36 = vsel %vm773_vm8, %v8677_v29, %v8656_v30  ;;  %v3899_v20 = vsel %vm773_vm8, %v8632_v59, %v8676_v18  ;;  %v3900_v47 = vsel %vm773_vm8, %v8676_v18, %v8661_v39  ;;  %5826 = vmatprep.subr.bf16.mxu0 %v9033_v24  ;;  %v9034_v59 = vld [vmem:[#allocation3 + $0x750] ss:$8 sps:$4 sm:$0xff]   ;;  %v9068_v0 = vld [vmem:[#allocation6 + $0xc0] sm:$0xff]   ;;  %v9072_v62 = vld [vmem:[#allocation6 + $0xc8] sm:$0xff]  }
 0x91a   :  { %v3885_v6 = vsel %vm773_vm8, %v3837_v11, %v8662_v61  ;;  %v3933_v13 = vmax.f32 %v3770_v43, %v3869_v36  ;;  %v3963_v8 = vmax.f32 %v3800_v60, %v3899_v20  ;;  %v3948_v35 = vmax.f32 %v3785_v54, %v3884_v56  ;;  %v9069_v54 = vld [vmem:[#allocation6] sm:$0xff]   ;;  %8021 = vmatprep.subr.bf16.mxu1 %v9068_v0  ;;  %v9073_v58 = vld [vmem:[#allocation6 + $0x8] sm:$0xff]   ;;  %v9076_v61 = vld [vmem:[#allocation6 + $0xd0] sm:$0xff]  }
 0x91b   :  { %v3949_v15 = vmax.f32 %v3786_v25, %v3885_v6  ;;  %v3966_v49 = vpack.c.bf16 %v3950_v4, %v3934_v34  ;;  %v3964_v51 = vmax.f32 %v3801_v42, %v3900_v47  ;;  %v9064_v34 = vld [vmem:[#allocation3 + $0x7f0] ss:$8 sps:$4 sm:$0xff]   ;;  %v9070_v37 = vld [vmem:[#allocation6 + $0x80] sm:$0xff]   ;;  %v9074_v1 = vld [vmem:[#allocation6 + $0x88] sm:$0xff]  }
 0x91c   :  { %v3979_v19 = vpack.c.bf16 %v3963_v8, %v12363_v46  ;;  %5827 = vmatpush1.bf16.msra.mxu0 %v9031_v38  ;;  %v9046_v46 = vld [vmem:[#allocation3 + $0x790] ss:$8 sps:$4 sm:$0xff]   ;;  %v9083_v26 = vld [vmem:[#allocation6 + $0x60] sm:$0xff]   ;;  %v9087_v29 = vld [vmem:[#allocation6 + $0x68] sm:$0xff]  }
 0x91d   :  { %v3965_v53 = vpack.c.bf16 %v3949_v15, %v3933_v13  ;;  %5549 = vmatprep.mubr.bf16.mxu1 %v3966_v49  ;;  %v3980_v30 = vpack.c.bf16 %v3964_v51, %v3948_v35  ;;  %5828 = vmatprep.subr.bf16.mxu0 %v9036_v22  ;;  %v9078_v44 = vld [vmem:[#allocation6 + $0x90] sm:$0xff]   ;;  %v9079_v60 = vld [vmem:[#allocation6 + $0x58] sm:$0xff]   ;;  %v9084_v25 = vld [vmem:[#allocation6 + $0xe0] sm:$0xff]  }
 0x91e   :  { %v9080_v39 = vld [vmem:[#allocation6 + $0xd8] sm:$0xff]   ;;  %v9085_v23 = vld [vmem:[#allocation6 + $0x20] sm:$0xff]   ;;  %v9088_v18 = vld [vmem:[#allocation6 + $0xe8] sm:$0xff]  }
 0x91f   :  { %5550 = vmatmul.mubr.bf16.vlgmr.msra.gmra.mrb[36].mxu1 %v3965_v53  ;;  %5850 = vmatprep.mubr.bf16.mxu0 %v3980_v30  ;;  %v9081_v55 = vld [vmem:[#allocation6 + $0x18] sm:$0xff]   ;;  %v9086_v10 = vld [vmem:[#allocation6 + $0xa0] sm:$0xff]   ;;  %v9089_v43 = vld [vmem:[#allocation6 + $0x28] sm:$0xff]  }
 0x920   :  { %5829 = vmatpush1.bf16.msra.mxu0 %v9034_v59  ;;  %8022 = vmatpush3.bf16.msra.mxu1 %v9070_v37  ;;  %v9082_v24 = vld [vmem:[#allocation6 + $0x98] sm:$0xff]   ;;  %v9090_v42 = vld [vmem:[#allocation6 + $0xa8] sm:$0xff]   ;;  %v9091_v56 = vld [vmem:[#allocation6 + $0x70] sm:$0xff]  }
 0x921   :  { %5830 = vmatprep.subr.bf16.mxu0 %v9039_v52  ;;  %8023 = vmatprep.subr.bf16.mxu1 %v9072_v62  ;;  %v9092_v11 = vld [vmem:[#allocation6 + $0xf0] sm:$0xff]   ;;  %v9095_v20 = vld [vmem:[#allocation6 + $0x78] sm:$0xff]   ;;  %v9099_v13 = vld [vmem:[#allocation6 + $0x140] sm:$0xff]  }
 0x922   :  { %v9093_v4 = vld [vmem:[#allocation6 + $0x30] sm:$0xff]   ;;  %v9096_v47 = vld [vmem:[#allocation6 + $0xf8] sm:$0xff]  }
 0x923   :  { %v9094_v36 = vld [vmem:[#allocation6 + $0xb0] sm:$0xff]   ;;  %v9097_v6 = vld [vmem:[#allocation6 + $0x38] sm:$0xff]  }
 0x924   :  { %5831 = vmatpush1.bf16.msra.mxu0 %v9037_v7  ;;  %8024 = vmatpush3.bf16.msra.mxu1 %v9074_v1  ;;  %v9098_v38 = vld [vmem:[#allocation6 + $0xb8] sm:$0xff]  }
 0x925   :  { %5832 = vmatprep.subr.bf16.mxu0 %v9042_v28  ;;  %8025 = vmatprep.subr.bf16.mxu1 %v9076_v61 }
 0x928   :  { %5833 = vmatpush1.bf16.msra.mxu0 %v9040_v41  ;;  %8026 = vmatpush3.bf16.msra.mxu1 %v9078_v44 }
 0x929   :  { %5834 = vmatprep.subr.bf16.mxu0 %v9045_v32  ;;  %8027 = vmatprep.subr.bf16.mxu1 %v9080_v39 }
 0x92c   :  { %5835 = vmatpush1.bf16.msra.mxu0 %v9043_v17  ;;  %8028 = vmatpush3.bf16.msra.mxu1 %v9082_v24 }
 0x92d   :  { %5836 = vmatprep.subr.bf16.mxu0 %v9048_v12  ;;  %8029 = vmatprep.subr.bf16.mxu1 %v9084_v25  ;;  %v9103_v25 = vld [vmem:[#allocation6 + $0x150] sm:$0xff]  }
 0x930   :  { %5837 = vmatpush1.bf16.msra.mxu0 %v9046_v46  ;;  %8030 = vmatpush3.bf16.msra.mxu1 %v9086_v10 }
 0x931   :  { %5838 = vmatprep.subr.bf16.mxu0 %v9051_v2  ;;  %8031 = vmatprep.subr.bf16.mxu1 %v9088_v18 }
 0x934   :  { %5839 = vmatpush1.bf16.msra.mxu0 %v9049_v63  ;;  %8032 = vmatpush3.bf16.msra.mxu1 %v9090_v42 }
 0x935   :  { %5840 = vmatprep.subr.bf16.mxu0 %v9054_v21  ;;  %8033 = vmatprep.subr.bf16.mxu1 %v9092_v11 }
 0x938   :  { %5841 = vmatpush1.bf16.msra.mxu0 %v9052_v40  ;;  %8034 = vmatpush3.bf16.msra.mxu1 %v9094_v36 }
 0x939   :  { %5842 = vmatprep.subr.bf16.mxu0 %v9057_v50  ;;  %8035 = vmatprep.subr.bf16.mxu1 %v9096_v47 }
 0x93c   :  { %5843 = vmatpush1.bf16.msra.mxu0 %v9055_v33  ;;  %8036 = vmatpush3.bf16.msra.mxu1 %v9098_v38  ;;  %v9105_v38 = vld [vmem:[#allocation6 + $0x158] sm:$0xff]  }
 0x93d   :  { %5844 = vmatprep.subr.bf16.mxu0 %v9060_v57  ;;  %8043 = vmatprep.subr.bf16.mxu1 %v9099_v13 }
 0x940   :  { %5845 = vmatpush1.bf16.msra.mxu0 %v9058_v27 }
 0x941   :  { %5846 = vmatprep.subr.bf16.mxu0 %v9063_v31 }
 0x944   :  { %5847 = vmatpush1.bf16.msra.mxu0 %v9061_v3 }
 0x945   :  { %5848 = vmatprep.subr.bf16.mxu0 %v9066_v45 }
 0x948   :  { %5849 = vmatpush1.bf16.msra.mxu0 %v9064_v34  ;;  %v9100_v34 = vld [vmem:[#allocation6 + $0x100] sm:$0xff]  }
 0x949   :  { %7999 = vmatprep.subr.bf16.mxu0 %v9067_v14 }
 0x94b   :  { %5851 = vmatmul.mubr.bf16.vlgmr.msra.gmra.mrb[28].mxu0 %v3979_v19 }
 0x94c   :  { %8000 = vmatpush3.bf16.msra.mxu0 %v9069_v54  ;;  %v9101_v54 = vld [vmem:[#allocation6 + $0x148] sm:$0xff]  }
 0x94d   :  { %8001 = vmatprep.subr.bf16.mxu0 %v9071_v9 }
 0x950   :  { %8002 = vmatpush3.bf16.msra.mxu0 %v9073_v58 }
 0x951   :  { %8003 = vmatprep.subr.bf16.mxu0 %v9075_v48 }
 0x954   :  { %8004 = vmatpush3.bf16.msra.mxu0 %v9077_v16 }
 0x955   :  { %8005 = vmatprep.subr.bf16.mxu0 %v9079_v60 }
 0x958   :  { %8006 = vmatpush3.bf16.msra.mxu0 %v9081_v55  ;;  %v9102_v55 = vld [vmem:[#allocation6 + $0x108] sm:$0xff]  }
 0x959   :  { %8007 = vmatprep.subr.bf16.mxu0 %v9083_v26 }
 0x95c   :  { %8008 = vmatpush3.bf16.msra.mxu0 %v9085_v23 }
 0x95d   :  { %8009 = vmatprep.subr.bf16.mxu0 %v9087_v29 }
 0x960   :  { %8010 = vmatpush3.bf16.msra.mxu0 %v9089_v43 }
 0x961   :  { %8011 = vmatprep.subr.bf16.mxu0 %v9091_v56 }
 0x964   :  { %8012 = vmatpush3.bf16.msra.mxu0 %v9093_v4  ;;  %v9104_v4 = vld [vmem:[#allocation6 + $0x110] sm:$0xff]  }
 0x965   :  { %8013 = vmatprep.subr.bf16.mxu0 %v9095_v20 }
 0x968   :  { %8014 = vmatpush3.bf16.msra.mxu0 %v9097_v6 }
 0x9f2   :  { %v5551_v8 = vpop.f32.mrb[36].mxu1 }
 0x9f3   :  { %v5553_v15 = vpop.f32.mrb[37].mxu1 }
 0x9f4   :  { %v5555_v49 = vpop.f32.mrb[38].mxu1 }
 0x9f5   :  { %v5557_v22 = vpop.f32.mrb[39].mxu1 }
 0xa1e   :  { %v5852_v35 = vpop.f32.mrb[28].mxu0 }
 0xa1f   :  { %v8233_v51 = vadd.f32 %v5852_v35, %v5551_v8  ;;  %v5854_v53 = vpop.f32.mrb[29].mxu0  ;;  %v9106_v35 = vld [vmem:[#allocation6 + $0x118] sm:$0xff]  }
 0xa20   :  { %v8234_v19 = vadd.f32 %v5854_v53, %v5553_v15  ;;  %v5856_v59 = vpop.f32.mrb[30].mxu0  ;;  %v9108_v53 = vld [vmem:[#allocation6 + $0x120] sm:$0xff]  }
 0xa21   :  { %v12413_v30 = vadd.f32 %v5856_v59, %v5555_v49  ;;  %v5858_v52 = vpop.f32.mrb[31].mxu0  ;;  %v5862_v7 = vrot.slane %v8233_v51, 1  ;;  %v5866_v28 = vrot.slane %v8233_v51, 3  ;;  %v5864_v41 = vrot.slane %v8233_v51, 2  ;;  %v9110_v59 = vld [vmem:[#allocation6 + $0x128] sm:$0xff]  }
 0xa22   :  { %v12415_v32 = vadd.f32 %v5858_v52, %v5557_v22  ;;  %v5898_v17 = vrot.slane %v8234_v19, 7  ;;  %v7842_v12 = vrot.slane %v8234_v19, 10  ;;  %v7841_v46 = vrot.slane %v8234_v19, 9  ;;  %v9112_v52 = vld [vmem:[#allocation6 + $0x130] sm:$0xff]  }
 0xa23   :  { %v5939_v2 = vsel %vm5937_vm0, %v5862_v7, %v8234_v19  ;;  %v5870_v63 = vrot.slane %v8233_v51, 5  ;;  %v7844_v21 = vrot.slane %v8234_v19, 12  ;;  %v5868_v40 = vrot.slane %v8233_v51, 4  ;;  %v9113_v7 = vld [vmem:[#allocation6 + $0x178] sm:$0xff]  }
 0xa24   :  { %v5955_v50 = vpack.c.bf16 %v5939_v2, %v5939_v2  ;;  %v5938_v33 = vsel %vm5937_vm0, %v8233_v51, %v5898_v17  ;;  %v5941_v57 = vsel %vm5937_vm0, %v5866_v28, %v7842_v12  ;;  %v5940_v27 = vsel %vm5937_vm0, %v5864_v41, %v7841_v46  ;;  %v9114_v28 = vld [vmem:[#allocation6 + $0x138] sm:$0xff]   ;;  %v9115_v41 = vld [vmem:[#allocation6 + $0x1c0] sm:$0xff]   ;;  %v9117_v12 = vld [vmem:[#allocation6 + $0x1c8] sm:$0xff]  }
 0xa25   :  { %v5954_v31 = vpack.c.bf16 %v5938_v33, %v5938_v33  ;;  %v5957_v3 = vpack.c.bf16 %v5941_v57, %v5941_v57  ;;  %v5956_v45 = vpack.c.bf16 %v5940_v27, %v5940_v27  ;;  %v5943_v14 = vsel %vm5937_vm0, %v5870_v63, %v7844_v21  ;;  %v9118_v2 = vld [vmem:[#allocation6 + $0x188] sm:$0xff]   ;;  %v9119_v63 = vld [vmem:[#allocation6 + $0x1d0] sm:$0xff]   ;;  %v9123_v33 = vld [vmem:[#allocation6 + $0x1e0] sm:$0xff]  }
 0xa26   :  { %7033 = vmatprep.mubr.bf16.mxu0 %v5955_v50  ;;  %v5959_v0 = vpack.c.bf16 %v5943_v14, %v5943_v14  ;;  %v7843_v37 = vrot.slane %v8234_v19, 11  ;;  %v5874_v9 = vrot.slane %v8233_v51, 7  ;;  %v5913_v62 = vrot.slane %v5898_v17, 7  ;;  %v9120_v21 = vld [vmem:[#allocation6 + $0x190] sm:$0xff]   ;;  %v9122_v50 = vld [vmem:[#allocation6 + $0x198] sm:$0xff]   ;;  %v9124_v57 = vld [vmem:[#allocation6 + $0x1a0] sm:$0xff]  }
 0xa27   :  { %7034 = vmatmul.mubr.bf16.vlgmr.msra.gmra.mrb[32].mxu0 %v5954_v31  ;;  %7073 = vmatprep.mubr.bf16.mxu1 %v5957_v3  ;;  %v5872_v58 = vrot.slane %v8233_v51, 6  ;;  %v7845_v1 = vrot.slane %v8234_v19, 13  ;;  %v5877_v48 = vrot.slane %v12413_v30, 1  ;;  %v5906_v61 = vrot.slane %v12415_v32, 7  ;;  %v9107_v51 = vld [vmem:[#allocation6 + $0x160] sm:$0xff]   ;;  %v9109_v19 = vld [vmem:[#allocation6 + $0x168] sm:$0xff]  }
 0xa28   :  { %7074 = vmatmul.mubr.bf16.vlgmr.msra.gmra.mrb[40].mxu1 %v5956_v45  ;;  %v5942_v16 = vsel %vm5937_vm0, %v5868_v40, %v7843_v37  ;;  %v5945_v44 = vsel %vm5937_vm0, %v5874_v9, %v5913_v62  ;;  %v5881_v60 = vrot.slane %v12413_v30, 3  ;;  %v7848_v39 = vrot.slane %v12415_v32, 10  ;;  %v9121_v40 = vld [vmem:[#allocation6 + $0x1d8] sm:$0xff]   ;;  %v9125_v27 = vld [vmem:[#allocation6 + $0x1e8] sm:$0xff]   ;;  %v9127_v3 = vld [vmem:[#allocation6 + $0x1f0] sm:$0xff]  }
 0xa29   :  { %8044 = vmatpush3.bf16.msra.mxu1 %v9100_v34  ;;  %7113 = vmatprep.mubr.bf16.mxu1 %v5959_v0  ;;  %v12429_v24 = vsel %vm5937_vm0, %v5872_v58, %v7845_v1  ;;  %v5879_v26 = vrot.slane %v12413_v30, 2  ;;  %v12434_v23 = vsel %vm5937_vm0, %v5877_v48, %v12415_v32  ;;  %v12438_v10 = vsel %vm5937_vm0, %v12413_v30, %v5906_v61  ;;  %v9126_v31 = vld [vmem:[#allocation6 + $0x1a8] sm:$0xff]   ;;  %v9128_v45 = vld [vmem:[#allocation6 + $0x1b0] sm:$0xff]   ;;  %v9129_v34 = vld [vmem:[#allocation6 + $0x1f8] sm:$0xff]  }
 0xa2a   :  { %8045 = vmatprep.subr.bf16.mxu1 %v9101_v54  ;;  %v12441_v29 = vsel %vm5937_vm0, %v5881_v60, %v7848_v39  ;;  %v7847_v18 = vrot.slane %v12415_v32, 9  ;;  %v5885_v43 = vrot.slane %v12413_v30, 5  ;;  %v7850_v42 = vrot.slane %v12415_v32, 12  ;;  %v9130_v14 = vld [vmem:[#allocation6 + $0x1b8] sm:$0xff]   ;;  %v9131_v0 = vld [vmem:[#allocation6 + $0x240] sm:$0xff]   ;;  %v9133_v9 = vld [vmem:[#allocation6 + $0x248] sm:$0xff]  }
 0xa2b   :  { %v5883_v56 = vrot.slane %v12413_v30, 4  ;;  %v7849_v11 = vrot.slane %v12415_v32, 11  ;;  %v5889_v20 = vrot.slane %v12413_v30, 7  ;;  %v5920_v47 = vrot.slane %v5906_v61, 7  ;;  %v9132_v54 = vld [vmem:[#allocation6 + $0x200] sm:$0xff]   ;;  %v9134_v58 = vld [vmem:[#allocation6 + $0x208] sm:$0xff]  }
 0xa2c   :  { %v12449_v36 = vsel %vm5937_vm0, %v5879_v26, %v7847_v18  ;;  %v5887_v6 = vrot.slane %v12413_v30, 6  ;;  %v12454_v13 = vsel %vm5937_vm0, %v5885_v43, %v7850_v42  ;;  %v7851_v15 = vrot.slane %v12415_v32, 13  ;;  %v9111_v30 = vld [vmem:[#allocation6 + $0x170] sm:$0xff]   ;;  %v9116_v32 = vld [vmem:[#allocation6 + $0x180] sm:$0xff]   ;;  %v9137_v61 = vld [vmem:[#allocation6 + $0x258] sm:$0xff]  }
 0xa2d   :  { %8046 = vmatpush3.bf16.msra.mxu1 %v9102_v55  ;;  %v12457_v8 = vsel %vm5937_vm0, %v5883_v56, %v7849_v11  ;;  %v12461_v49 = vsel %vm5937_vm0, %v5889_v20, %v5920_v47  ;;  %v5958_v17 = vpack.c.bf16 %v5942_v16, %v5942_v16  ;;  %v5961_v46 = vpack.c.bf16 %v5945_v44, %v5945_v44  ;;  %v9135_v1 = vld [vmem:[#allocation6 + $0x250] sm:$0xff]   ;;  %v9138_v16 = vld [vmem:[#allocation6 + $0x218] sm:$0xff]   ;;  %v9139_v44 = vld [vmem:[#allocation6 + $0x260] sm:$0xff]  }
 0xa2e   :  { %8047 = vmatprep.subr.bf16.mxu1 %v9103_v25  ;;  %v12464_v22 = vsel %vm5937_vm0, %v5887_v6, %v7851_v15  ;;  %v5960_v37 = vpack.c.bf16 %v12429_v24, %v12429_v24  ;;  %v5963_v62 = vpack.c.bf16 %v12434_v23, %v12434_v23  ;;  %v9136_v48 = vld [vmem:[#allocation6 + $0x210] sm:$0xff]   ;;  %v9140_v60 = vld [vmem:[#allocation6 + $0x220] sm:$0xff]   ;;  %v9141_v39 = vld [vmem:[#allocation6 + $0x268] sm:$0xff]   ;;  %v5962_v42 = vpack.c.bf16 %v12438_v10, %v12438_v10 }
 0xa2f   :  { %v9142_v55 = vld [vmem:[#allocation6 + $0x228] sm:$0xff]   ;;  %v9143_v24 = vld [vmem:[#allocation6 + $0x270] sm:$0xff]   ;;  %v9145_v25 = vld [vmem:[#allocation6 + $0x278] sm:$0xff]   ;;  %v5965_v11 = vpack.c.bf16 %v12441_v29, %v12441_v29 }
 0xa30   :  { %v9144_v26 = vld [vmem:[#allocation6 + $0x230] sm:$0xff]   ;;  %v9146_v23 = vld [vmem:[#allocation6 + $0x238] sm:$0xff]   ;;  %v9147_v18 = vld [vmem:[#allocation6 + $0x2c0] sm:$0xff]  }
 0xa31   :  { %8048 = vmatpush3.bf16.msra.mxu1 %v9104_v4  ;;  %v9148_v43 = vld [vmem:[#allocation6 + $0x280] sm:$0xff]   ;;  %v9149_v56 = vld [vmem:[#allocation6 + $0x2c8] sm:$0xff]   ;;  %v9151_v20 = vld [vmem:[#allocation6 + $0x2d0] sm:$0xff]  }
 0xa32   :  { %8049 = vmatprep.subr.bf16.mxu1 %v9105_v38  ;;  %v9150_v4 = vld [vmem:[#allocation6 + $0x288] sm:$0xff]   ;;  %v9152_v47 = vld [vmem:[#allocation6 + $0x290] sm:$0xff]   ;;  %v9153_v6 = vld [vmem:[#allocation6 + $0x2d8] sm:$0xff]  }
 0xa33   :  { %v9154_v38 = vld [vmem:[#allocation6 + $0x298] sm:$0xff]   ;;  %v9155_v15 = vld [vmem:[#allocation6 + $0x2e0] sm:$0xff]   ;;  %v9158_v29 = vld [vmem:[#allocation6 + $0x2a8] sm:$0xff]  }
 0xa34   :  { %v9156_v10 = vld [vmem:[#allocation6 + $0x2a0] sm:$0xff]  }
 0xa35   :  { %8050 = vmatpush3.bf16.msra.mxu1 %v9106_v35  ;;  %v9157_v35 = vld [vmem:[#allocation6 + $0x2e8] sm:$0xff]  }
 0xa36   :  { %8051 = vmatprep.subr.bf16.mxu1 %v9107_v51  ;;  %v9159_v51 = vld [vmem:[#allocation6 + $0x2f0] sm:$0xff]  }
 0xa39   :  { %8052 = vmatpush3.bf16.msra.mxu1 %v9108_v53  ;;  %v9160_v53 = vld [vmem:[#allocation6 + $0x2b0] sm:$0xff]  }
 0xa3a   :  { %8053 = vmatprep.subr.bf16.mxu1 %v9109_v19  ;;  %v9161_v19 = vld [vmem:[#allocation6 + $0x2f8] sm:$0xff]  }
 0xa3d   :  { %8054 = vmatpush3.bf16.msra.mxu1 %v9110_v59  ;;  %v9162_v59 = vld [vmem:[#allocation6 + $0x2b8] sm:$0xff]  }
 0xa3e   :  { %8055 = vmatprep.subr.bf16.mxu1 %v9111_v30  ;;  %v9163_v30 = vld [vmem:[#allocation6 + $0x340] sm:$0xff]  }
 0xa41   :  { %8056 = vmatpush3.bf16.msra.mxu1 %v9112_v52  ;;  %v9164_v52 = vld [vmem:[#allocation6 + $0x300] sm:$0xff]  }
 0xa42   :  { %8057 = vmatprep.subr.bf16.mxu1 %v9113_v7  ;;  %v5964_v7 = vpack.c.bf16 %v12449_v36, %v12449_v36  ;;  %v9172_v36 = vld [vmem:[#allocation6 + $0x320] sm:$0xff]  }
 0xa45   :  { %8058 = vmatpush3.bf16.msra.mxu1 %v9114_v28  ;;  %v9165_v28 = vld [vmem:[#allocation6 + $0x348] sm:$0xff]  }
 0xa46   :  { %8065 = vmatprep.subr.bf16.mxu1 %v9115_v41  ;;  %v5967_v41 = vpack.c.bf16 %v12454_v13, %v12454_v13  ;;  %v9174_v13 = vld [vmem:[#allocation6 + $0x328] sm:$0xff]  }
 0xa48   :  { %7114 = vmatmul.mubr.bf16.vlgmr.msra.gmra.mrb[44].mxu1 %v5958_v17  ;;  %v9167_v17 = vld [vmem:[#allocation6 + $0x350] sm:$0xff]  }
 0xa49   :  { %8066 = vmatpush3.bf16.msra.mxu1 %v9116_v32  ;;  %7153 = vmatprep.mubr.bf16.mxu1 %v5961_v46  ;;  %v9166_v32 = vld [vmem:[#allocation6 + $0x308] sm:$0xff]   ;;  %v9169_v46 = vld [vmem:[#allocation6 + $0x358] sm:$0xff]  }
 0xa4a   :  { %8067 = vmatprep.subr.bf16.mxu1 %v9117_v12  ;;  %v9168_v12 = vld [vmem:[#allocation6 + $0x310] sm:$0xff]  }
 0xa4d   :  { %8068 = vmatpush3.bf16.msra.mxu1 %v9118_v2  ;;  %v9170_v2 = vld [vmem:[#allocation6 + $0x318] sm:$0xff]  }
 0xa4e   :  { %8069 = vmatprep.subr.bf16.mxu1 %v9119_v63  ;;  %v9171_v63 = vld [vmem:[#allocation6 + $0x360] sm:$0xff]  }
 0xa51   :  { %8070 = vmatpush3.bf16.msra.mxu1 %v9120_v21  ;;  %v9173_v21 = vld [vmem:[#allocation6 + $0x368] sm:$0xff]  }
 0xa52   :  { %8071 = vmatprep.subr.bf16.mxu1 %v9121_v40  ;;  %v9175_v40 = vld [vmem:[#allocation6 + $0x370] sm:$0xff]  }
 0xa55   :  { %8072 = vmatpush3.bf16.msra.mxu1 %v9122_v50  ;;  %v9176_v50 = vld [vmem:[#allocation6 + $0x330] sm:$0xff]  }
 0xa56   :  { %8073 = vmatprep.subr.bf16.mxu1 %v9123_v33  ;;  %v9177_v33 = vld [vmem:[#allocation6 + $0x378] sm:$0xff]  }
 0xa59   :  { %8074 = vmatpush3.bf16.msra.mxu1 %v9124_v57  ;;  %v9178_v57 = vld [vmem:[#allocation6 + $0x338] sm:$0xff]  }
 0xa5a   :  { %8075 = vmatprep.subr.bf16.mxu1 %v9125_v27  ;;  %v9179_v27 = vld [vmem:[#allocation6 + $0x3c0] sm:$0xff]  }
 0xa5d   :  { %8076 = vmatpush3.bf16.msra.mxu1 %v9126_v31  ;;  %v9180_v31 = vld [vmem:[#allocation6 + $0x380] sm:$0xff]  }
 0xa5e   :  { %8077 = vmatprep.subr.bf16.mxu1 %v9127_v3  ;;  %v5966_v3 = vpack.c.bf16 %v12457_v8, %v12457_v8  ;;  %v9188_v8 = vld [vmem:[#allocation6 + $0x3a0] sm:$0xff]  }
 0xa61   :  { %8078 = vmatpush3.bf16.msra.mxu1 %v9128_v45  ;;  %v9181_v45 = vld [vmem:[#allocation6 + $0x3c8] sm:$0xff]  }
 0xa62   :  { %8079 = vmatprep.subr.bf16.mxu1 %v9129_v34  ;;  %v5969_v34 = vpack.c.bf16 %v12461_v49, %v12461_v49  ;;  %v9190_v49 = vld [vmem:[#allocation6 + $0x3a8] sm:$0xff]  }
 0xa65   :  { %8080 = vmatpush3.bf16.msra.mxu1 %v9130_v14  ;;  %v9182_v14 = vld [vmem:[#allocation6 + $0x388] sm:$0xff]  }
 0xa66   :  { %8087 = vmatprep.subr.bf16.mxu1 %v9131_v0  ;;  %v9183_v0 = vld [vmem:[#allocation6 + $0x3d0] sm:$0xff]  }
 0xa68   :  { %7154 = vmatmul.mubr.bf16.vlgmr.msra.gmra.mrb[48].mxu1 %v5960_v37  ;;  %v9185_v37 = vld [vmem:[#allocation6 + $0x3d8] sm:$0xff]  }
 0xa69   :  { %8088 = vmatpush3.bf16.msra.mxu1 %v9132_v54  ;;  %7193 = vmatprep.mubr.bf16.mxu1 %v5963_v62  ;;  %v9184_v54 = vld [vmem:[#allocation6 + $0x390] sm:$0xff]   ;;  %v9187_v62 = vld [vmem:[#allocation6 + $0x3e0] sm:$0xff]  }
 0xa6a   :  { %8089 = vmatprep.subr.bf16.mxu1 %v9133_v9  ;;  %v9186_v9 = vld [vmem:[#allocation6 + $0x398] sm:$0xff]  }
 0xa6d   :  { %8090 = vmatpush3.bf16.msra.mxu1 %v9134_v58  ;;  %v9189_v58 = vld [vmem:[#allocation6 + $0x3e8] sm:$0xff]  }
 0xa6e   :  { %8091 = vmatprep.subr.bf16.mxu1 %v9135_v1  ;;  %v9191_v1 = vld [vmem:[#allocation6 + $0x3f0] sm:$0xff]  }
 0xa71   :  { %8092 = vmatpush3.bf16.msra.mxu1 %v9136_v48  ;;  %v9192_v48 = vld [vmem:[#allocation6 + $0x3b0] sm:$0xff]  }
 0xa72   :  { %8093 = vmatprep.subr.bf16.mxu1 %v9137_v61  ;;  %v9193_v61 = vld [vmem:[#allocation6 + $0x3f8] sm:$0xff]  }
 0xa75   :  { %8094 = vmatpush3.bf16.msra.mxu1 %v9138_v16  ;;  %v9194_v16 = vld [vmem:[#allocation6 + $0x3b8] sm:$0xff]  }
 0xa76   :  { %8095 = vmatprep.subr.bf16.mxu1 %v9139_v44  ;;  %v5968_v44 = vpack.c.bf16 %v12464_v22, %v12464_v22 }
 0xa79   :  { %8096 = vmatpush3.bf16.msra.mxu1 %v9140_v60 }
 0xa7a   :  { %8097 = vmatprep.subr.bf16.mxu1 %v9141_v39  ;;  %v7852_v39 = vld [vmem:[%s12580_s7] ss:$0 sm:$0xff] }
 0xa7d   :  { %8098 = vmatpush3.bf16.msra.mxu1 %v9142_v55 }
 0xa7e   :  { %8099 = vmatprep.subr.bf16.mxu1 %v9143_v24 }
 0xa81   :  { %8100 = vmatpush3.bf16.msra.mxu1 %v9144_v26 }
 0xa82   :  { %8101 = vmatprep.subr.bf16.mxu1 %v9145_v25 }
 0xa85   :  { %8102 = vmatpush3.bf16.msra.mxu1 %v9146_v23 }
 0xa86   :  { %8109 = vmatprep.subr.bf16.mxu1 %v9147_v18 }
 0xa88   :  { %7194 = vmatmul.mubr.bf16.vlgmr.msra.gmra.mrb[52].mxu1 %v5962_v42 }
 0xa89   :  { %8110 = vmatpush3.bf16.msra.mxu1 %v9148_v43  ;;  %7233 = vmatprep.mubr.bf16.mxu1 %v5965_v11 }
 0xa8a   :  { %8111 = vmatprep.subr.bf16.mxu1 %v9149_v56 }
 0xa8d   :  { %8112 = vmatpush3.bf16.msra.mxu1 %v9150_v4 }
 0xa8e   :  { %8113 = vmatprep.subr.bf16.mxu1 %v9151_v20 }
 0xa91   :  { %8114 = vmatpush3.bf16.msra.mxu1 %v9152_v47 }
 0xa92   :  { %8115 = vmatprep.subr.bf16.mxu1 %v9153_v6 }
 0xa95   :  { %8116 = vmatpush3.bf16.msra.mxu1 %v9154_v38 }
 0xa96   :  { %8117 = vmatprep.subr.bf16.mxu1 %v9155_v15 }
 0xa99   :  { %8118 = vmatpush3.bf16.msra.mxu1 %v9156_v10  ;;  %v9195_v10 = vld [vmem:[%s12581_s8] sm:$0xff]  }
 0xa9a   :  { %8119 = vmatprep.subr.bf16.mxu1 %v9157_v35  ;;  %v9196_v35 = vld [vmem:[%s12581_s8 + $0x8] sm:$0xff]  }
 0xa9d   :  { %8120 = vmatpush3.bf16.msra.mxu1 %v9158_v29  ;;  %v9197_v29 = vld [vmem:[%s12581_s8 + $0x10] sm:$0xff]  }
 0xa9e   :  { %8121 = vmatprep.subr.bf16.mxu1 %v9159_v51  ;;  %v9198_v51 = vld [vmem:[%s12581_s8 + $0x18] sm:$0xff]  }
 0xaa1   :  { %8122 = vmatpush3.bf16.msra.mxu1 %v9160_v53  ;;  %v9199_v53 = vld [vmem:[%s12581_s8 + $0x20] sm:$0xff]  }
 0xaa2   :  { %8123 = vmatprep.subr.bf16.mxu1 %v9161_v19  ;;  %v9200_v19 = vld [vmem:[%s12581_s8 + $0x28] sm:$0xff]  }
 0xaa5   :  { %8124 = vmatpush3.bf16.msra.mxu1 %v9162_v59 }
 0xaa6   :  { %8131 = vmatprep.subr.bf16.mxu1 %v9163_v30 }
 0xaa8   :  { %7234 = vmatmul.mubr.bf16.vlgmr.msra.gmra.mrb[56].mxu1 %v5964_v7 }
 0xaa9   :  { %8132 = vmatpush3.bf16.msra.mxu1 %v9164_v52  ;;  %7273 = vmatprep.mubr.bf16.mxu1 %v5967_v41 }
 0xaaa   :  { %8133 = vmatprep.subr.bf16.mxu1 %v9165_v28 }
 0xaad   :  { %8134 = vmatpush3.bf16.msra.mxu1 %v9166_v32  ;;  %v9201_v32 = vld [vmem:[%s12581_s8 + $0x30] sm:$0xff]  }
 0xaae   :  { %8135 = vmatprep.subr.bf16.mxu1 %v9167_v17  ;;  %v9202_v17 = vld [vmem:[%s12581_s8 + $0x38] sm:$0xff]  }
 0xab1   :  { %8136 = vmatpush3.bf16.msra.mxu1 %v9168_v12 }
 0xab2   :  { %8137 = vmatprep.subr.bf16.mxu1 %v9169_v46 }
 0xab5   :  { %8138 = vmatpush3.bf16.msra.mxu1 %v9170_v2 }
 0xab6   :  { %8139 = vmatprep.subr.bf16.mxu1 %v9171_v63 }
 0xab9   :  { %8140 = vmatpush3.bf16.msra.mxu1 %v9172_v36 }
 0xaba   :  { %8141 = vmatprep.subr.bf16.mxu1 %v9173_v21 }
 0xabd   :  { %8142 = vmatpush3.bf16.msra.mxu1 %v9174_v13 }
 0xabe   :  { %8143 = vmatprep.subr.bf16.mxu1 %v9175_v40 }
 0xac1   :  { %8144 = vmatpush3.bf16.msra.mxu1 %v9176_v50 }
 0xac2   :  { %8145 = vmatprep.subr.bf16.mxu1 %v9177_v33 }
 0xac5   :  { %8146 = vmatpush3.bf16.msra.mxu1 %v9178_v57 }
 0xac6   :  { %8153 = vmatprep.subr.bf16.mxu1 %v9179_v27 }
 0xac8   :  { %7274 = vmatmul.mubr.bf16.vlgmr.msra.gmra.mrb[60].mxu1 %v5966_v3 }
 0xac9   :  { %8154 = vmatpush3.bf16.msra.mxu1 %v9180_v31  ;;  %7313 = vmatprep.mubr.bf16.mxu1 %v5969_v34 }
 0xaca   :  { %8155 = vmatprep.subr.bf16.mxu1 %v9181_v45 }
 0xacd   :  { %8156 = vmatpush3.bf16.msra.mxu1 %v9182_v14 }
 0xace   :  { %8157 = vmatprep.subr.bf16.mxu1 %v9183_v0 }
 0xad1   :  { %8158 = vmatpush3.bf16.msra.mxu1 %v9184_v54 }
 0xad2   :  { %8159 = vmatprep.subr.bf16.mxu1 %v9185_v37 }
 0xad5   :  { %8160 = vmatpush3.bf16.msra.mxu1 %v9186_v9 }
 0xad6   :  { %8161 = vmatprep.subr.bf16.mxu1 %v9187_v62 }
 0xad9   :  { %8162 = vmatpush3.bf16.msra.mxu1 %v9188_v8 }
 0xada   :  { %8163 = vmatprep.subr.bf16.mxu1 %v9189_v58 }
 0xadd   :  { %8164 = vmatpush3.bf16.msra.mxu1 %v9190_v49 }
 0xade   :  { %8165 = vmatprep.subr.bf16.mxu1 %v9191_v1  ;;  %v9203_v1 = vld [vmem:[%s12583_s10] sm:$0xff]  }
 0xae1   :  { %8166 = vmatpush3.bf16.msra.mxu1 %v9192_v48 }
 0xae2   :  { %8167 = vmatprep.subr.bf16.mxu1 %v9193_v61  ;;  %v9204_v61 = vld [vmem:[%s12583_s10 + $0x8] sm:$0xff]  }
 0xae5   :  { %8168 = vmatpush3.bf16.msra.mxu1 %v9194_v16  ;;  %v9205_v16 = vld [vmem:[%s12583_s10 + $0x10] sm:$0xff]  }
 0xae6   :  { %8193 = vmatprep.subr.bf16.mxu1 %v12639_v5 }
 0xae8   :  { %7314 = vmatmul.mubr.bf16.vlgmr.msra.gmra.mrb[64].mxu1 %v5968_v44  ;;  %v9206_v44 = vld [vmem:[%s12583_s10 + $0x18] sm:$0xff]  }
 0xae9   :  { %8194 = vmatpush3.bf16.msra.mxu1 %v9195_v10  ;;  %8209 = vmatprep.mubr.msk.bf16.mxu1 %vm9318_vm1, %v12639_v5 }
 0xaea   :  { %8195 = vmatprep.subr.bf16.mxu1 %v12639_v5 }
 0xaed   :  { %8196 = vmatpush3.bf16.msra.mxu1 %v9196_v35 }
 0xaee   :  { %8197 = vmatprep.subr.bf16.mxu1 %v12639_v5 }
 0xaf1   :  { %8198 = vmatpush3.bf16.msra.mxu1 %v9197_v29 }
 0xaf2   :  { %8199 = vmatprep.subr.bf16.mxu1 %v12639_v5 }
 0xaf5   :  { %8200 = vmatpush3.bf16.msra.mxu1 %v9198_v51 }
 0xaf6   :  { %8201 = vmatprep.subr.bf16.mxu1 %v12639_v5 }
 0xaf9   :  { %8202 = vmatpush3.bf16.msra.mxu1 %v9199_v53 }
 0xafa   :  { %v8015_v60 = vpop.f32.mrb[32].mxu0  ;;  %8203 = vmatprep.subr.bf16.mxu1 %v12639_v5 }
 0xafb   :  { %v8016_v55 = vpop.f32.mrb[33].mxu0  ;;  %v8037_v24 = vpop.f32.mrb[40].mxu1 }
 0xafc   :  { %v8017_v26 = vadd.f32 %v8016_v55, %v8015_v60  ;;  %v8018_v25 = vpop.f32.mrb[34].mxu0  ;;  %v8038_v23 = vpop.f32.mrb[41].mxu1  ;;  %v9207_v60 = vld [vmem:[%s12583_s10 + $0x20] sm:$0xff]   ;;  %v9209_v55 = vld [vmem:[%s12583_s10 + $0x30] sm:$0xff]  }
 0xafd   :  { %v8039_v18 = vadd.f32 %v8038_v23, %v8037_v24  ;;  %v8019_v43 = vpop.f32.mrb[35].mxu0  ;;  %v8040_v42 = vpop.f32.mrb[42].mxu1  ;;  %8204 = vmatpush3.bf16.msra.mxu1 %v9200_v19  ;;  %v9210_v24 = vld [vmem:[%s12583_s10 + $0x38] sm:$0xff]  }
 0xafe   :  { %v7036_v56 = vadd.f32 %v8017_v26, %v7852_v39  ;;  %v8041_v11 = vpop.f32.mrb[43].mxu1  ;;  %8205 = vmatprep.subr.bf16.mxu1 %v12639_v5  ;;  %v9208_v39 = vld [vmem:[%s12583_s10 + $0x28] sm:$0xff]   ;;  %v7981_v26 = vld [vmem:[%s12582_s9] ss:$0 sm:$0xff]  ;;  %s9319_s10 = smov [#allocation8]  }
 0xaff   :  { %s7554_s24 = sshll.u32 %s9319_s10, 4  ;;  %s7555_s24 = int_to_ptr.vmem [resolvable:$true] %s7554_s24 }
 0xb00   :  { %v7076_v4 = vadd.f32 %v8039_v18, %v7036_v56  ;;  %s9267_s9 = scalar_lea.vmem %s7555_s24, 32  ;;  %p9272_p3 = scmp.lt.s32.totalorder %s7555_s24, %s7555_s24 }
 0xb01   :  { %8206 = vmatpush3.bf16.msra.mxu1 %v9201_v32  ;;  %p9268_p2 = scmp.ne.s32.totalorder %s7555_s24, %s9267_s9  ;;  %p9273_p4 = scmp.lt.s32.totalorder %s9267_s9, %s9267_s9 }
 0xb02   :  { %8207 = vmatprep.subr.bf16.mxu1 %v12639_v5 }
 0xb03   :  { %p9274_p5 = por %p9273_p4, %p9272_p3 }
 0xb05   :  { %8208 = vmatpush3.bf16.msra.mxu1 %v9202_v17  ;;  %p9275_p6 = pnand %p9274_p5, %p9268_p2 }
 0xb06   :  { %8213 = vmatprep.subr.bf16.mxu1 %v12639_v5 }
 0xb1b   :  { %v8059_v22 = vpop.f32.mrb[44].mxu1 }
 0xb1c   :  { %v8060_v20 = vpop.f32.mrb[45].mxu1 }
 0xb1d   :  { %v8061_v47 = vadd.f32 %v8060_v20, %v8059_v22  ;;  %v8062_v6 = vpop.f32.mrb[46].mxu1 }
 0xb1e   :  { %v8063_v38 = vpop.f32.mrb[47].mxu1 }
 0xb1f   :  { %v7116_v15 = vadd.f32 %v8061_v47, %v7076_v4  ;;  %v7990_v4 = vld [vmem:[%s12584_s11] ss:$0 sm:$0xff] }
 0xb3b   :  { %v8081_v59 = vpop.f32.mrb[48].mxu1 }
 0xb3c   :  { %v8082_v30 = vpop.f32.mrb[49].mxu1 }
 0xb3d   :  { %v8083_v52 = vadd.f32 %v8082_v30, %v8081_v59  ;;  %v8084_v7 = vpop.f32.mrb[50].mxu1 }
 0xb3e   :  { %v8085_v28 = vpop.f32.mrb[51].mxu1 }
 0xb3f   :  { %v7156_v41 = vadd.f32 %v8083_v52, %v7116_v15 }
 0xb5b   :  { %v8103_v12 = vpop.f32.mrb[52].mxu1 }
 0xb5c   :  { %v8104_v46 = vpop.f32.mrb[53].mxu1 }
 0xb5d   :  { %v8105_v2 = vadd.f32 %v8104_v46, %v8103_v12  ;;  %v8106_v63 = vpop.f32.mrb[54].mxu1 }
 0xb5e   :  { %v8107_v36 = vpop.f32.mrb[55].mxu1 }
 0xb5f   :  { %v7196_v21 = vadd.f32 %v8105_v2, %v7156_v41 }
 0xb7b   :  { %v8125_v13 = vpop.f32.mrb[56].mxu1 }
 0xb7c   :  { %v8126_v40 = vpop.f32.mrb[57].mxu1 }
 0xb7d   :  { %v8127_v50 = vadd.f32 %v8126_v40, %v8125_v13  ;;  %v8128_v33 = vpop.f32.mrb[58].mxu1 }
 0xb7e   :  { %v8129_v57 = vpop.f32.mrb[59].mxu1 }
 0xb7f   :  { %v7236_v27 = vadd.f32 %v8127_v50, %v7196_v21 }
 0xb9b   :  { %v8147_v31 = vpop.f32.mrb[60].mxu1 }
 0xb9c   :  { %v8148_v3 = vpop.f32.mrb[61].mxu1 }
 0xb9d   :  { %v8149_v45 = vadd.f32 %v8148_v3, %v8147_v31  ;;  %v8150_v34 = vpop.f32.mrb[62].mxu1 }
 0xb9e   :  { %v8151_v14 = vpop.f32.mrb[63].mxu1 }
 0xb9f   :  { %v7276_v0 = vadd.f32 %v8149_v45, %v7236_v27 }
 0xbbb   :  { %v8169_v54 = vpop.f32.mrb[64].mxu1 }
 0xbbc   :  { %v8170_v37 = vpop.f32.mrb[65].mxu1 }
 0xbbd   :  { %v8171_v9 = vadd.f32 %v8170_v37, %v8169_v54  ;;  %v8172_v62 = vpop.f32.mrb[66].mxu1 }
 0xbbe   :  { %v8173_v8 = vpop.f32.mrb[67].mxu1 }
 0xbbf   :  { %v7316_v58 = vadd.f32 %v8171_v9, %v7276_v0 }
 0xbc1   :  { %v7321_v49 = vmax.f32 %v7316_v58, 0.0 }
 0xbc3   :  { %v7322_v48 = vpack.c.bf16 %v7321_v49, %v7321_v49 }
 0xbc5   :  { %8210 = vmatmul.mubr.bf16.vlgmr.msra.gmra.mrb[68].mxu1 %v7322_v48 }
 0xbc6   :  { %8214 = vmatpush3.bf16.msra.mxu1 %v9203_v1  ;;  %8229 = vmatprep.mubr.msk.bf16.mxu1 %vm9318_vm1, %v12639_v5 }
 0xbc7   :  { %8215 = vmatprep.subr.bf16.mxu1 %v12639_v5 }
 0xbca   :  { %8216 = vmatpush3.bf16.msra.mxu1 %v9204_v61 }
 0xbcb   :  { %8217 = vmatprep.subr.bf16.mxu1 %v12639_v5 }
 0xbce   :  { %8218 = vmatpush3.bf16.msra.mxu1 %v9205_v16 }
 0xbcf   :  { %8219 = vmatprep.subr.bf16.mxu1 %v12639_v5 }
 0xbd2   :  { %8220 = vmatpush3.bf16.msra.mxu1 %v9206_v44 }
 0xbd3   :  { %8221 = vmatprep.subr.bf16.mxu1 %v12639_v5 }
 0xbd6   :  { %8222 = vmatpush3.bf16.msra.mxu1 %v9207_v60 }
 0xbd7   :  { %8223 = vmatprep.subr.bf16.mxu1 %v12639_v5 }
 0xbda   :  { %8224 = vmatpush3.bf16.msra.mxu1 %v9208_v39 }
 0xbdb   :  { %8225 = vmatprep.subr.bf16.mxu1 %v12639_v5 }
 0xbde   :  { %8226 = vmatpush3.bf16.msra.mxu1 %v9209_v55 }
 0xbdf   :  { %8227 = vmatprep.subr.bf16.mxu1 %v12639_v5 }
 0xbe2   :  { %8228 = vmatpush3.bf16.msra.mxu1 %v9210_v24 }
 0xc98   :  { %v7428_v25 = vpop.f32.mrb[68].mxu1 }
 0xc99   :  { %v7429_v23 = vadd.f32 %v7981_v26, %v7428_v25  ;;  %v8211_v18 = vpop.f32.mrb[69].mxu1 }
 0xc9a   :  { %v7431_v43 = vpop.f32.mrb[70].mxu1 }
 0xc9b   :  { %v7434_v42 = vmax.f32 %v7429_v23, 0.0  ;;  %v8212_v56 = vpop.f32.mrb[71].mxu1 }
 0xc9d   :  { %v7435_v11 = vpack.c.bf16 %v7434_v42, %v7434_v42 }
 0xc9f   :  { %8230 = vmatmul.mubr.bf16.vlgmr.msra.gmra.mrb[72].mxu1 %v7435_v11 }
 0xd72   :  { %v7541_v5 = vpop.f32.mrb[72].mxu1 }
 0xd73   :  { %v7542_v22 = vadd.f32 %v7990_v4, %v7541_v5  ;;  %v8231_v20 = vpop.f32.mrb[73].mxu1 }
 0xd74   :  { %v7544_v47 = vpop.f32.mrb[74].mxu1 }
 0xd75   :  { %7547 = vst [vmem:[#allocation8] sm:$0x3] %v7542_v22  ;;  %v8232_v6 = vpop.f32.mrb[75].mxu1 }
 0xd76   :  { %9278 = shalt.err (!%p9275_p6)
}
 0xd77   :  { %s9279_s11 = scalar_lea.hbm %s12585_s12, 32 }
 0xd78   :  { %p9280_p7 = scmp.ne.s32.totalorder %s12585_s12, %s9279_s11  ;;  %p9283_p8 = scmp.lt.u32.totalorder %s9279_s11, %s12585_s12 }
 0xd7a   :  { %p9285_p9 = pnand %p9283_p8, %p9280_p7 }
 0xd7c   :  { %9288 = shalt.err (!%p9285_p9)
}
 0xd7d   :  { %7557 = dma.vmem_to_hbm [thread:$0]  %s7555_s24, 32, %s12585_s12, [#allocation5]  }
 0xd7e   :  { %9293 = dma.done.wait [#allocation5], 32  }
 0xd7f   :  { %9294 = vsyncadd [#allocation5], 4294967264 }
 0xd80   :  { %7561 = vsyncpa [#allocation4], 1 }
 0xd81   :  { %7562 = vsyncpa [#allocation7], 1 }
 0xd82   :  { %7563 = vsyncpa [#allocation5], 1 }

</bundles_post_ra>
